<compile_context>
chip_gen: v7x
topology: tpu7x:2x2x1
jax: 0.10.0
libtpu: 0.0.40
codegen_flags: <defaults>
</compile_context>

<pallas_src>
import jax
import jax.numpy as jnp
from jax.experimental import pallas as pl
from jax.experimental.pallas import tpu as pltpu


# ----------------------------------------------------------------------------
# Weight repacking (plain-JAX glue, runs once per call outside the kernel):
# build, for each kh tap, a banded (W*Cin, W*Cout) matrix such that
#   out[h, wo*Cout+co] = sum_kh  xpad[h+kh, :] @ band[kh]
# implements a stride-1, zero-padded 3x3 convolution in the (H, W*C) layout.
# ----------------------------------------------------------------------------
def make_banded(w_hwio, W):
    """w_hwio: (K, K, Cin, Cout) -> (K, W*Cin, W*Cout) banded matrices."""
    K, _, Cin, Cout = w_hwio.shape
    wi = jnp.arange(W)[:, None]            # input  column index
    wo = jnp.arange(W)[None, :]            # output column index
    kw = wi - wo + (K // 2)                # which kw tap connects wi -> wo
    valid = (kw >= 0) & (kw < K)
    kw_c = jnp.clip(kw, 0, K - 1)
    band = w_hwio[:, kw_c, :, :]           # (K, W_in, W_out, Cin, Cout)
    band = band * valid[None, :, :, None, None].astype(w_hwio.dtype)
    band = jnp.transpose(band, (0, 1, 3, 2, 4))   # (K, W_in, Cin, W_out, Cout)
    return band.reshape(K, W * Cin, W * Cout)


# ----------------------------------------------------------------------------
# Fused FusionBlock2 kernel (one grid step = one batch image).
# Feature maps are (H, W*C) values; convs are 3 banded matmuls (one per kh).
# ----------------------------------------------------------------------------
def _fusion_block2_kernel(ss_ref, spa_ref, spe_ref,
                          wb1_ref, b1_ref, wb2_ref, b2_ref, wb3_ref, b3_ref,
                          wbs_ref, bs_ref, wbc_ref, bc_ref,
                          ss2_ref, spa_o_ref, spe_o_ref,
                          pbuf):
    H, _ = ss_ref.shape

    # Zero the padded scratch once per image (rows 0 and H+1 act as the kh halo).
    pbuf[...] = jnp.zeros(pbuf.shape, jnp.float32)

    def conv3x3(x, wb_ref, b_ref, relu):
        hh, wcin = x.shape
        wcout = wb_ref.shape[2]
        # place x into rows 1..H of the zero-haloed scratch
        pbuf[1:hh + 1, 0:wcin] = x
        acc = jnp.zeros((hh, wcout), jnp.float32)
        for kh in range(3):                     # 3 full-width MXU matmuls
            acc = acc + jnp.dot(pbuf[kh:kh + hh, 0:wcin], wb_ref[kh],
                                preferred_element_type=jnp.float32)
        acc = acc + b_ref[...]                  # (1, W*Cout) broadcast over rows
        if relu:
            acc = jnp.maximum(acc, 0.0)
        return acc

    spa_in = spa_ref[...]
    spe_in = spe_ref[...]
    # channel concat == lane concat of the three group slabs (wb1 rows are built
    # for exactly this [ss | spatial | spectral] group-major ordering)
    xcat = jnp.concatenate([ss_ref[...], spa_in, spe_in], axis=-1)   # (H, 3*W*C)

    h = conv3x3(xcat, wb1_ref, b1_ref, relu=True)      # (H, W*3C)
    h = conv3x3(h, wb2_ref, b2_ref, relu=True)         # (H, W*C)
    ss2 = conv3x3(h, wb3_ref, b3_ref, relu=True)       # (H, W*C)  == ss_x2
    ss2_ref[...] = ss2

    spa_o_ref[...] = jnp.maximum(
        spa_in + conv3x3(ss2, wbs_ref, bs_ref, relu=False), 0.0)
    spe_o_ref[...] = jnp.maximum(
        spe_in + conv3x3(ss2, wbc_ref, bc_ref, relu=False), 0.0)


# ----------------------------------------------------------------------------
# Wrapper: NHWC inputs -> lane-dense (N, H, W*C) slabs -> fused pallas_call
# ----------------------------------------------------------------------------
def fusion_block2_forward(ss, spa, spe, params):
    """ss/spa/spe: (N, H, W, C) float32. Returns (ss_x2, spatial_x, spectral_x)."""
    N, H, W, C = ss.shape
    WC = W * C
    WC3 = W * 3 * C

    # contiguous reshape (free): channels folded into the lane axis
    ss2d = ss.reshape(N, H, WC)
    spa2d = spa.reshape(N, H, WC)
    spe2d = spe.reshape(N, H, WC)

    # banded weights; conv1 rows follow the [ss | spatial | spectral] group layout
    wb1 = jnp.concatenate(
        [make_banded(params["w1"][:, :, g * C:(g + 1) * C, :], W) for g in range(3)],
        axis=1)                                        # (3, 3*W*C, W*3C)
    wb2 = make_banded(params["w2"], W)                 # (3, W*3C, W*C)
    wb3 = make_banded(params["w3"], W)                 # (3, W*C,  W*C)
    wbs = make_banded(params["ws"], W)
    wbc = make_banded(params["wc"], W)

    b1 = jnp.tile(params["b1"], W).reshape(1, WC3)
    b2 = jnp.tile(params["b2"], W).reshape(1, WC)
    b3 = jnp.tile(params["b3"], W).reshape(1, WC)
    bs = jnp.tile(params["bs"], W).reshape(1, WC)
    bc = jnp.tile(params["bc"], W).reshape(1, WC)

    img_spec = pl.BlockSpec((None, H, WC), lambda n: (n, 0, 0))

    def full_spec(a):
        nd = a.ndim
        return pl.BlockSpec(a.shape, lambda n, _nd=nd: (0,) * _nd)

    out_shape = (jax.ShapeDtypeStruct((N, H, WC), jnp.float32),) * 3
    out_specs = (img_spec, img_spec, img_spec)

    ss2, spa_o, spe_o = pl.pallas_call(
        _fusion_block2_kernel,
        out_shape=out_shape,
        grid=(N,),
        in_specs=[img_spec, img_spec, img_spec,
                  full_spec(wb1), full_spec(b1),
                  full_spec(wb2), full_spec(b2),
                  full_spec(wb3), full_spec(b3),
                  full_spec(wbs), full_spec(bs),
                  full_spec(wbc), full_spec(bc)],
        out_specs=out_specs,
        scratch_shapes=[pltpu.VMEM((H + 2, WC3), jnp.float32)],
        compiler_params=pltpu.CompilerParams(dimension_semantics=("parallel",)),
    )(ss2d, spa2d, spe2d, wb1, b1, wb2, b2, wb3, b3, wbs, bs, wbc, bc)

    return (ss2.reshape(N, H, W, C),
            spa_o.reshape(N, H, W, C),
            spe_o.reshape(N, H, W, C))


# ----------------------------------------------------------------------------
# Deterministic synthetic parameters (shapes from the PyTorch __init__, HWIO)
# ----------------------------------------------------------------------------
def init_params(key, C, K):
    keys = jax.random.split(key, 10)

    def nrm(k, shape, scale):
        return jax.random.normal(k, shape, jnp.float32) * scale

    return {
        "w1": nrm(keys[0], (K, K, 3 * C, 3 * C), 0.06), "b1": nrm(keys[1], (3 * C,), 0.02),
        "w2": nrm(keys[2], (K, K, 3 * C, C), 0.06),     "b2": nrm(keys[3], (C,), 0.02),
        "w3": nrm(keys[4], (K, K, C, C), 0.08),         "b3": nrm(keys[5], (C,), 0.02),
        "ws": nrm(keys[6], (K, K, C, C), 0.08),         "bs": nrm(keys[7], (C,), 0.02),
        "wc": nrm(keys[8], (K, K, C, C), 0.08),         "bc": nrm(keys[9], (C,), 0.02),
    }


# ----------------------------------------------------------------------------
# Pure-JAX reference (for the correctness check)
# ----------------------------------------------------------------------------
def _conv_ref(x, w, b):
    y = jax.lax.conv_general_dilated(
        x, w, (1, 1), "SAME", dimension_numbers=("NHWC", "HWIO", "NHWC"))
    return y + b.reshape(1, 1, 1, -1)


def _ref_forward(ss, spa, spe, p):
    x = jnp.concatenate([ss, spa, spe], axis=-1)
    h = jax.nn.relu(_conv_ref(x, p["w1"], p["b1"]))
    h = jax.nn.relu(_conv_ref(h, p["w2"], p["b2"]))
    ss2 = jax.nn.relu(_conv_ref(h, p["w3"], p["b3"]))
    spa_o = jax.nn.relu(spa + _conv_ref(ss2, p["ws"], p["bs"]))
    spe_o = jax.nn.relu(spe + _conv_ref(ss2, p["wc"], p["bc"]))
    return ss2, spa_o, spe_o


# ----------------------------------------------------------------------------
if __name__ == "__main__":
    key = jax.random.PRNGKey(0)
    N, C, H, W, K = 2, 8, 16, 16, 3          # n_channels=8 -> W*C = 128 lanes

    k1, k2, k3, kp = jax.random.split(key, 4)
    ss_nchw = jax.random.normal(k1, (N, C, H, W), jnp.float32)    # PyTorch layout
    spa_nchw = jax.random.normal(k2, (N, C, H, W), jnp.float32)
    spe_nchw = jax.random.normal(k3, (N, C, H, W), jnp.float32)

    # kernel layout: NHWC (channels on the lane axis)
    ss = jnp.transpose(ss_nchw, (0, 2, 3, 1))
    spa = jnp.transpose(spa_nchw, (0, 2, 3, 1))
    spe = jnp.transpose(spe_nchw, (0, 2, 3, 1))

    params = init_params(kp, C, K)

    out = fusion_block2_forward(ss, spa, spe, params)
    out = jax.block_until_ready(out)
    ss2_k, spa_k, spe_k = out

    ss2_r, spa_r, spe_r = _ref_forward(ss, spa, spe, params)

    assert ss2_k.shape == (N, H, W, C)
    assert spa_k.shape == (N, H, W, C)
    assert spe_k.shape == (N, H, W, C)
    for got, ref in ((ss2_k, ss2_r), (spa_k, spa_r), (spe_k, spe_r)):
        err = float(jnp.max(jnp.abs(got - ref)))
        assert jnp.allclose(got, ref, atol=1e-3, rtol=1e-3), f"max_err={err}"

    print("KERNEL_OK")
</pallas_src>

<mosaic_0001>
module attributes {stable_mosaic.version = 11 : i64} {
  func.func @_fusion_block2_kernel(%arg0: i32, %arg1: memref<1x16x128xf32, #tpu.memory_space<vmem>>, %arg2: memref<1x16x128xf32, #tpu.memory_space<vmem>>, %arg3: memref<1x16x128xf32, #tpu.memory_space<vmem>>, %arg4: memref<3x384x384xf32, #tpu.memory_space<vmem>>, %arg5: memref<1x384xf32, #tpu.memory_space<vmem>>, %arg6: memref<3x384x128xf32, #tpu.memory_space<vmem>>, %arg7: memref<1x128xf32, #tpu.memory_space<vmem>>, %arg8: memref<3x128x128xf32, #tpu.memory_space<vmem>>, %arg9: memref<1x128xf32, #tpu.memory_space<vmem>>, %arg10: memref<3x128x128xf32, #tpu.memory_space<vmem>>, %arg11: memref<1x128xf32, #tpu.memory_space<vmem>>, %arg12: memref<3x128x128xf32, #tpu.memory_space<vmem>>, %arg13: memref<1x128xf32, #tpu.memory_space<vmem>>, %arg14: memref<1x16x128xf32, #tpu.memory_space<vmem>>, %arg15: memref<1x16x128xf32, #tpu.memory_space<vmem>>, %arg16: memref<1x16x128xf32, #tpu.memory_space<vmem>>, %arg17: memref<18x384xf32, #tpu.memory_space<vmem>>) attributes {dimension_semantics = [#tpu.dimension_semantics<parallel>], iteration_bounds = array<i64: 2>, scalar_prefetch = 0 : i64, scratch_operands = 1 : i64, tpu.core_type = #tpu.core_type<tc>, window_params = [{transform_indices = @transform_0, window_bounds = array<i64: 1, 16, 128>}, {transform_indices = @transform_1, window_bounds = array<i64: 1, 16, 128>}, {transform_indices = @transform_2, window_bounds = array<i64: 1, 16, 128>}, {pipeline_mode = #tpu.pipeline_mode<synchronous>, transform_indices = @transform_3, window_bounds = array<i64: 3, 384, 384>}, {pipeline_mode = #tpu.pipeline_mode<synchronous>, transform_indices = @transform_4, window_bounds = array<i64: 1, 384>}, {pipeline_mode = #tpu.pipeline_mode<synchronous>, transform_indices = @transform_5, window_bounds = array<i64: 3, 384, 128>}, {pipeline_mode = #tpu.pipeline_mode<synchronous>, transform_indices = @transform_6, window_bounds = array<i64: 1, 128>}, {pipeline_mode = #tpu.pipeline_mode<synchronous>, transform_indices = @transform_7, window_bounds = array<i64: 3, 128, 128>}, {pipeline_mode = #tpu.pipeline_mode<synchronous>, transform_indices = @transform_8, window_bounds = array<i64: 1, 128>}, {pipeline_mode = #tpu.pipeline_mode<synchronous>, transform_indices = @transform_9, window_bounds = array<i64: 3, 128, 128>}, {pipeline_mode = #tpu.pipeline_mode<synchronous>, transform_indices = @transform_10, window_bounds = array<i64: 1, 128>}, {pipeline_mode = #tpu.pipeline_mode<synchronous>, transform_indices = @transform_11, window_bounds = array<i64: 3, 128, 128>}, {pipeline_mode = #tpu.pipeline_mode<synchronous>, transform_indices = @transform_12, window_bounds = array<i64: 1, 128>}, {transform_indices = @transform_13, window_bounds = array<i64: 1, 16, 128>}, {transform_indices = @transform_14, window_bounds = array<i64: 1, 16, 128>}, {transform_indices = @transform_15, window_bounds = array<i64: 1, 16, 128>}]} {
    %cst = arith.constant 0.000000e+00 : f32
    %0 = vector.broadcast %cst : f32 to vector<18x384xf32>
    %c0 = arith.constant 0 : index
    %c0_0 = arith.constant 0 : index
    %1 = vector.load %arg17[%c0, %c0_0] : memref<18x384xf32, #tpu.memory_space<vmem>>, vector<18x384xf32>
    tpu.vector_store %arg17[%c0, %c0_0], %0 {strides = array<i32>} : memref<18x384xf32, #tpu.memory_space<vmem>>, vector<18x384xf32>,
    %c0_1 = arith.constant 0 : index
    %c0_2 = arith.constant 0 : index
    %c0_3 = arith.constant 0 : index
    %2 = vector.load %arg2[%c0_1, %c0_2, %c0_3] : memref<1x16x128xf32, #tpu.memory_space<vmem>>, vector<1x16x128xf32>
    %3 = vector.shape_cast %2 : vector<1x16x128xf32> to vector<16x128xf32>
    %c0_4 = arith.constant 0 : index
    %c0_5 = arith.constant 0 : index
    %c0_6 = arith.constant 0 : index
    %4 = vector.load %arg3[%c0_4, %c0_5, %c0_6] : memref<1x16x128xf32, #tpu.memory_space<vmem>>, vector<1x16x128xf32>
    %5 = vector.shape_cast %4 : vector<1x16x128xf32> to vector<16x128xf32>
    %c0_7 = arith.constant 0 : index
    %c0_8 = arith.constant 0 : index
    %c0_9 = arith.constant 0 : index
    %6 = vector.load %arg1[%c0_7, %c0_8, %c0_9] : memref<1x16x128xf32, #tpu.memory_space<vmem>>, vector<1x16x128xf32>
    %7 = vector.shape_cast %6 : vector<1x16x128xf32> to vector<16x128xf32>
    %8 = tpu.concatenate %7, %3, %5 in 1 : vector<16x128xf32>, vector<16x128xf32>, vector<16x128xf32> -> vector<16x384xf32>
    %c1 = arith.constant 1 : index
    %c0_10 = arith.constant 0 : index
    %9 = vector.load %arg17[%c1, %c0_10] : memref<18x384xf32, #tpu.memory_space<vmem>>, vector<16x384xf32>
    tpu.vector_store %arg17[%c1, %c0_10], %8 {strides = array<i32>} : memref<18x384xf32, #tpu.memory_space<vmem>>, vector<16x384xf32>,
    %cst_11 = arith.constant 0.000000e+00 : f32
    %10 = vector.broadcast %cst_11 : f32 to vector<16x384xf32>
    %c0_12 = arith.constant 0 : index
    %c0_13 = arith.constant 0 : index
    %11 = vector.load %arg17[%c0_12, %c0_13] : memref<18x384xf32, #tpu.memory_space<vmem>>, vector<16x384xf32>
    %c0_14 = arith.constant 0 : index
    %c0_15 = arith.constant 0 : index
    %c0_16 = arith.constant 0 : index
    %12 = vector.load %arg4[%c0_14, %c0_15, %c0_16] : memref<3x384x384xf32, #tpu.memory_space<vmem>>, vector<1x384x384xf32>
    %13 = vector.shape_cast %12 : vector<1x384x384xf32> to vector<384x384xf32>
    %cst_17 = arith.constant dense<0.000000e+00> : vector<16x384xf32>
    %14 = tpu.matmul %11, %13, %cst_17 {dimension_numbers = #tpu.dot_dimension_numbers<[1], [0], [0], [1], [0, 0, 1, 1], [], []>} : vector<16x384xf32>, vector<384x384xf32>, vector<16x384xf32> -> vector<16x384xf32>
    %15 = arith.addf %10, %14 : vector<16x384xf32>
    %c1_18 = arith.constant 1 : index
    %c0_19 = arith.constant 0 : index
    %16 = vector.load %arg17[%c1_18, %c0_19] : memref<18x384xf32, #tpu.memory_space<vmem>>, vector<16x384xf32>
    %c1_20 = arith.constant 1 : index
    %c0_21 = arith.constant 0 : index
    %c0_22 = arith.constant 0 : index
    %17 = vector.load %arg4[%c1_20, %c0_21, %c0_22] : memref<3x384x384xf32, #tpu.memory_space<vmem>>, vector<1x384x384xf32>
    %18 = vector.shape_cast %17 : vector<1x384x384xf32> to vector<384x384xf32>
    %cst_23 = arith.constant dense<0.000000e+00> : vector<16x384xf32>
    %19 = tpu.matmul %16, %18, %cst_23 {dimension_numbers = #tpu.dot_dimension_numbers<[1], [0], [0], [1], [0, 0, 1, 1], [], []>} : vector<16x384xf32>, vector<384x384xf32>, vector<16x384xf32> -> vector<16x384xf32>
    %20 = arith.addf %15, %19 : vector<16x384xf32>
    %c2 = arith.constant 2 : index
    %c0_24 = arith.constant 0 : index
    %21 = vector.load %arg17[%c2, %c0_24] : memref<18x384xf32, #tpu.memory_space<vmem>>, vector<16x384xf32>
    %c2_25 = arith.constant 2 : index
    %c0_26 = arith.constant 0 : index
    %c0_27 = arith.constant 0 : index
    %22 = vector.load %arg4[%c2_25, %c0_26, %c0_27] : memref<3x384x384xf32, #tpu.memory_space<vmem>>, vector<1x384x384xf32>
    %23 = vector.shape_cast %22 : vector<1x384x384xf32> to vector<384x384xf32>
    %cst_28 = arith.constant dense<0.000000e+00> : vector<16x384xf32>
    %24 = tpu.matmul %21, %23, %cst_28 {dimension_numbers = #tpu.dot_dimension_numbers<[1], [0], [0], [1], [0, 0, 1, 1], [], []>} : vector<16x384xf32>, vector<384x384xf32>, vector<16x384xf32> -> vector<16x384xf32>
    %25 = arith.addf %20, %24 : vector<16x384xf32>
    %c0_29 = arith.constant 0 : index
    %c0_30 = arith.constant 0 : index
    %26 = vector.load %arg5[%c0_29, %c0_30] : memref<1x384xf32, #tpu.memory_space<vmem>>, vector<1x384xf32>
    %27 = vector.broadcast %26 : vector<1x384xf32> to vector<16x384xf32>
    %28 = arith.addf %25, %27 : vector<16x384xf32>
    %cst_31 = arith.constant 0.000000e+00 : f32
    %29 = vector.broadcast %cst_31 : f32 to vector<16x384xf32>
    %30 = arith.maximumf %28, %29 : vector<16x384xf32>
    %c1_32 = arith.constant 1 : index
    %c0_33 = arith.constant 0 : index
    %31 = vector.load %arg17[%c1_32, %c0_33] : memref<18x384xf32, #tpu.memory_space<vmem>>, vector<16x384xf32>
    tpu.vector_store %arg17[%c1_32, %c0_33], %30 {strides = array<i32>} : memref<18x384xf32, #tpu.memory_space<vmem>>, vector<16x384xf32>,
    %cst_34 = arith.constant 0.000000e+00 : f32
    %32 = vector.broadcast %cst_34 : f32 to vector<16x128xf32>
    %c0_35 = arith.constant 0 : index
    %c0_36 = arith.constant 0 : index
    %33 = vector.load %arg17[%c0_35, %c0_36] : memref<18x384xf32, #tpu.memory_space<vmem>>, vector<16x384xf32>
    %c0_37 = arith.constant 0 : index
    %c0_38 = arith.constant 0 : index
    %c0_39 = arith.constant 0 : index
    %34 = vector.load %arg6[%c0_37, %c0_38, %c0_39] : memref<3x384x128xf32, #tpu.memory_space<vmem>>, vector<1x384x128xf32>
    %35 = vector.shape_cast %34 : vector<1x384x128xf32> to vector<384x128xf32>
    %cst_40 = arith.constant dense<0.000000e+00> : vector<16x128xf32>
    %36 = tpu.matmul %33, %35, %cst_40 {dimension_numbers = #tpu.dot_dimension_numbers<[1], [0], [0], [1], [0, 0, 1, 1], [], []>} : vector<16x384xf32>, vector<384x128xf32>, vector<16x128xf32> -> vector<16x128xf32>
    %37 = arith.addf %32, %36 : vector<16x128xf32>
    %c1_41 = arith.constant 1 : index
    %c0_42 = arith.constant 0 : index
    %38 = vector.load %arg17[%c1_41, %c0_42] : memref<18x384xf32, #tpu.memory_space<vmem>>, vector<16x384xf32>
    %c1_43 = arith.constant 1 : index
    %c0_44 = arith.constant 0 : index
    %c0_45 = arith.constant 0 : index
    %39 = vector.load %arg6[%c1_43, %c0_44, %c0_45] : memref<3x384x128xf32, #tpu.memory_space<vmem>>, vector<1x384x128xf32>
    %40 = vector.shape_cast %39 : vector<1x384x128xf32> to vector<384x128xf32>
    %cst_46 = arith.constant dense<0.000000e+00> : vector<16x128xf32>
    %41 = tpu.matmul %38, %40, %cst_46 {dimension_numbers = #tpu.dot_dimension_numbers<[1], [0], [0], [1], [0, 0, 1, 1], [], []>} : vector<16x384xf32>, vector<384x128xf32>, vector<16x128xf32> -> vector<16x128xf32>
    %42 = arith.addf %37, %41 : vector<16x128xf32>
    %c2_47 = arith.constant 2 : index
    %c0_48 = arith.constant 0 : index
    %43 = vector.load %arg17[%c2_47, %c0_48] : memref<18x384xf32, #tpu.memory_space<vmem>>, vector<16x384xf32>
    %c2_49 = arith.constant 2 : index
    %c0_50 = arith.constant 0 : index
    %c0_51 = arith.constant 0 : index
    %44 = vector.load %arg6[%c2_49, %c0_50, %c0_51] : memref<3x384x128xf32, #tpu.memory_space<vmem>>, vector<1x384x128xf32>
    %45 = vector.shape_cast %44 : vector<1x384x128xf32> to vector<384x128xf32>
    %cst_52 = arith.constant dense<0.000000e+00> : vector<16x128xf32>
    %46 = tpu.matmul %43, %45, %cst_52 {dimension_numbers = #tpu.dot_dimension_numbers<[1], [0], [0], [1], [0, 0, 1, 1], [], []>} : vector<16x384xf32>, vector<384x128xf32>, vector<16x128xf32> -> vector<16x128xf32>
    %47 = arith.addf %42, %46 : vector<16x128xf32>
    %c0_53 = arith.constant 0 : index
    %c0_54 = arith.constant 0 : index
    %48 = vector.load %arg7[%c0_53, %c0_54] : memref<1x128xf32, #tpu.memory_space<vmem>>, vector<1x128xf32>
    %49 = vector.broadcast %48 : vector<1x128xf32> to vector<16x128xf32>
    %50 = arith.addf %47, %49 : vector<16x128xf32>
    %cst_55 = arith.constant 0.000000e+00 : f32
    %51 = vector.broadcast %cst_55 : f32 to vector<16x128xf32>
    %52 = arith.maximumf %50, %51 : vector<16x128xf32>
    %c1_56 = arith.constant 1 : index
    %c0_57 = arith.constant 0 : index
    %53 = vector.load %arg17[%c1_56, %c0_57] : memref<18x384xf32, #tpu.memory_space<vmem>>, vector<16x128xf32>
    tpu.vector_store %arg17[%c1_56, %c0_57], %52 {strides = array<i32>} : memref<18x384xf32, #tpu.memory_space<vmem>>, vector<16x128xf32>,
    %cst_58 = arith.constant 0.000000e+00 : f32
    %54 = vector.broadcast %cst_58 : f32 to vector<16x128xf32>
    %c0_59 = arith.constant 0 : index
    %c0_60 = arith.constant 0 : index
    %55 = vector.load %arg17[%c0_59, %c0_60] : memref<18x384xf32, #tpu.memory_space<vmem>>, vector<16x128xf32>
    %c0_61 = arith.constant 0 : index
    %c0_62 = arith.constant 0 : index
    %c0_63 = arith.constant 0 : index
    %56 = vector.load %arg8[%c0_61, %c0_62, %c0_63] : memref<3x128x128xf32, #tpu.memory_space<vmem>>, vector<1x128x128xf32>
    %57 = vector.shape_cast %56 : vector<1x128x128xf32> to vector<128x128xf32>
    %cst_64 = arith.constant dense<0.000000e+00> : vector<16x128xf32>
    %58 = tpu.matmul %55, %57, %cst_64 {dimension_numbers = #tpu.dot_dimension_numbers<[1], [0], [0], [1], [0, 0, 1, 1], [], []>} : vector<16x128xf32>, vector<128x128xf32>, vector<16x128xf32> -> vector<16x128xf32>
    %59 = arith.addf %54, %58 : vector<16x128xf32>
    %c1_65 = arith.constant 1 : index
    %c0_66 = arith.constant 0 : index
    %60 = vector.load %arg17[%c1_65, %c0_66] : memref<18x384xf32, #tpu.memory_space<vmem>>, vector<16x128xf32>
    %c1_67 = arith.constant 1 : index
    %c0_68 = arith.constant 0 : index
    %c0_69 = arith.constant 0 : index
    %61 = vector.load %arg8[%c1_67, %c0_68, %c0_69] : memref<3x128x128xf32, #tpu.memory_space<vmem>>, vector<1x128x128xf32>
    %62 = vector.shape_cast %61 : vector<1x128x128xf32> to vector<128x128xf32>
    %cst_70 = arith.constant dense<0.000000e+00> : vector<16x128xf32>
    %63 = tpu.matmul %60, %62, %cst_70 {dimension_numbers = #tpu.dot_dimension_numbers<[1], [0], [0], [1], [0, 0, 1, 1], [], []>} : vector<16x128xf32>, vector<128x128xf32>, vector<16x128xf32> -> vector<16x128xf32>
    %64 = arith.addf %59, %63 : vector<16x128xf32>
    %c2_71 = arith.constant 2 : index
    %c0_72 = arith.constant 0 : index
    %65 = vector.load %arg17[%c2_71, %c0_72] : memref<18x384xf32, #tpu.memory_space<vmem>>, vector<16x128xf32>
    %c2_73 = arith.constant 2 : index
    %c0_74 = arith.constant 0 : index
    %c0_75 = arith.constant 0 : index
    %66 = vector.load %arg8[%c2_73, %c0_74, %c0_75] : memref<3x128x128xf32, #tpu.memory_space<vmem>>, vector<1x128x128xf32>
    %67 = vector.shape_cast %66 : vector<1x128x128xf32> to vector<128x128xf32>
    %cst_76 = arith.constant dense<0.000000e+00> : vector<16x128xf32>
    %68 = tpu.matmul %65, %67, %cst_76 {dimension_numbers = #tpu.dot_dimension_numbers<[1], [0], [0], [1], [0, 0, 1, 1], [], []>} : vector<16x128xf32>, vector<128x128xf32>, vector<16x128xf32> -> vector<16x128xf32>
    %69 = arith.addf %64, %68 : vector<16x128xf32>
    %c0_77 = arith.constant 0 : index
    %c0_78 = arith.constant 0 : index
    %70 = vector.load %arg9[%c0_77, %c0_78] : memref<1x128xf32, #tpu.memory_space<vmem>>, vector<1x128xf32>
    %71 = vector.broadcast %70 : vector<1x128xf32> to vector<16x128xf32>
    %72 = arith.addf %69, %71 : vector<16x128xf32>
    %cst_79 = arith.constant 0.000000e+00 : f32
    %73 = vector.broadcast %cst_79 : f32 to vector<16x128xf32>
    %74 = arith.maximumf %72, %73 : vector<16x128xf32>
    %c0_80 = arith.constant 0 : index
    %c0_81 = arith.constant 0 : index
    %c0_82 = arith.constant 0 : index
    %75 = vector.load %arg14[%c0_80, %c0_81, %c0_82] : memref<1x16x128xf32, #tpu.memory_space<vmem>>, vector<1x16x128xf32>
    %76 = vector.shape_cast %75 : vector<1x16x128xf32> to vector<16x128xf32>
    %77 = vector.shape_cast %74 : vector<16x128xf32> to vector<1x16x128xf32>
    tpu.vector_store %arg14[%c0_80, %c0_81, %c0_82], %77 {strides = array<i32>} : memref<1x16x128xf32, #tpu.memory_space<vmem>>, vector<1x16x128xf32>,
    %c1_83 = arith.constant 1 : index
    %c0_84 = arith.constant 0 : index
    %78 = vector.load %arg17[%c1_83, %c0_84] : memref<18x384xf32, #tpu.memory_space<vmem>>, vector<16x128xf32>
    tpu.vector_store %arg17[%c1_83, %c0_84], %74 {strides = array<i32>} : memref<18x384xf32, #tpu.memory_space<vmem>>, vector<16x128xf32>,
    %cst_85 = arith.constant 0.000000e+00 : f32
    %79 = vector.broadcast %cst_85 : f32 to vector<16x128xf32>
    %c0_86 = arith.constant 0 : index
    %c0_87 = arith.constant 0 : index
    %80 = vector.load %arg17[%c0_86, %c0_87] : memref<18x384xf32, #tpu.memory_space<vmem>>, vector<16x128xf32>
    %c0_88 = arith.constant 0 : index
    %c0_89 = arith.constant 0 : index
    %c0_90 = arith.constant 0 : index
    %81 = vector.load %arg10[%c0_88, %c0_89, %c0_90] : memref<3x128x128xf32, #tpu.memory_space<vmem>>, vector<1x128x128xf32>
    %82 = vector.shape_cast %81 : vector<1x128x128xf32> to vector<128x128xf32>
    %cst_91 = arith.constant dense<0.000000e+00> : vector<16x128xf32>
    %83 = tpu.matmul %80, %82, %cst_91 {dimension_numbers = #tpu.dot_dimension_numbers<[1], [0], [0], [1], [0, 0, 1, 1], [], []>} : vector<16x128xf32>, vector<128x128xf32>, vector<16x128xf32> -> vector<16x128xf32>
    %84 = arith.addf %79, %83 : vector<16x128xf32>
    %c1_92 = arith.constant 1 : index
    %c0_93 = arith.constant 0 : index
    %85 = vector.load %arg17[%c1_92, %c0_93] : memref<18x384xf32, #tpu.memory_space<vmem>>, vector<16x128xf32>
    %c1_94 = arith.constant 1 : index
    %c0_95 = arith.constant 0 : index
    %c0_96 = arith.constant 0 : index
    %86 = vector.load %arg10[%c1_94, %c0_95, %c0_96] : memref<3x128x128xf32, #tpu.memory_space<vmem>>, vector<1x128x128xf32>
    %87 = vector.shape_cast %86 : vector<1x128x128xf32> to vector<128x128xf32>
    %cst_97 = arith.constant dense<0.000000e+00> : vector<16x128xf32>
    %88 = tpu.matmul %85, %87, %cst_97 {dimension_numbers = #tpu.dot_dimension_numbers<[1], [0], [0], [1], [0, 0, 1, 1], [], []>} : vector<16x128xf32>, vector<128x128xf32>, vector<16x128xf32> -> vector<16x128xf32>
    %89 = arith.addf %84, %88 : vector<16x128xf32>
    %c2_98 = arith.constant 2 : index
    %c0_99 = arith.constant 0 : index
    %90 = vector.load %arg17[%c2_98, %c0_99] : memref<18x384xf32, #tpu.memory_space<vmem>>, vector<16x128xf32>
    %c2_100 = arith.constant 2 : index
    %c0_101 = arith.constant 0 : index
    %c0_102 = arith.constant 0 : index
    %91 = vector.load %arg10[%c2_100, %c0_101, %c0_102] : memref<3x128x128xf32, #tpu.memory_space<vmem>>, vector<1x128x128xf32>
    %92 = vector.shape_cast %91 : vector<1x128x128xf32> to vector<128x128xf32>
    %cst_103 = arith.constant dense<0.000000e+00> : vector<16x128xf32>
    %93 = tpu.matmul %90, %92, %cst_103 {dimension_numbers = #tpu.dot_dimension_numbers<[1], [0], [0], [1], [0, 0, 1, 1], [], []>} : vector<16x128xf32>, vector<128x128xf32>, vector<16x128xf32> -> vector<16x128xf32>
    %94 = arith.addf %89, %93 : vector<16x128xf32>
    %c0_104 = arith.constant 0 : index
    %c0_105 = arith.constant 0 : index
    %95 = vector.load %arg11[%c0_104, %c0_105] : memref<1x128xf32, #tpu.memory_space<vmem>>, vector<1x128xf32>
    %96 = vector.broadcast %95 : vector<1x128xf32> to vector<16x128xf32>
    %97 = arith.addf %94, %96 : vector<16x128xf32>
    %98 = arith.addf %3, %97 : vector<16x128xf32>
    %cst_106 = arith.constant 0.000000e+00 : f32
    %99 = vector.broadcast %cst_106 : f32 to vector<16x128xf32>
    %100 = arith.maximumf %98, %99 : vector<16x128xf32>
    %c0_107 = arith.constant 0 : index
    %c0_108 = arith.constant 0 : index
    %c0_109 = arith.constant 0 : index
    %101 = vector.load %arg15[%c0_107, %c0_108, %c0_109] : memref<1x16x128xf32, #tpu.memory_space<vmem>>, vector<1x16x128xf32>
    %102 = vector.shape_cast %101 : vector<1x16x128xf32> to vector<16x128xf32>
    %103 = vector.shape_cast %100 : vector<16x128xf32> to vector<1x16x128xf32>
    tpu.vector_store %arg15[%c0_107, %c0_108, %c0_109], %103 {strides = array<i32>} : memref<1x16x128xf32, #tpu.memory_space<vmem>>, vector<1x16x128xf32>,
    %c1_110 = arith.constant 1 : index
    %c0_111 = arith.constant 0 : index
    %104 = vector.load %arg17[%c1_110, %c0_111] : memref<18x384xf32, #tpu.memory_space<vmem>>, vector<16x128xf32>
    tpu.vector_store %arg17[%c1_110, %c0_111], %74 {strides = array<i32>} : memref<18x384xf32, #tpu.memory_space<vmem>>, vector<16x128xf32>,
    %cst_112 = arith.constant 0.000000e+00 : f32
    %105 = vector.broadcast %cst_112 : f32 to vector<16x128xf32>
    %c0_113 = arith.constant 0 : index
    %c0_114 = arith.constant 0 : index
    %106 = vector.load %arg17[%c0_113, %c0_114] : memref<18x384xf32, #tpu.memory_space<vmem>>, vector<16x128xf32>
    %c0_115 = arith.constant 0 : index
    %c0_116 = arith.constant 0 : index
    %c0_117 = arith.constant 0 : index
    %107 = vector.load %arg12[%c0_115, %c0_116, %c0_117] : memref<3x128x128xf32, #tpu.memory_space<vmem>>, vector<1x128x128xf32>
    %108 = vector.shape_cast %107 : vector<1x128x128xf32> to vector<128x128xf32>
    %cst_118 = arith.constant dense<0.000000e+00> : vector<16x128xf32>
    %109 = tpu.matmul %106, %108, %cst_118 {dimension_numbers = #tpu.dot_dimension_numbers<[1], [0], [0], [1], [0, 0, 1, 1], [], []>} : vector<16x128xf32>, vector<128x128xf32>, vector<16x128xf32> -> vector<16x128xf32>
    %110 = arith.addf %105, %109 : vector<16x128xf32>
    %c1_119 = arith.constant 1 : index
    %c0_120 = arith.constant 0 : index
    %111 = vector.load %arg17[%c1_119, %c0_120] : memref<18x384xf32, #tpu.memory_space<vmem>>, vector<16x128xf32>
    %c1_121 = arith.constant 1 : index
    %c0_122 = arith.constant 0 : index
    %c0_123 = arith.constant 0 : index
    %112 = vector.load %arg12[%c1_121, %c0_122, %c0_123] : memref<3x128x128xf32, #tpu.memory_space<vmem>>, vector<1x128x128xf32>
    %113 = vector.shape_cast %112 : vector<1x128x128xf32> to vector<128x128xf32>
    %cst_124 = arith.constant dense<0.000000e+00> : vector<16x128xf32>
    %114 = tpu.matmul %111, %113, %cst_124 {dimension_numbers = #tpu.dot_dimension_numbers<[1], [0], [0], [1], [0, 0, 1, 1], [], []>} : vector<16x128xf32>, vector<128x128xf32>, vector<16x128xf32> -> vector<16x128xf32>
    %115 = arith.addf %110, %114 : vector<16x128xf32>
    %c2_125 = arith.constant 2 : index
    %c0_126 = arith.constant 0 : index
    %116 = vector.load %arg17[%c2_125, %c0_126] : memref<18x384xf32, #tpu.memory_space<vmem>>, vector<16x128xf32>
    %c2_127 = arith.constant 2 : index
    %c0_128 = arith.constant 0 : index
    %c0_129 = arith.constant 0 : index
    %117 = vector.load %arg12[%c2_127, %c0_128, %c0_129] : memref<3x128x128xf32, #tpu.memory_space<vmem>>, vector<1x128x128xf32>
    %118 = vector.shape_cast %117 : vector<1x128x128xf32> to vector<128x128xf32>
    %cst_130 = arith.constant dense<0.000000e+00> : vector<16x128xf32>
    %119 = tpu.matmul %116, %118, %cst_130 {dimension_numbers = #tpu.dot_dimension_numbers<[1], [0], [0], [1], [0, 0, 1, 1], [], []>} : vector<16x128xf32>, vector<128x128xf32>, vector<16x128xf32> -> vector<16x128xf32>
    %120 = arith.addf %115, %119 : vector<16x128xf32>
    %c0_131 = arith.constant 0 : index
    %c0_132 = arith.constant 0 : index
    %121 = vector.load %arg13[%c0_131, %c0_132] : memref<1x128xf32, #tpu.memory_space<vmem>>, vector<1x128xf32>
    %122 = vector.broadcast %121 : vector<1x128xf32> to vector<16x128xf32>
    %123 = arith.addf %120, %122 : vector<16x128xf32>
    %124 = arith.addf %5, %123 : vector<16x128xf32>
    %cst_133 = arith.constant 0.000000e+00 : f32
    %125 = vector.broadcast %cst_133 : f32 to vector<16x128xf32>
    %126 = arith.maximumf %124, %125 : vector<16x128xf32>
    %c0_134 = arith.constant 0 : index
    %c0_135 = arith.constant 0 : index
    %c0_136 = arith.constant 0 : index
    %127 = vector.load %arg16[%c0_134, %c0_135, %c0_136] : memref<1x16x128xf32, #tpu.memory_space<vmem>>, vector<1x16x128xf32>
    %128 = vector.shape_cast %127 : vector<1x16x128xf32> to vector<16x128xf32>
    %129 = vector.shape_cast %126 : vector<16x128xf32> to vector<1x16x128xf32>
    tpu.vector_store %arg16[%c0_134, %c0_135, %c0_136], %129 {strides = array<i32>} : memref<1x16x128xf32, #tpu.memory_space<vmem>>, vector<1x16x128xf32>,
    return
  }
  func.func @transform_0(%arg0: i32) -> (i32, i32, i32) {
    %c0_i32 = arith.constant 0 : i32
    %c0_i32_0 = arith.constant 0 : i32
    %c0_i32_1 = arith.constant 0 : i32
    return %arg0, %c0_i32, %c0_i32_0 : i32, i32, i32
  }
  func.func @transform_1(%arg0: i32) -> (i32, i32, i32) {
    %c0_i32 = arith.constant 0 : i32
    %c0_i32_0 = arith.constant 0 : i32
    %c0_i32_1 = arith.constant 0 : i32
    return %arg0, %c0_i32, %c0_i32_0 : i32, i32, i32
  }
  func.func @transform_2(%arg0: i32) -> (i32, i32, i32) {
    %c0_i32 = arith.constant 0 : i32
    %c0_i32_0 = arith.constant 0 : i32
    %c0_i32_1 = arith.constant 0 : i32
    return %arg0, %c0_i32, %c0_i32_0 : i32, i32, i32
  }
  func.func @transform_3(%arg0: i32) -> (i32, i32, i32) {
    %c0_i32 = arith.constant 0 : i32
    %c0_i32_0 = arith.constant 0 : i32
    %c0_i32_1 = arith.constant 0 : i32
    %c0_i32_2 = arith.constant 0 : i32
    return %c0_i32, %c0_i32_0, %c0_i32_1 : i32, i32, i32
  }
  func.func @transform_4(%arg0: i32) -> (i32, i32) {
    %c0_i32 = arith.constant 0 : i32
    %c0_i32_0 = arith.constant 0 : i32
    %c0_i32_1 = arith.constant 0 : i32
    return %c0_i32, %c0_i32_0 : i32, i32
  }
  func.func @transform_5(%arg0: i32) -> (i32, i32, i32) {
    %c0_i32 = arith.constant 0 : i32
    %c0_i32_0 = arith.constant 0 : i32
    %c0_i32_1 = arith.constant 0 : i32
    %c0_i32_2 = arith.constant 0 : i32
    return %c0_i32, %c0_i32_0, %c0_i32_1 : i32, i32, i32
  }
  func.func @transform_6(%arg0: i32) -> (i32, i32) {
    %c0_i32 = arith.constant 0 : i32
    %c0_i32_0 = arith.constant 0 : i32
    %c0_i32_1 = arith.constant 0 : i32
    return %c0_i32, %c0_i32_0 : i32, i32
  }
  func.func @transform_7(%arg0: i32) -> (i32, i32, i32) {
    %c0_i32 = arith.constant 0 : i32
    %c0_i32_0 = arith.constant 0 : i32
    %c0_i32_1 = arith.constant 0 : i32
    %c0_i32_2 = arith.constant 0 : i32
    return %c0_i32, %c0_i32_0, %c0_i32_1 : i32, i32, i32
  }
  func.func @transform_8(%arg0: i32) -> (i32, i32) {
    %c0_i32 = arith.constant 0 : i32
    %c0_i32_0 = arith.constant 0 : i32
    %c0_i32_1 = arith.constant 0 : i32
    return %c0_i32, %c0_i32_0 : i32, i32
  }
  func.func @transform_9(%arg0: i32) -> (i32, i32, i32) {
    %c0_i32 = arith.constant 0 : i32
    %c0_i32_0 = arith.constant 0 : i32
    %c0_i32_1 = arith.constant 0 : i32
    %c0_i32_2 = arith.constant 0 : i32
    return %c0_i32, %c0_i32_0, %c0_i32_1 : i32, i32, i32
  }
  func.func @transform_10(%arg0: i32) -> (i32, i32) {
    %c0_i32 = arith.constant 0 : i32
    %c0_i32_0 = arith.constant 0 : i32
    %c0_i32_1 = arith.constant 0 : i32
    return %c0_i32, %c0_i32_0 : i32, i32
  }
  func.func @transform_11(%arg0: i32) -> (i32, i32, i32) {
    %c0_i32 = arith.constant 0 : i32
    %c0_i32_0 = arith.constant 0 : i32
    %c0_i32_1 = arith.constant 0 : i32
    %c0_i32_2 = arith.constant 0 : i32
    return %c0_i32, %c0_i32_0, %c0_i32_1 : i32, i32, i32
  }
  func.func @transform_12(%arg0: i32) -> (i32, i32) {
    %c0_i32 = arith.constant 0 : i32
    %c0_i32_0 = arith.constant 0 : i32
    %c0_i32_1 = arith.constant 0 : i32
    return %c0_i32, %c0_i32_0 : i32, i32
  }
  func.func @transform_13(%arg0: i32) -> (i32, i32, i32) {
    %c0_i32 = arith.constant 0 : i32
    %c0_i32_0 = arith.constant 0 : i32
    %c0_i32_1 = arith.constant 0 : i32
    return %arg0, %c0_i32, %c0_i32_0 : i32, i32, i32
  }
  func.func @transform_14(%arg0: i32) -> (i32, i32, i32) {
    %c0_i32 = arith.constant 0 : i32
    %c0_i32_0 = arith.constant 0 : i32
    %c0_i32_1 = arith.constant 0 : i32
    return %arg0, %c0_i32, %c0_i32_0 : i32, i32, i32
  }
  func.func @transform_15(%arg0: i32) -> (i32, i32, i32) {
    %c0_i32 = arith.constant 0 : i32
    %c0_i32_0 = arith.constant 0 : i32
    %c0_i32_1 = arith.constant 0 : i32
    return %arg0, %c0_i32, %c0_i32_0 : i32, i32, i32
  }
}

</mosaic_0001>

<bundles_post_ra>
// kernel: tpu_custom_call.1
= control target key start
LH: loop header
LB: loop body
LE: loop exit
PB: predicated region body
PF: predicated region fallthrough
CT: control target
= control target key end

     0   :  { %s7975_s0 = inlined_call_operand.hbm [shape: f32[2,16,128], index: 0, kind: input, shape index: {}]   ;;  %s7976_s1 = inlined_call_operand.hbm [shape: f32[2,16,128], index: 1, kind: input, shape index: {}]   ;;  %s7977_s2 = inlined_call_operand.hbm [shape: f32[2,16,128], index: 2, kind: input, shape index: {}]   ;;  %s7978_s3 = inlined_call_operand.hbm [shape: f32[3,384,384], index: 3, kind: input, shape index: {}]   ;;  %s7979_s4 = inlined_call_operand.hbm [shape: f32[1,384], index: 4, kind: input, shape index: {}]   ;;  %s7980_s5 = inlined_call_operand.hbm [shape: f32[3,384,128], index: 5, kind: input, shape index: {}]   ;;  %s7981_s6 = inlined_call_operand.hbm [shape: f32[1,128], index: 6, kind: input, shape index: {}]   ;;  %s7982_s7 = inlined_call_operand.hbm [shape: f32[3,128,128], index: 7, kind: input, shape index: {}]   ;;  %s7983_s8 = inlined_call_operand.hbm [shape: f32[1,128], index: 8, kind: input, shape index: {}]   ;;  %s7984_s9 = inlined_call_operand.hbm [shape: f32[3,128,128], index: 9, kind: input, shape index: {}]   ;;  %s7985_s10 = inlined_call_operand.hbm [shape: f32[1,128], index: 10, kind: input, shape index: {}]   ;;  %s7986_s11 = inlined_call_operand.hbm [shape: f32[3,128,128], index: 11, kind: input, shape index: {}]   ;;  %s7987_s12 = inlined_call_operand.hbm [shape: f32[1,128], index: 12, kind: input, shape index: {}]   ;;  %s7988_s13 = inlined_call_operand.hbm [shape: f32[2,16,128], index: 13, kind: output, shape index: {0}]   ;;  %s7989_s14 = inlined_call_operand.hbm [shape: f32[2,16,128], index: 14, kind: output, shape index: {1}]   ;;  %s7990_s15 = inlined_call_operand.hbm [shape: f32[2,16,128], index: 15, kind: output, shape index: {2}]  }
   0x1   :  { %8022 = sst [smem:[#allocation43_spill]] %s7975_s0 }
   0x2   :  { %8023 = sst [smem:[#allocation44_spill]] %s7976_s1 }
   0x3   :  { %8024 = sst [smem:[#allocation45_spill]] %s7977_s2 }
   0x4   :  { %8025 = sst [smem:[#allocation46_spill]] %s7978_s3 }
   0x5   :  { %8026 = sst [smem:[#allocation47_spill]] %s7980_s5 }
   0x6   :  { %8027 = sst [smem:[#allocation48_spill]] %s7982_s7 }
   0x7   :  { %8028 = sst [smem:[#allocation49_spill]] %s7984_s9 }
   0x8   :  { %8029 = sst [smem:[#allocation50_spill]] %s7986_s11 }
   0x9   :  { %8030 = sst [smem:[#allocation51_spill]] %s7987_s12 }
   0xa   :  { %8031 = sst [smem:[#allocation52_spill]] %s7988_s13 }
   0xb   :  { %8032 = sst [smem:[#allocation53_spill]] %s7989_s14 }
   0xc   :  { %8033 = sst [smem:[#allocation54_spill]] %s7990_s15 }
   0xd   :  { %21 = vsyncpa [#allocation4], 0 }
   0xe   :  { %23 = vsyncpa [#allocation4 + $0x1], 0 }
   0xf   :  { %24 = vsyncpa [#allocation7], 0 }
  0x10   :  { %26 = vsyncpa [#allocation7 + $0x1], 0 }
  0x11   :  { %27 = vsyncpa [#allocation10], 0 }
  0x12   :  { %28 = vsyncpa [#allocation13], 0 }
  0x13   :  { %29 = vsyncpa [#allocation16], 0 }
  0x14   :  { %30 = vsyncpa [#allocation19], 0 }
  0x15   :  { %31 = vsyncpa [#allocation22], 0 }
  0x16   :  { %32 = vsyncpa [#allocation5], 0 }
  0x17   :  { %34 = vsyncpa [#allocation5 + $0x1], 0 }
  0x18   :  { %35 = vsyncpa [#allocation26], 0 }
  0x19   :  { %37 = vsyncpa [#allocation26 + $0x1], 0  ;;  %s7167_s18 = smov 0   ;;  %s7169_s19 = smov 0  }
  0x1a   :  { %s7171_s20 = smov 0   ;;  %s7173_s21 = smov 0  }
  0x1b LB: > { %8034 = sst [smem:[#allocation37_spill]] %s7050_s18  ;;  %s7064_s22 = smov [#allocation9]   ;;  %s7062_s21 = sphi %s7173_s21, %s8088_s21   ;;  %s7058_s20 = sphi %s7171_s20, %s8092_s20   ;;  %s7054_s19 = sphi %s7169_s19, %s8091_s19   ;;  %s7050_s18 = sphi %s7167_s18, %s8090_s18  }
  0x1c   : > { %8035 = sst [smem:[#allocation38_spill]] %s7062_s21  ;;  %s426_s23 = sshll.u32 %s7064_s22, 4  ;;  %s7193_s23 = int_to_ptr.vmem [resolvable:$true] %s426_s23 }
  0x1d   : > { %s7188_s24 = sadd.s32 4294967295, %s7062_s21   ;;  %p4270_p0 = scmp.ge.s32.totalorder %s7062_s21, 1 }
  0x1e   : > { %p7998_p1 = scmp.eq.s32.totalorder %s7188_s24, 0  ;;  %p414_p2 = scmp.lt.s32.totalorder %s7062_s21, 3 }
  0x1f   : > { %s7065_s26 = smov [#allocation12]   ;;  %s7066_s29 = smov [#allocation15]  }
  0x20   : > { %p7195_p3 = pnand %p4270_p0, %p414_p2  ;;  %s450_s27 = sshll.u32 %s7065_s26, 4  ;;  %s7208_s27 = int_to_ptr.vmem [resolvable:$true] %s450_s27 }
  0x21   : > { %s7210_s30 = sshll.u32 %s7066_s29, 4  ;;  %s8039_s3 = sld [smem:[#allocation46_spill]]  ;;  %s475_s30 = int_to_ptr.vmem [resolvable:$true] %s7210_s30 }
  0x22   : > { %s8036_s25 = scalar_select %p7195_p3, 1, 0 }
  0x23   : > { %p6416_p5 = pneg %p7195_p3 }
  0x24   : > { %8037 = sst [smem:[#allocation39_spill]] %s8036_s25 }
  0x25   : > { %p7204_p6 = pnand %p6416_p5, %p7998_p1 }
  0x27   : > { %s8038_s28 = scalar_select %p7204_p6, 1, 0 }
  0x28   : > { %s6542_s22 = scalar_lea.hbm %s8039_s3, 55296  ;;  %p7220_p8 = pneg %p7204_p6 }
  0x29   : > { %p6543_p7 = scmp.ne.s32.totalorder %s8039_s3, %s6542_s22  ;;  %p6549_p11 = scmp.lt.u32.totalorder %s6542_s22, %s8039_s3 }
  0x2a   : > { %s8040_s26 = scalar_select %p7220_p8, 1, 0 }
  0x2b   : > { %p6545_p9 = pnand %p7220_p8, %p6543_p7 }
  0x2d   : > { %p6546_p10 = pneg %p6545_p9 }
  0x2f   : > { %p6551_p12 = pnand %p6549_p11, %p6546_p10 }
  0x31   : > { %6554 = shalt.err (!%p6551_p12)
}
  0x32   : > { %s6555_s14 = scalar_lea.vmem %s7193_s23, 55296  ;;  %p6563_p5 = scmp.lt.s32.totalorder %s7193_s23, %s7193_s23 }
  0x33   : > { %p6556_p13 = scmp.ne.s32.totalorder %s7193_s23, %s6555_s14  ;;  %p6564_p4 = scmp.lt.s32.totalorder %s6555_s14, %s6555_s14 }
  0x35   : > { %p6558_p0 = pnand %p6556_p13, %p7220_p8  ;;  %p6565_p7 = por %p6564_p4, %p6563_p5 }
  0x37   : > { %p6559_p2 = pneg %p6558_p0 }
  0x39   : > { %p6566_p9 = pnand %p6565_p7, %p6559_p2 }
  0x3b   : > { %6569 = shalt.err (!%p6566_p9)
}
  0x3c   : > { %s7067_s15 = smov 384   ;;  %s7068_s13 = smov 24  }
  0x3d   : > { %6419 = dma.hbm_to_vmem [thread:$0]  (!%p7204_p6), %s8039_s3, 55296, %s7193_s23, [#allocation10], %s7067_s15, %s7067_s15, %s7068_s13  }
  0x3e   : > { %s8041_s5 = sld [smem:[#allocation47_spill]] }
  0x44   : > { %s6570_s25 = scalar_lea.hbm %s8041_s5, 18432 }
  0x45   : > { %p6571_p4 = scmp.ne.s32.totalorder %s8041_s5, %s6570_s25  ;;  %p6577_p12 = scmp.lt.u32.totalorder %s6570_s25, %s8041_s5 }
  0x47   : > { %p6573_p10 = pnand %p6571_p4, %p7220_p8 }
  0x49   : > { %p6574_p11 = pneg %p6573_p10 }
  0x4b   : > { %p6579_p13 = pnand %p6577_p12, %p6574_p11 }
  0x4d   : > { %6582 = shalt.err (!%p6579_p13)
}
  0x4e   : > { %s6583_s23 = scalar_lea.vmem %s7208_s27, 18432  ;;  %p6591_p7 = scmp.lt.s32.totalorder %s7208_s27, %s7208_s27 }
  0x4f   : > { %p6584_p0 = scmp.ne.s32.totalorder %s7208_s27, %s6583_s23  ;;  %p6592_p9 = scmp.lt.s32.totalorder %s6583_s23, %s6583_s23 }
  0x51   : > { %p6586_p2 = pnand %p6584_p0, %p7220_p8  ;;  %p6593_p4 = por %p6592_p9, %p6591_p7 }
  0x53   : > { %p6587_p5 = pneg %p6586_p2 }
  0x55   : > { %p6594_p10 = pnand %p6593_p4, %p6587_p5 }
  0x57   : > { %6597 = shalt.err (!%p6594_p10)
}
  0x58   : > { %s8002_s0 = smov 128   ;;  %s8004_s2 = smov 8  }
  0x59   : > { %6425 = dma.hbm_to_vmem [thread:$0]  (!%p7204_p6), %s8041_s5, 18432, %s7208_s27, [#allocation13], %s8002_s0, %s8002_s0, %s8004_s2  }
  0x5a   : > { %s8042_s7 = sld [smem:[#allocation48_spill]] }
  0x60   : > { %s6598_s16 = scalar_lea.hbm %s8042_s7, 6144 }
  0x61   : > { %p6599_p11 = scmp.ne.s32.totalorder %s8042_s7, %s6598_s16  ;;  %p6605_p0 = scmp.lt.u32.totalorder %s6598_s16, %s8042_s7 }
  0x63   : > { %p6601_p12 = pnand %p6599_p11, %p7220_p8 }
  0x65   : > { %p6602_p13 = pneg %p6601_p12 }
  0x67   : > { %p6607_p2 = pnand %p6605_p0, %p6602_p13 }
  0x69   : > { %6610 = shalt.err (!%p6607_p2)
}
  0x6a   : > { %s6611_s23 = scalar_lea.vmem %s475_s30, 6144  ;;  %p6619_p4 = scmp.lt.s32.totalorder %s475_s30, %s475_s30 }
  0x6b   : > { %p6612_p5 = scmp.ne.s32.totalorder %s475_s30, %s6611_s23  ;;  %p6620_p10 = scmp.lt.s32.totalorder %s6611_s23, %s6611_s23 }
  0x6d   : > { %p6614_p7 = pnand %p6612_p5, %p7220_p8  ;;  %p6621_p1 = por %p6620_p10, %p6619_p4 }
  0x6f   : > { %p6615_p9 = pneg %p6614_p7 }
  0x71   : > { %p6622_p3 = pnand %p6621_p1, %p6615_p9 }
  0x73   : > { %6625 = shalt.err (!%p6622_p3)
}
  0x74   : > { %6431 = dma.hbm_to_vmem [thread:$0]  (!%p7204_p6), %s8042_s7, 6144, %s475_s30, [#allocation16], %s8002_s0, %s8002_s0, %s8004_s2  }
  0x75   : > { %s7071_s25 = smov [#allocation18]   ;;  %s7072_s13 = smov [#allocation21]  }
  0x76   : > { %s498_s15 = sshll.u32 %s7071_s25, 4  ;;  %s522_s16 = sshll.u32 %s7072_s13, 4  ;;  %s499_s15 = int_to_ptr.vmem [resolvable:$true] %s498_s15  ;;  %s523_s16 = int_to_ptr.vmem [resolvable:$true] %s522_s16 }
  0x77   : > { %s8043_s9 = sld [smem:[#allocation49_spill]] }
  0x7d   : > { %s6626_s29 = scalar_lea.hbm %s8043_s9, 6144 }
  0x7e   : > { %p6627_p1 = scmp.ne.s32.totalorder %s8043_s9, %s6626_s29  ;;  %p6633_p12 = scmp.lt.u32.totalorder %s6626_s29, %s8043_s9 }
  0x80   : > { %p6629_p3 = pnand %p6627_p1, %p7220_p8 }
  0x82   : > { %p6630_p11 = pneg %p6629_p3 }
  0x84   : > { %p6635_p13 = pnand %p6633_p12, %p6630_p11 }
  0x86   : > { %6638 = shalt.err (!%p6635_p13)
}
  0x87   : > { %s6639_s30 = scalar_lea.vmem %s499_s15, 6144  ;;  %p6647_p7 = scmp.lt.s32.totalorder %s499_s15, %s499_s15 }
  0x88   : > { %p6640_p0 = scmp.ne.s32.totalorder %s499_s15, %s6639_s30  ;;  %p6648_p9 = scmp.lt.s32.totalorder %s6639_s30, %s6639_s30 }
  0x8a   : > { %p6642_p2 = pnand %p6640_p0, %p7220_p8  ;;  %p6649_p4 = por %p6648_p9, %p6647_p7 }
  0x8c   : > { %p6643_p5 = pneg %p6642_p2 }
  0x8e   : > { %p6650_p10 = pnand %p6649_p4, %p6643_p5 }
  0x90   : > { %6653 = shalt.err (!%p6650_p10)
}
  0x91   : > { %6437 = dma.hbm_to_vmem [thread:$0]  (!%p7204_p6), %s8043_s9, 6144, %s499_s15, [#allocation19], %s8002_s0, %s8002_s0, %s8004_s2  }
  0x92   : > { %s8044_s11 = sld [smem:[#allocation50_spill]] }
  0x98   : > { %s6654_s17 = scalar_lea.hbm %s8044_s11, 6144 }
  0x99   : > { %p6655_p1 = scmp.ne.s32.totalorder %s8044_s11, %s6654_s17  ;;  %p6661_p12 = scmp.lt.u32.totalorder %s6654_s17, %s8044_s11 }
  0x9b   : > { %p6657_p3 = pnand %p6655_p1, %p7220_p8 }
  0x9d   : > { %p6658_p11 = pneg %p6657_p3 }
  0x9f   : > { %p6663_p13 = pnand %p6661_p12, %p6658_p11 }
  0xa1   : > { %6666 = shalt.err (!%p6663_p13)
}
  0xa2   : > { %s6667_s27 = scalar_lea.vmem %s523_s16, 6144  ;;  %p6675_p7 = scmp.lt.s32.totalorder %s523_s16, %s523_s16 }
  0xa3   : > { %p6668_p0 = scmp.ne.s32.totalorder %s523_s16, %s6667_s27  ;;  %p6676_p9 = scmp.lt.s32.totalorder %s6667_s27, %s6667_s27 }
  0xa5   : > { %p6670_p2 = pnand %p6668_p0, %p7220_p8  ;;  %p6677_p4 = por %p6676_p9, %p6675_p7 }
  0xa7   : > { %p6671_p5 = pneg %p6670_p2 }
  0xa9   : > { %p6678_p10 = pnand %p6677_p4, %p6671_p5 }
  0xab   : > { %6681 = shalt.err (!%p6678_p10)
}
  0xac   : > { %6443 = dma.hbm_to_vmem [thread:$0]  (!%p7204_p6), %s8044_s11, 6144, %s523_s16, [#allocation22], %s8002_s0, %s8002_s0, %s8004_s2  }
  0xad   : > { %s8000_s3 = sadd.s32 4294967294, %s7062_s21   ;;  %s7333_s12 = sadd.s32 1, %s7062_s21  }
  0xae   : > { %8045 = sst [smem:[#allocation40_spill]] %s7333_s12  ;;  %s50_s25 = sadd.s32 1, %s7058_s20 }
  0xaf   : > { %s47_s13 = ssub.s32 %s7062_s21, %s7333_s12  ;;  %p57_p1 = scmp.ne.s32.totalorder %s7058_s20, %s7054_s19 }
  0xb0   : > { %p48_p3 = scmp.eq.s32.totalorder %s47_s13, 0  ;;  %p58_p11 = scmp.eq.s32.totalorder %s7062_s21, 0 }
  0xb1   : > { %p63_p12 = scmp.ne.s32.totalorder %s7054_s19, %s7050_s18  ;;  %p349_p13 = scmp.eq.s32.totalorder %s7188_s24, 1 }
  0xb2   : > { %s7345_s17 = scalar_select %p48_p3, %s7058_s20, %s50_s25  }
  0xb3   : > { %p59_p0 = por %p58_p11, %p57_p1  ;;  %p8047_p2 = scmp.eq.s32.totalorder %s7188_s24, 0 }
  0xb4   : > { %8046 = sst [smem:[#allocation41_spill]] %s7345_s17  ;;  %p7353_p7 = por %p349_p13, %p57_p1 }
  0xb5   : > { %p7349_p5 = por %p8047_p2, %p63_p12  ;;  %p355_p9 = scmp.eq.s32.totalorder %s8000_s3, 1 }
  0xb6   : > { %s8049_s22 = scalar_select %p7353_p7, 1, 0 }
  0xb7   : > { %s8048_s16 = scalar_select %p7349_p5, 1, 0 }
  0xb8   : > { %p6477_p4 = scmp.lt.s32.totalorder %s7062_s21, 2  ;;  %s8001_s29 = sand.u32 1, %s7058_s20  }
  0xb9   : > { %p7361_p10 = por %p355_p9, %p63_p12  ;;  %s7367_s23 = sshll.u32 %s8001_s29, 4 }
  0xba   : > { %s7370_s27 = sshll.u32 %s7062_s21, 8  ;;  %p7372_p3 = pnand %p6477_p4, %p59_p0 }
  0xbb   : > { %s8050_s14 = scalar_select %p7361_p10, 1, 0 }
  0xbc   : > { %s8052_s15 = scalar_select %p7372_p3, 1, 0 }
  0xbd   : > { %8051 = sst [smem:[#allocation42_spill]] %s8050_s14  ;;  %s568_s30 = sand.u32 1, %s7062_s21  }
  0xbe   : > { %s8053_s1 = sld [smem:[#allocation44_spill]]  ;;  %s572_s29 = scalar_lea.vmem [#allocation6], %s7367_s23 }
  0xbf   : > { %s579_s0 = sshll.u32 %s572_s29, 4  ;;  %s7386_s2 = scalar_lea.sflag [#allocation7], %s568_s30  ;;  %s7384_s0 = int_to_ptr.vmem [resolvable:$true] %s579_s0 }
  0xc0   : > { %p7392_p11 = pneg %p7372_p3 }
  0xc2   : > { %s8054_s7 = scalar_select %p7392_p11, 1, 0 }
  0xc4   : > { %s7381_s3 = scalar_lea.hbm %s8053_s1, %s7370_s27  ;;  %s6687_s9 = scalar_lea.hbm %s8053_s1, 512 }
  0xc5   : > { %s6682_s5 = scalar_lea.hbm %s7381_s3, 256  ;;  %p6688_p0 = scmp.lt.u32.totalorder %s7381_s3, %s8053_s1 }
  0xc6   : > { %p6683_p1 = scmp.ne.s32.totalorder %s7381_s3, %s6682_s5  ;;  %p6689_p2 = scmp.lt.u32.totalorder %s6687_s9, %s6682_s5 }
  0xc7   : > { %p6691_p4 = scmp.lt.u32.totalorder %s6682_s5, %s7381_s3 }
  0xc8   : > { %p6685_p12 = pnand %p7392_p11, %p6683_p1  ;;  %p6690_p9 = por %p6689_p2, %p6688_p0 }
  0xca   : > { %p6686_p13 = pneg %p6685_p12  ;;  %p6692_p10 = por %p6691_p4, %p6690_p9 }
  0xcc   : > { %p6693_p7 = pnand %p6692_p10, %p6686_p13 }
  0xce   : > { %6696 = shalt.err (!%p6693_p7)
}
  0xcf   : > { %s6697_s30 = scalar_lea.vmem %s7384_s0, 256  ;;  %s7073_s25 = smov [#allocation6]  }
  0xd0   : > { %p6698_p1 = scmp.ne.s32.totalorder %s7384_s0, %s6697_s30  ;;  %s6702_s13 = sshll.u32 %s7073_s25, 4  ;;  %s6703_s13 = int_to_ptr.vmem [resolvable:$false] %s6702_s13 }
  0xd1   : > { %s6704_s11 = scalar_lea.vmem %s6703_s13, 512  ;;  %p6705_p6 = scmp.lt.s32.totalorder %s7384_s0, %s6703_s13 }
  0xd2   : > { %p6700_p12 = pnand %p6698_p1, %p7392_p11  ;;  %p6706_p8 = scmp.lt.s32.totalorder %s6704_s11, %s6697_s30 }
  0xd4   : > { %p6701_p5 = pneg %p6700_p12  ;;  %p6707_p0 = por %p6706_p8, %p6705_p6 }
  0xd6   : > { %p6708_p2 = pnand %p6707_p0, %p6701_p5 }
  0xd8   : > { %6711 = shalt.err (!%p6708_p2)
}
  0xd9   : > { %s8055_s5 = smov 8   ;;  %s8056_s9 = smov 128  }
  0xda   : > { %6453 = dma.hbm_to_vmem [thread:$0]  (!%p7372_p3), %s7381_s3, 256, %s7384_s0, %s7386_s2, %s8056_s9, %s8056_s9, %s8055_s5  }
  0xdb   : > { %s7074_s29 = smov [#allocation11]   ;;  %s7075_s25 = smov [#allocation14]  }
  0xdc   : > { %s440_s1 = sshll.u32 %s7074_s29, 4  ;;  %s464_s17 = sshll.u32 %s7075_s25, 4  ;;  %s441_s1 = int_to_ptr.vmem [resolvable:$true] %s440_s1  ;;  %s465_s17 = int_to_ptr.vmem [resolvable:$true] %s464_s17 }
  0xdd   : > { %s6712_s11 = scalar_lea.hbm %s7979_s4, 48  ;;  %p8057_p8 = scmp.ne.s32.totalorder %s8040_s26, 0 }
  0xde   : > { %p6713_p6 = scmp.ne.s32.totalorder %s7979_s4, %s6712_s11  ;;  %p6719_p10 = scmp.lt.u32.totalorder %s6712_s11, %s7979_s4 }
  0xe0   : > { %p6715_p5 = pnand %p6713_p6, %p8057_p8 }
  0xe2   : > { %p6716_p7 = pneg %p6715_p5 }
  0xe4   : > { %p6721_p13 = pnand %p6719_p10, %p6716_p7 }
  0xe6   : > { %6724 = shalt.err (!%p6721_p13)
}
  0xe7   : > { %s6725_s0 = scalar_lea.vmem %s441_s1, 48  ;;  %s6732_s3 = scalar_lea.vmem %s441_s1, 64 }
  0xe8   : > { %p6726_p9 = scmp.ne.s32.totalorder %s441_s1, %s6725_s0  ;;  %p6733_p12 = scmp.lt.s32.totalorder %s441_s1, %s441_s1 }
  0xe9   : > { %p6734_p0 = scmp.lt.s32.totalorder %s6732_s3, %s6725_s0 }
  0xea   : > { %p6728_p4 = pnand %p6726_p9, %p8057_p8 }
  0xeb   : > { %p6735_p2 = por %p6734_p0, %p6733_p12 }
  0xec   : > { %p6729_p1 = pneg %p6728_p4 }
  0xee   : > { %p6736_p3 = pnand %p6735_p2, %p6729_p1 }
  0xf0   : > { %6739 = shalt.err (!%p6736_p3)
}
  0xf1   : > { %p8058_p6 = scmp.ne.s32.totalorder %s8038_s28, 0  ;;  %s6740_s29 = scalar_lea.hbm %s7981_s6, 16 }
  0xf2   : > { %p6741_p5 = scmp.ne.s32.totalorder %s7981_s6, %s6740_s29  ;;  %p6747_p3 = scmp.lt.u32.totalorder %s6740_s29, %s7981_s6 }
  0xf3   : > { %6422 = dma.hbm_to_vmem [thread:$0]  (!%p8058_p6), %s7979_s4, 48, %s441_s1, [#allocation10]  }
  0xf4   : > { %p6743_p7 = pnand %p6741_p5, %p8057_p8 }
  0xf6   : > { %p6744_p10 = pneg %p6743_p7 }
  0xf8   : > { %p6749_p13 = pnand %p6747_p3, %p6744_p10 }
  0xfa   : > { %6752 = shalt.err (!%p6749_p13)
}
  0xfb   : > { %s6753_s0 = scalar_lea.vmem %s465_s17, 16  ;;  %s6760_s1 = scalar_lea.vmem %s465_s17, 32 }
  0xfc   : > { %p6754_p9 = scmp.ne.s32.totalorder %s465_s17, %s6753_s0  ;;  %p6761_p12 = scmp.lt.s32.totalorder %s465_s17, %s465_s17 }
  0xfd   : > { %p6762_p0 = scmp.lt.s32.totalorder %s6760_s1, %s6753_s0 }
  0xfe   : > { %p6756_p4 = pnand %p6754_p9, %p8057_p8 }
  0xff   : > { %p6763_p2 = por %p6762_p0, %p6761_p12 }
 0x100   : > { %p6757_p1 = pneg %p6756_p4 }
 0x102   : > { %p6764_p11 = pnand %p6763_p2, %p6757_p1 }
 0x104   : > { %6767 = shalt.err (!%p6764_p11)
}
 0x105   : > { %6428 = dma.hbm_to_vmem [thread:$0]  (!%p8058_p6), %s7981_s6, 16, %s465_s17, [#allocation13]  }
 0x106   : > { %s7076_s12 = smov [#allocation17]   ;;  %s7077_s14 = smov [#allocation20]  }
 0x107   : > { %s488_s18 = sshll.u32 %s7076_s12, 4  ;;  %s512_s29 = sshll.u32 %s7077_s14, 4  ;;  %s489_s18 = int_to_ptr.vmem [resolvable:$true] %s488_s18  ;;  %s513_s29 = int_to_ptr.vmem [resolvable:$true] %s512_s29 }
 0x108   : > { %s6768_s30 = scalar_lea.hbm %s7983_s8, 16 }
 0x109   : > { %p6769_p11 = scmp.ne.s32.totalorder %s7983_s8, %s6768_s30  ;;  %p6775_p10 = scmp.lt.u32.totalorder %s6768_s30, %s7983_s8 }
 0x10b   : > { %p6771_p5 = pnand %p6769_p11, %p8057_p8 }
 0x10d   : > { %p6772_p7 = pneg %p6771_p5 }
 0x10f   : > { %p6777_p3 = pnand %p6775_p10, %p6772_p7 }
 0x111   : > { %6780 = shalt.err (!%p6777_p3)
}
 0x112   : > { %s6781_s17 = scalar_lea.vmem %s489_s18, 16  ;;  %s6788_s21 = scalar_lea.vmem %s489_s18, 32 }
 0x113   : > { %p6782_p13 = scmp.ne.s32.totalorder %s489_s18, %s6781_s17  ;;  %p6789_p1 = scmp.lt.s32.totalorder %s489_s18, %s489_s18 }
 0x114   : > { %p6790_p12 = scmp.lt.s32.totalorder %s6788_s21, %s6781_s17 }
 0x115   : > { %p6784_p9 = pnand %p6782_p13, %p8057_p8 }
 0x116   : > { %p6791_p0 = por %p6790_p12, %p6789_p1 }
 0x117   : > { %p6785_p4 = pneg %p6784_p9 }
 0x119   : > { %p6792_p2 = pnand %p6791_p0, %p6785_p4 }
 0x11b   : > { %6795 = shalt.err (!%p6792_p2)
}
 0x11c   : > { %6434 = dma.hbm_to_vmem [thread:$0]  (!%p8058_p6), %s7983_s8, 16, %s489_s18, [#allocation16]  }
 0x11d   : > { %s6796_s30 = scalar_lea.hbm %s7985_s10, 16 }
 0x11e   : > { %p6797_p11 = scmp.ne.s32.totalorder %s7985_s10, %s6796_s30  ;;  %p6803_p10 = scmp.lt.u32.totalorder %s6796_s30, %s7985_s10 }
 0x120   : > { %p6799_p5 = pnand %p6797_p11, %p8057_p8 }
 0x122   : > { %p6800_p7 = pneg %p6799_p5 }
 0x124   : > { %p6805_p3 = pnand %p6803_p10, %p6800_p7 }
 0x126   : > { %6808 = shalt.err (!%p6805_p3)
}
 0x127   : > { %s6809_s17 = scalar_lea.vmem %s513_s29, 16  ;;  %s6816_s18 = scalar_lea.vmem %s513_s29, 32 }
 0x128   : > { %p6810_p13 = scmp.ne.s32.totalorder %s513_s29, %s6809_s17  ;;  %p6817_p1 = scmp.lt.s32.totalorder %s513_s29, %s513_s29 }
 0x129   : > { %p6818_p12 = scmp.lt.s32.totalorder %s6816_s18, %s6809_s17 }
 0x12a   : > { %p6812_p9 = pnand %p6810_p13, %p8057_p8 }
 0x12b   : > { %p6819_p0 = por %p6818_p12, %p6817_p1 }
 0x12c   : > { %p6813_p4 = pneg %p6812_p9 }
 0x12e   : > { %p6820_p2 = pnand %p6819_p0, %p6813_p4 }
 0x130   : > { %6823 = shalt.err (!%p6820_p2)
}
 0x131   : > { %6440 = dma.hbm_to_vmem [thread:$0]  (!%p8058_p6), %s7985_s10, 16, %s513_s29, [#allocation19]  }
 0x132   : > { %s7078_s14 = smov [#allocation23]   ;;  %s8059_s11 = sld [smem:[#allocation51_spill]] }
 0x133   : > { %s536_s25 = sshll.u32 %s7078_s14, 4  ;;  %s537_s25 = int_to_ptr.vmem [resolvable:$true] %s536_s25 }
 0x138   : > { %s6824_s0 = scalar_lea.hbm %s8059_s11, 16 }
 0x139   : > { %p6825_p11 = scmp.ne.s32.totalorder %s8059_s11, %s6824_s0  ;;  %p6831_p10 = scmp.lt.u32.totalorder %s6824_s0, %s8059_s11 }
 0x13b   : > { %p6827_p5 = pnand %p6825_p11, %p8057_p8 }
 0x13d   : > { %p6828_p7 = pneg %p6827_p5 }
 0x13f   : > { %p6833_p3 = pnand %p6831_p10, %p6828_p7 }
 0x141   : > { %6836 = shalt.err (!%p6833_p3)
}
 0x142   : > { %s6837_s29 = scalar_lea.vmem %s537_s25, 16  ;;  %s6844_s21 = scalar_lea.vmem %s537_s25, 32 }
 0x143   : > { %p6838_p13 = scmp.ne.s32.totalorder %s537_s25, %s6837_s29  ;;  %p6845_p1 = scmp.lt.s32.totalorder %s537_s25, %s537_s25 }
 0x144   : > { %p6846_p12 = scmp.lt.s32.totalorder %s6844_s21, %s6837_s29 }
 0x145   : > { %p6840_p9 = pnand %p6838_p13, %p8057_p8 }
 0x146   : > { %p6847_p0 = por %p6846_p12, %p6845_p1 }
 0x147   : > { %p6841_p4 = pneg %p6840_p9 }
 0x149   : > { %p6848_p2 = pnand %p6847_p0, %p6841_p4 }
 0x14b   : > { %6851 = shalt.err (!%p6848_p2)
}
 0x14c   : > { %6446 = dma.hbm_to_vmem [thread:$0]  (!%p8058_p6), %s8059_s11, 16, %s537_s25, [#allocation22]  }
 0x14d   : > { %s8060_s30 = sld [smem:[#allocation43_spill]]  ;;  %s551_s1 = scalar_lea.vmem [#allocation3], %s7367_s23 }
 0x14e   : > { %s558_s3 = sshll.u32 %s551_s1, 4  ;;  %s8061_s28 = sand.u32 1, %s7058_s20   ;;  %s7516_s3 = int_to_ptr.vmem [resolvable:$true] %s558_s3 }
 0x14f   : > { %s7520_s17 = scalar_lea.sflag [#allocation4], %s8061_s28  ;;  %p8062_p11 = scmp.ne.s32.totalorder %s8054_s7, 0 }
 0x153   : > { %s7513_s0 = scalar_lea.hbm %s8060_s30, %s7370_s27  ;;  %s6857_s21 = scalar_lea.hbm %s8060_s30, 512 }
 0x154   : > { %s6852_s18 = scalar_lea.hbm %s7513_s0, 256  ;;  %p6858_p7 = scmp.lt.u32.totalorder %s7513_s0, %s8060_s30 }
 0x155   : > { %p6853_p8 = scmp.ne.s32.totalorder %s7513_s0, %s6852_s18  ;;  %p6859_p10 = scmp.lt.u32.totalorder %s6857_s21, %s6852_s18 }
 0x156   : > { %p6861_p13 = scmp.lt.u32.totalorder %s6852_s18, %s7513_s0 }
 0x157   : > { %p6855_p6 = pnand %p6853_p8, %p8062_p11  ;;  %p6860_p3 = por %p6859_p10, %p6858_p7 }
 0x159   : > { %p6856_p5 = pneg %p6855_p6  ;;  %p6862_p9 = por %p6861_p13, %p6860_p3 }
 0x15b   : > { %p6863_p4 = pnand %p6862_p9, %p6856_p5 }
 0x15d   : > { %6866 = shalt.err (!%p6863_p4)
}
 0x15e   : > { %s6867_s13 = scalar_lea.vmem %s7516_s3, 256  ;;  %s7079_s26 = smov [#allocation3]  }
 0x15f   : > { %p6868_p1 = scmp.ne.s32.totalorder %s7516_s3, %s6867_s13  ;;  %s6872_s1 = sshll.u32 %s7079_s26, 4  ;;  %s6873_s1 = int_to_ptr.vmem [resolvable:$false] %s6872_s1 }
 0x160   : > { %s6874_s28 = scalar_lea.vmem %s6873_s1, 512  ;;  %p6875_p2 = scmp.lt.s32.totalorder %s7516_s3, %s6873_s1 }
 0x161   : > { %p6870_p12 = pnand %p6868_p1, %p8062_p11  ;;  %p6876_p8 = scmp.lt.s32.totalorder %s6874_s28, %s6867_s13 }
 0x163   : > { %p6871_p0 = pneg %p6870_p12  ;;  %p6877_p6 = por %p6876_p8, %p6875_p2 }
 0x165   : > { %p6878_p7 = pnand %p6877_p6, %p6871_p0 }
 0x167   : > { %6881 = shalt.err (!%p6878_p7)
}
 0x168   : > { %p8063_p5 = scmp.ne.s32.totalorder %s8052_s15, 0  ;;  %s8064_s29 = sld [smem:[#allocation45_spill]] }
 0x169   : > { %s593_s12 = scalar_lea.vmem [#allocation8], %s7367_s23 }
 0x16a   : > { %6450 = dma.hbm_to_vmem [thread:$0]  (!%p8063_p5), %s7513_s0, 256, %s7516_s3, %s7520_s17, %s8056_s9, %s8056_s9, %s8055_s5  }
 0x16b   : > { %s600_s14 = sshll.u32 %s593_s12, 4  ;;  %s7554_s14 = int_to_ptr.vmem [resolvable:$true] %s600_s14 }
 0x16e   : > { %s7551_s21 = scalar_lea.hbm %s8064_s29, %s7370_s27  ;;  %s6887_s3 = scalar_lea.hbm %s8064_s29, 512 }
 0x16f   : > { %s6882_s13 = scalar_lea.hbm %s7551_s21, 256  ;;  %p6888_p9 = scmp.lt.u32.totalorder %s7551_s21, %s8064_s29 }
 0x170   : > { %p6883_p10 = scmp.ne.s32.totalorder %s7551_s21, %s6882_s13  ;;  %p6889_p4 = scmp.lt.u32.totalorder %s6887_s3, %s6882_s13 }
 0x171   : > { %p6891_p12 = scmp.lt.u32.totalorder %s6882_s13, %s7551_s21 }
 0x172   : > { %p6885_p3 = pnand %p6883_p10, %p8062_p11  ;;  %p6890_p1 = por %p6889_p4, %p6888_p9 }
 0x174   : > { %p6886_p13 = pneg %p6885_p3  ;;  %p6892_p0 = por %p6891_p12, %p6890_p1 }
 0x176   : > { %p6893_p2 = pnand %p6892_p0, %p6886_p13 }
 0x178   : > { %6896 = shalt.err (!%p6893_p2)
}
 0x179   : > { %s6897_s23 = scalar_lea.vmem %s7554_s14, 256  ;;  %s7080_s1 = smov [#allocation8]  }
 0x17a   : > { %p6898_p8 = scmp.ne.s32.totalorder %s7554_s14, %s6897_s23  ;;  %s6902_s28 = sshll.u32 %s7080_s1, 4  ;;  %s6903_s28 = int_to_ptr.vmem [resolvable:$false] %s6902_s28 }
 0x17b   : > { %s6904_s18 = scalar_lea.vmem %s6903_s28, 512  ;;  %p6905_p10 = scmp.lt.s32.totalorder %s7554_s14, %s6903_s28 }
 0x17c   : > { %p6900_p6 = pnand %p6898_p8, %p8062_p11  ;;  %p6906_p3 = scmp.lt.s32.totalorder %s6904_s18, %s6897_s23 }
 0x17e   : > { %p6901_p7 = pneg %p6900_p6  ;;  %p6907_p9 = por %p6906_p3, %p6905_p10 }
 0x180   : > { %p6908_p4 = pnand %p6907_p9, %p6901_p7 }
 0x182   : > { %6911 = shalt.err (!%p6908_p4)
}
 0x183   : > { %6456 = dma.hbm_to_vmem [thread:$0]  (!%p8063_p5), %s7551_s21, 256, %s7554_s14, %s7386_s2, %s8056_s9, %s8056_s9, %s8055_s5  }
 0x184   : > { %s8065_s7 = sld [smem:[#allocation39_spill]] }
 0x18a   : > { %p8066_p11 = scmp.ne.s32.totalorder %s8065_s7, 0 }
 0x18b   : > { %s7584_s25 = sand.u32 (!%p8066_p11), 1, %s7054_s19   ;;  %p8067_p13 = scmp.ne.s32.totalorder (!%p8066_p11), %s8048_s16, 0 }
 0x18c   : > { %612 = sbr.rel (%p8066_p11) target bundleno = 1895 (0x767), region = 72  ;;  %s7587_s12 = sshll.u32 (!%p8066_p11), %s7584_s25, 4 }
 0x18d   : > { %s615_s15 = scalar_lea.sflag (!%p8066_p11), [#allocation4], %s7584_s25  ;;  %s618_s13 = scalar_lea.vmem (!%p8066_p11), [#allocation3], %s7587_s12 }
 0x193   : > { %7013 = dma.done.wait (%p8067_p13), %s615_s15, 256  }
 0x194   : > { %7015 = vsyncadd (%p8067_p13), %s615_s15, 4294967040  ;;  %s623_s2 = sand.u32 1, %s7188_s24   ;;  %s7599_s9 = scalar_lea.vmem [#allocation6], %s7587_s12 }
 0x195   : > { %s624_s5 = scalar_lea.sflag [#allocation7], %s623_s2 }
 0x196   : > { %7017 = dma.done.wait (%p8067_p13), %s624_s5, 512  }
 0x197   : > { %7019 = vsyncadd (%p8067_p13), %s624_s5, 4294966784  ;;  %s7606_s21 = scalar_lea.vmem [#allocation8], %s7587_s12  ;;  %p8068_p5 = scmp.eq.s32.totalorder %s7188_s24, 0 }
 0x199   : > { %7021 = dma.done.wait (%p8068_p5), [#allocation10], 55344   ;;  %p8069_p1 = pmov %p8068_p5 }
 0x19b   : > { %7023 = vsyncadd (%p8069_p1), [#allocation10], 4294911952  ;;  %p8070_p12 = pmov %p8069_p1 }
 0x19c   : > { %p8071_p0 = pmov %p8069_p1 }
 0x19d   : > { %7025 = dma.done.wait (%p8070_p12), [#allocation13], 18448  }
 0x19e   : > { %7027 = vsyncadd (%p8071_p0), [#allocation13], 4294948848  ;;  %p8072_p2 = pmov %p8071_p0 }
 0x19f   : > { %p8073_p8 = pmov %p8071_p0 }
 0x1a0   : > { %7029 = dma.done.wait (%p8072_p2), [#allocation16], 6160  }
 0x1a1   : > { %7031 = vsyncadd (%p8073_p8), [#allocation16], 4294961136  ;;  %p8074_p6 = pmov %p8071_p0 }
 0x1a2   : > { %p8075_p7 = pmov %p8071_p0 }
 0x1a3   : > { %7033 = dma.done.wait (%p8074_p6), [#allocation19], 6160  }
 0x1a4   : > { %7035 = vsyncadd (%p8075_p7), [#allocation19], 4294961136  ;;  %p8076_p10 = pmov %p8071_p0 }
 0x1a5   : > { %p8077_p3 = pmov %p8071_p0 }
 0x1a6   : > { %7037 = dma.done.wait (%p8076_p10), [#allocation22], 6160  }
 0x1a7   : > { %7039 = vsyncadd (%p8077_p3), [#allocation22], 4294961136  ;;  %v7081_v0 = vmov 0.0   ;;  %v950_v1 = vld [vmem:[#allocation9 + $0x488] sm:$0xff]  ;;  %v953_v2 = vld [vmem:[#allocation9 + $0x4a0] sm:$0xff]  ;;  %vm764_vm0 = vcmask 1040384  }
 0x1a8   : > { %1265 = vmatprep.mubr.f32.mxu1 %v7081_v0  ;;  %743 = vst [vmem:[#allocation2] sm:$0xff] %v7081_v0  ;;  %744 = vst [vmem:[#allocation2 + $0x8] sm:$0xff] %v7081_v0  ;;  %v1046_v3 = vld [vmem:[#allocation9 + $0x788] sm:$0xff]  ;;  %v5352_v4 = vpack.c.bf16 %v953_v2, %v950_v1  ;;  %v1049_v5 = vld [vmem:[#allocation9 + $0x7a0] sm:$0xff]  ;;  %vm1102_vm1 = vcmask 1046528   ;;  %vm1889_vm2 = vcmask 1045504  }
 0x1a9   : > { %745 = vst [vmem:[#allocation2 + $0x10] sm:$0xff] %v7081_v0  ;;  %749 = vst [vmem:[#allocation2 + $0x30] sm:$0x3] %v7081_v0  ;;  %v949_v6 = vld [vmem:[#allocation9 + $0x480] sm:$0xff]  ;;  %v952_v7 = vld [vmem:[#allocation9 + $0x498] sm:$0xff]  ;;  %v5416_v8 = vpack.c.bf16 %v1049_v5, %v1046_v3  ;;  %s7808_s16 = scalar_lea.vmem [#allocation24], %s7587_s12 }
 0x1aa   : > { %750 = vst [vmem:[#allocation2 + $0x38] sm:$0x3] %v7081_v0  ;;  %751 = vst [vmem:[#allocation2 + $0x40] sm:$0x3] %v7081_v0  ;;  %v5354_v9 = vpack.c.bf16 %v952_v7, %v949_v6  ;;  %v1045_v10 = vld [vmem:[#allocation9 + $0x780] sm:$0xff]  ;;  %v1048_v11 = vld [vmem:[#allocation9 + $0x798] sm:$0xff]  ;;  %5353 = vmatprep.subr.bf16.mxu0 %v5352_v4 }
 0x1ab   : > { %v956_v12 = vld [vmem:[#allocation9 + $0x4b8] sm:$0xff]  ;;  %v5418_v13 = vpack.c.bf16 %v1048_v11, %v1045_v10  ;;  %v959_v14 = vld [vmem:[#allocation9 + $0x4d0] sm:$0xff]  ;;  %5417 = vmatprep.subr.bf16.mxu1 %v5416_v8  ;;  %v958_v20 = vld [vmem:[#allocation9 + $0x4c8] sm:$0xff]  ;;  %s3965_s14 = sshll.u32 %s7808_s16, 4  ;;  %s7842_s26 = sshll.u32 %s7188_s24, 8  ;;  %s7844_s14 = int_to_ptr.vmem [resolvable:$true] %s3965_s14 }
 0x1ac   : > { %v1052_v15 = vld [vmem:[#allocation9 + $0x7b8] sm:$0xff]  ;;  %v1055_v16 = vld [vmem:[#allocation9 + $0x7d0] sm:$0xff]  ;;  %5355 = vmatpush1.bf16.msra.mxu0 %v5354_v9  ;;  %v5356_v17 = vpack.c.bf16 %v959_v14, %v956_v12  ;;  %v1054_v23 = vld [vmem:[#allocation9 + $0x7c8] sm:$0xff]  ;;  %s8078_s17 = sld [smem:[#allocation52_spill]]  ;;  %s3942_s23 = scalar_lea.sflag [#allocation5], %s7584_s25 }
 0x1ad   : > { %v5420_v18 = vpack.c.bf16 %v1055_v16, %v1052_v15  ;;  %v955_v19 = vld [vmem:[#allocation9 + $0x4b0] sm:$0xff]  ;;  %5419 = vmatpush1.bf16.msra.mxu1 %v5418_v13  ;;  %v962_v24 = vld [vmem:[#allocation9 + $0x4e8] sm:$0xff]  ;;  %v965_v25 = vld [vmem:[#allocation9 + $0x500] sm:$0xff]  ;;  %s6912_s1 = scalar_lea.vmem %s7844_s14, 256  ;;  %p8079_p4 = scmp.ne.s32.totalorder %s8049_s22, 0 }
 0x1ae   : > { %v1051_v21 = vld [vmem:[#allocation9 + $0x7b0] sm:$0xff]  ;;  %v5358_v22 = vpack.c.bf16 %v958_v20, %v955_v19  ;;  %5357 = vmatprep.subr.bf16.mxu0 %v5356_v17  ;;  %v5360_v27 = vpack.c.bf16 %v965_v25, %v962_v24  ;;  %v1058_v28 = vld [vmem:[#allocation9 + $0x7e8] sm:$0xff]  ;;  %v1061_v29 = vld [vmem:[#allocation9 + $0x800] sm:$0xff]  ;;  %p6913_p9 = scmp.ne.s32.totalorder %s7844_s14, %s6912_s1  ;;  %s7082_s28 = smov [#allocation24]  }
 0x1af   : > { %5421 = vmatprep.subr.bf16.mxu1 %v5420_v18  ;;  %v5422_v26 = vpack.c.bf16 %v1054_v23, %v1051_v21  ;;  %v961_v30 = vld [vmem:[#allocation9 + $0x4e0] sm:$0xff]  ;;  %v5424_v31 = vpack.c.bf16 %v1061_v29, %v1058_v28  ;;  %v964_v32 = vld [vmem:[#allocation9 + $0x4f8] sm:$0xff]  ;;  %v971_v37 = vld [vmem:[#allocation9 + $0x530] sm:$0xff]  ;;  %s6916_s18 = sshll.u32 %s7082_s28, 4  ;;  %s6917_s18 = int_to_ptr.vmem [resolvable:$false] %s6916_s18 }
 0x1b0   : > { %v1057_v33 = vld [vmem:[#allocation9 + $0x7e0] sm:$0xff]  ;;  %v1060_v34 = vld [vmem:[#allocation9 + $0x7f8] sm:$0xff]  ;;  %5359 = vmatpush1.bf16.msra.mxu0 %v5358_v22  ;;  %v5362_v35 = vpack.c.bf16 %v964_v32, %v961_v30  ;;  %v1067_v41 = vld [vmem:[#allocation9 + $0x830] sm:$0xff]  ;;  %p6914_p11 = pnand %p6913_p9, %p8079_p4  ;;  %s6918_s7 = scalar_lea.vmem %s6917_s18, 512 }
 0x1b1   : > { %v968_v36 = vld [vmem:[#allocation9 + $0x518] sm:$0xff]  ;;  %5423 = vmatpush1.bf16.msra.mxu1 %v5422_v26  ;;  %5361 = vmatprep.subr.bf16.mxu0 %v5360_v27  ;;  %v5426_v39 = vpack.c.bf16 %v1060_v34, %v1057_v33  ;;  %v967_v42 = vld [vmem:[#allocation9 + $0x510] sm:$0xff]  ;;  %v970_v43 = vld [vmem:[#allocation9 + $0x528] sm:$0xff]  ;;  %p6919_p5 = scmp.lt.s32.totalorder %s7844_s14, %s6917_s18  ;;  %p6920_p1 = scmp.lt.s32.totalorder %s6918_s7, %s6912_s1 }
 0x1b2   : > { %v1064_v38 = vld [vmem:[#allocation9 + $0x818] sm:$0xff]  ;;  %v5364_v40 = vpack.c.bf16 %v971_v37, %v968_v36  ;;  %5425 = vmatprep.subr.bf16.mxu1 %v5424_v31  ;;  %v1063_v45 = vld [vmem:[#allocation9 + $0x810] sm:$0xff]  ;;  %v1066_v46 = vld [vmem:[#allocation9 + $0x828] sm:$0xff]  ;;  %v5366_v51 = vpack.c.bf16 %v970_v43, %v967_v42  ;;  %s7850_s27 = scalar_lea.hbm %s8078_s17, %s7842_s26  ;;  %p6915_p13 = pneg %p6914_p11 }
 0x1b3   : > { %v5428_v44 = vpack.c.bf16 %v1067_v41, %v1064_v38  ;;  %v974_v47 = vld [vmem:[#allocation9 + $0x548] sm:$0xff]  ;;  %v977_v48 = vld [vmem:[#allocation9 + $0x560] sm:$0xff]  ;;  %v5430_v52 = vpack.c.bf16 %v1066_v46, %v1063_v45  ;;  %v976_v55 = vld [vmem:[#allocation9 + $0x558] sm:$0xff]  ;;  %p6921_p12 = por %p6920_p1, %p6919_p5 }
 0x1b4   : > { %v1070_v49 = vld [vmem:[#allocation9 + $0x848] sm:$0xff]  ;;  %v1073_v50 = vld [vmem:[#allocation9 + $0x860] sm:$0xff]  ;;  %5363 = vmatpush1.bf16.msra.mxu0 %v5362_v35  ;;  %v5368_v53 = vpack.c.bf16 %v977_v48, %v974_v47  ;;  %v1072_v58 = vld [vmem:[#allocation9 + $0x858] sm:$0xff] }
 0x1b5   : > { %5427 = vmatpush1.bf16.msra.mxu1 %v5426_v39  ;;  %5365 = vmatprep.subr.bf16.mxu0 %v5364_v40  ;;  %v973_v54 = vld [vmem:[#allocation9 + $0x540] sm:$0xff]  ;;  %v5432_v57 = vpack.c.bf16 %v1073_v50, %v1070_v49  ;;  %v980_v59 = vld [vmem:[#allocation9 + $0x578] sm:$0xff]  ;;  %v983_v60 = vld [vmem:[#allocation9 + $0x590] sm:$0xff]  ;;  %p6922_p0 = pnand %p6921_p12, %p6915_p13 }
 0x1b6   : > { %v1069_v56 = vld [vmem:[#allocation9 + $0x840] sm:$0xff]  ;;  %5429 = vmatprep.subr.bf16.mxu1 %v5428_v44  ;;  %v1076_v61 = vld [vmem:[#allocation9 + $0x878] sm:$0xff]  ;;  %v1079_v62 = vld [vmem:[#allocation9 + $0x890] sm:$0xff]  ;;  %v5370_v63 = vpack.c.bf16 %v976_v55, %v973_v54  ;;  %v5372_v2 = vpack.c.bf16 %v983_v60, %v980_v59 }
 0x1b7   : > { %v5434_v1 = vpack.c.bf16 %v1072_v58, %v1069_v56  ;;  %v979_v3 = vld [vmem:[#allocation9 + $0x570] sm:$0xff]  ;;  %v982_v4 = vld [vmem:[#allocation9 + $0x588] sm:$0xff]  ;;  %v5436_v6 = vpack.c.bf16 %v1079_v62, %v1076_v61  ;;  %v989_v9 = vld [vmem:[#allocation9 + $0x5c0] sm:$0xff] }
 0x1b8   : > { %5367 = vmatpush1.bf16.msra.mxu0 %v5366_v51  ;;  %v1075_v5 = vld [vmem:[#allocation9 + $0x870] sm:$0xff]  ;;  %v1078_v7 = vld [vmem:[#allocation9 + $0x888] sm:$0xff]  ;;  %v1085_v11 = vld [vmem:[#allocation9 + $0x8c0] sm:$0xff]  ;;  %v5374_v12 = vpack.c.bf16 %v982_v4, %v979_v3 }
 0x1b9   : > { %5431 = vmatpush1.bf16.msra.mxu1 %v5430_v52  ;;  %5369 = vmatprep.subr.bf16.mxu0 %v5368_v53  ;;  %v986_v8 = vld [vmem:[#allocation9 + $0x5a8] sm:$0xff]  ;;  %v985_v13 = vld [vmem:[#allocation9 + $0x5a0] sm:$0xff]  ;;  %v5438_v14 = vpack.c.bf16 %v1078_v7, %v1075_v5  ;;  %v988_v16 = vld [vmem:[#allocation9 + $0x5b8] sm:$0xff] }
 0x1ba   : > { %5433 = vmatprep.subr.bf16.mxu1 %v5432_v57  ;;  %v1082_v10 = vld [vmem:[#allocation9 + $0x8a8] sm:$0xff]  ;;  %v5376_v15 = vpack.c.bf16 %v989_v9, %v986_v8  ;;  %v1081_v17 = vld [vmem:[#allocation9 + $0x8a0] sm:$0xff]  ;;  %v1084_v18 = vld [vmem:[#allocation9 + $0x8b8] sm:$0xff]  ;;  %v5378_v26 = vpack.c.bf16 %v988_v16, %v985_v13 }
 0x1bb   : > { %v5440_v19 = vpack.c.bf16 %v1085_v11, %v1082_v10  ;;  %v992_v20 = vld [vmem:[#allocation9 + $0x5d8] sm:$0xff]  ;;  %v995_v21 = vld [vmem:[#allocation9 + $0x5f0] sm:$0xff]  ;;  %v5442_v29 = vpack.c.bf16 %v1084_v18, %v1081_v17  ;;  %v994_v32 = vld [vmem:[#allocation9 + $0x5e8] sm:$0xff] }
 0x1bc   : > { %5371 = vmatpush1.bf16.msra.mxu0 %v5370_v63  ;;  %v1088_v22 = vld [vmem:[#allocation9 + $0x8d8] sm:$0xff]  ;;  %v1091_v23 = vld [vmem:[#allocation9 + $0x8f0] sm:$0xff]  ;;  %v5380_v30 = vpack.c.bf16 %v995_v21, %v992_v20  ;;  %v1090_v35 = vld [vmem:[#allocation9 + $0x8e8] sm:$0xff] }
 0x1bd   : > { %5435 = vmatpush1.bf16.msra.mxu1 %v5434_v1  ;;  %5373 = vmatprep.subr.bf16.mxu0 %v5372_v2  ;;  %v754_v24 = vld [vmem:[%s7606_s21] sm:$0xff]  ;;  %v755_v25 = vld [vmem:[%s7606_s21 + $0x8] sm:$0xff]  ;;  %v5444_v34 = vpack.c.bf16 %v1091_v23, %v1088_v22 }
 0x1be   : > { %5437 = vmatprep.subr.bf16.mxu1 %v5436_v6  ;;  %v767_v27 = vrot.slane %v754_v24, 7  ;;  %v772_v28 = vrot.slane %v755_v25, 7  ;;  %v991_v31 = vld [vmem:[#allocation9 + $0x5d0] sm:$0xff]  ;;  %v998_v36 = vld [vmem:[#allocation9 + $0x608] sm:$0xff]  ;;  %v1001_v37 = vld [vmem:[#allocation9 + $0x620] sm:$0xff] }
 0x1bf   : > { %v1087_v33 = vld [vmem:[#allocation9 + $0x8d0] sm:$0xff]  ;;  %v1002_v39 = vld [vmem:[#allocation9 + $0x628] sm:$0xff]  ;;  %v5382_v40 = vpack.c.bf16 %v994_v32, %v991_v31  ;;  %v5384_v42 = vpack.c.bf16 %v1001_v37, %v998_v36  ;;  %v997_v43 = vld [vmem:[#allocation9 + $0x600] sm:$0xff] }
 0x1c0   : > { %5375 = vmatpush1.bf16.msra.mxu0 %v5374_v12  ;;  %785 = vst [vmem:[#allocation2 + $0x10] sm:$0xfe] %v767_v27  ;;  %791 = vst [vmem:[#allocation2 + $0x40] sm:$0x1] %v772_v28  ;;  %v999_v38 = vld [vmem:[#allocation9 + $0x610] sm:$0xff]  ;;  %v5446_v41 = vpack.c.bf16 %v1090_v35, %v1087_v33  ;;  %v1000_v44 = vld [vmem:[#allocation9 + $0x618] sm:$0xff]  ;;  %v7638_v45 = vsel %vm764_vm0, %v767_v27, %v772_v28 }
 0x1c1   : > { %5439 = vmatpush1.bf16.msra.mxu1 %v5438_v14  ;;  %5377 = vmatprep.subr.bf16.mxu0 %v5376_v15  ;;  %v5448_v46 = vpack.c.bf16 %v1002_v39, %v999_v38  ;;  %v1004_v47 = vld [vmem:[#allocation9 + $0x638] sm:$0xff]  ;;  %v1007_v48 = vld [vmem:[#allocation9 + $0x650] sm:$0xff]  ;;  %v954_v50 = vld [vmem:[#allocation9 + $0x4a8] sm:$0xff]  ;;  %v5386_v51 = vpack.c.bf16 %v1000_v44, %v997_v43  ;;  %v1110_v52 = vrot.slane %v7638_v45, 1 }
 0x1c2   : > { %5441 = vmatprep.subr.bf16.mxu1 %v5440_v19  ;;  %v951_v49 = vld [vmem:[#allocation9 + $0x490] sm:$0xff]  ;;  %v1005_v53 = vld [vmem:[#allocation9 + $0x640] sm:$0xff]  ;;  %v1008_v54 = vld [vmem:[#allocation9 + $0x658] sm:$0xff]  ;;  %v5388_v56 = vpack.c.bf16 %v1007_v48, %v1004_v47 }
 0x1c3   : > { %v1003_v57 = vld [vmem:[#allocation9 + $0x630] sm:$0xff]  ;;  %v1006_v58 = vld [vmem:[#allocation9 + $0x648] sm:$0xff]  ;;  %v5450_v60 = vpack.c.bf16 %v954_v50, %v951_v49  ;;  %v1013_v62 = vld [vmem:[#allocation9 + $0x680] sm:$0xff]  ;;  %v5452_v63 = vpack.c.bf16 %v1008_v54, %v1005_v53 }
 0x1c4   : > { %5379 = vmatpush1.bf16.msra.mxu0 %v5378_v26  ;;  %v1010_v61 = vld [vmem:[#allocation9 + $0x668] sm:$0xff]  ;;  %v957_v1 = vld [vmem:[#allocation9 + $0x4c0] sm:$0xff]  ;;  %v960_v2 = vld [vmem:[#allocation9 + $0x4d8] sm:$0xff]  ;;  %v5390_v4 = vpack.c.bf16 %v1006_v58, %v1003_v57 }
 0x1c5   : > { %5443 = vmatpush1.bf16.msra.mxu1 %v5442_v29  ;;  %5381 = vmatprep.subr.bf16.mxu0 %v5380_v30  ;;  %v1011_v5 = vld [vmem:[#allocation9 + $0x670] sm:$0xff]  ;;  %v1014_v6 = vld [vmem:[#allocation9 + $0x688] sm:$0xff]  ;;  %v5392_v7 = vpack.c.bf16 %v1013_v62, %v1010_v61  ;;  %v1009_v8 = vld [vmem:[#allocation9 + $0x660] sm:$0xff]  ;;  %v5454_v10 = vpack.c.bf16 %v960_v2, %v957_v1 }
 0x1c6   : > { %5445 = vmatprep.subr.bf16.mxu1 %v5444_v34  ;;  %v1012_v9 = vld [vmem:[#allocation9 + $0x678] sm:$0xff]  ;;  %v1019_v12 = vld [vmem:[#allocation9 + $0x6b0] sm:$0xff]  ;;  %v5456_v13 = vpack.c.bf16 %v1014_v6, %v1011_v5  ;;  %v966_v15 = vld [vmem:[#allocation9 + $0x508] sm:$0xff] }
 0x1c7   : > { %v944_v55 = vld [vmem:[#allocation2 + $0x10] sm:$0xfe]  ;;  %v1016_v11 = vld [vmem:[#allocation9 + $0x698] sm:$0xff]  ;;  %v963_v14 = vld [vmem:[#allocation9 + $0x4f0] sm:$0xff]  ;;  %v5394_v16 = vpack.c.bf16 %v1012_v9, %v1009_v8 }
 0x1c8   : > { %5383 = vmatpush1.bf16.msra.mxu0 %v5382_v40  ;;  %v1109_v59 = vrot.slane %v944_v55, 1  ;;  %v1017_v17 = vld [vmem:[#allocation9 + $0x6a0] sm:$0xff]  ;;  %v1020_v18 = vld [vmem:[#allocation9 + $0x6b8] sm:$0xff]  ;;  %v5396_v19 = vpack.c.bf16 %v1019_v12, %v1016_v11  ;;  %v1015_v20 = vld [vmem:[#allocation9 + $0x690] sm:$0xff]  ;;  %v5458_v23 = vpack.c.bf16 %v966_v15, %v963_v14 }
 0x1c9   : > { %5447 = vmatpush1.bf16.msra.mxu1 %v5446_v41  ;;  %5385 = vmatprep.subr.bf16.mxu0 %v5384_v42  ;;  %v1018_v21 = vld [vmem:[#allocation9 + $0x6a8] sm:$0xff]  ;;  %v969_v22 = vld [vmem:[#allocation9 + $0x520] sm:$0xff]  ;;  %v972_v24 = vld [vmem:[#allocation9 + $0x538] sm:$0xff]  ;;  %v5460_v27 = vpack.c.bf16 %v1020_v18, %v1017_v17 }
 0x1ca   : > { %5449 = vmatprep.subr.bf16.mxu1 %v5448_v46  ;;  %v7644_v3 = vsel %vm1102_vm1, %v1109_v59, %v1110_v52  ;;  %v1022_v25 = vld [vmem:[#allocation9 + $0x6c8] sm:$0xff]  ;;  %v1025_v26 = vld [vmem:[#allocation9 + $0x6e0] sm:$0xff]  ;;  %v1023_v28 = vld [vmem:[#allocation9 + $0x6d0] sm:$0xff]  ;;  %v5398_v31 = vpack.c.bf16 %v1018_v21, %v1015_v20  ;;  %v5462_v43 = vpack.c.bf16 %v972_v24, %v969_v22 }
 0x1cb   : > { %v1026_v29 = vld [vmem:[#allocation9 + $0x6e8] sm:$0xff]  ;;  %v947_v30 = vld [vmem:[#allocation2 + $0x40] sm:$0x1]  ;;  %v752_v33 = vld [vmem:[%s7599_s9] sm:$0xff]  ;;  %v5400_v36 = vpack.c.bf16 %v1025_v26, %v1022_v25 }
 0x1cc   : > { %5387 = vmatpush1.bf16.msra.mxu0 %v5386_v51  ;;  %1266 = vmatmul.mubr.f32.vlgmr.msra.gmra.mrb[0].mxu1 %v7644_v3  ;;  %v1116_v32 = vrot.slane %v947_v30, 1  ;;  %v753_v34 = vld [vmem:[%s7599_s9 + $0x8] sm:$0xff]  ;;  %v7652_v35 = vld [vmem:[%s618_s13] sm:$0xff]  ;;  %v766_v39 = vrot.slane %v752_v33, 7  ;;  %v5464_v49 = vpack.c.bf16 %v1026_v29, %v1023_v28 }
 0x1cd   : > { %5389 = vmatprep.subr.bf16.mxu0 %v5388_v56  ;;  %5451 = vmatpush3.bf16.msra.mxu1 %v5450_v60  ;;  %v1021_v37 = vld [vmem:[#allocation9 + $0x6c0] sm:$0xff]  ;;  %v1024_v38 = vld [vmem:[#allocation9 + $0x6d8] sm:$0xff]  ;;  %v770_v40 = vrot.slane %v753_v34, 7  ;;  %v765_v42 = vrot.slane %v7652_v35, 7  ;;  %v1031_v46 = vld [vmem:[#allocation9 + $0x710] sm:$0xff] }
 0x1ce   : > { %1271 = vmatprep.mubr.f32.mxu1 %v7081_v0  ;;  %5453 = vmatprep.subr.bf16.mxu1 %v5452_v63  ;;  %v7656_v41 = vld [vmem:[%s618_s13 + $0x8] sm:$0xff]  ;;  %v7662_v47 = vsel %vm1102_vm1, %v1110_v52, %v1116_v32  ;;  %v975_v50 = vld [vmem:[#allocation9 + $0x550] sm:$0xff]  ;;  %784 = vst [vmem:[#allocation2 + $0x8] sm:$0xfe] %v766_v39  ;;  %v5402_v53 = vpack.c.bf16 %v1024_v38, %v1021_v37  ;;  %v1029_v54 = vld [vmem:[#allocation9 + $0x700] sm:$0xff] }
 0x1cf   : > { %v1028_v44 = vld [vmem:[#allocation9 + $0x6f8] sm:$0xff]  ;;  %v768_v48 = vrot.slane %v7656_v41, 7  ;;  %v978_v51 = vld [vmem:[#allocation9 + $0x568] sm:$0xff]  ;;  %790 = vst [vmem:[#allocation2 + $0x38] sm:$0x1] %v770_v40  ;;  %v1027_v52 = vld [vmem:[#allocation9 + $0x6f0] sm:$0xff]  ;;  %v7667_v61 = vsel %vm764_vm0, %v766_v39, %v770_v40 }
 0x1d0   : > { %5391 = vmatpush1.bf16.msra.mxu0 %v5390_v4  ;;  %1272 = vmatmul.mubr.f32.gmra.mrb[2].mxu1 %v7662_v47  ;;  %783 = vst [vmem:[#allocation2] sm:$0xfe] %v765_v42  ;;  %v1032_v55 = vld [vmem:[#allocation9 + $0x718] sm:$0xff]  ;;  %v5404_v56 = vpack.c.bf16 %v1031_v46, %v1028_v44  ;;  %v1030_v57 = vld [vmem:[#allocation9 + $0x708] sm:$0xff]  ;;  %v5466_v58 = vpack.c.bf16 %v978_v51, %v975_v50  ;;  %v1037_v60 = vld [vmem:[#allocation9 + $0x740] sm:$0xff]  ;;  %v1107_v9 = vrot.slane %v7667_v61, 1 }
 0x1d1   : > { %5393 = vmatprep.subr.bf16.mxu0 %v5392_v7  ;;  %5455 = vmatpush3.bf16.msra.mxu1 %v5454_v10  ;;  %789 = vst [vmem:[#allocation2 + $0x30] sm:$0x1] %v768_v48  ;;  %v1034_v59 = vld [vmem:[#allocation9 + $0x728] sm:$0xff]  ;;  %v5468_v62 = vpack.c.bf16 %v1032_v55, %v1029_v54  ;;  %v981_v63 = vld [vmem:[#allocation9 + $0x580] sm:$0xff]  ;;  %v984_v1 = vld [vmem:[#allocation9 + $0x598] sm:$0xff]  ;;  %v5406_v2 = vpack.c.bf16 %v1030_v57, %v1027_v52 }
 0x1d2   : > { %5457 = vmatprep.subr.bf16.mxu1 %v5456_v13  ;;  %v1035_v4 = vld [vmem:[#allocation9 + $0x730] sm:$0xff]  ;;  %v1038_v5 = vld [vmem:[#allocation9 + $0x748] sm:$0xff]  ;;  %v5408_v6 = vpack.c.bf16 %v1037_v60, %v1034_v59  ;;  %v1033_v7 = vld [vmem:[#allocation9 + $0x720] sm:$0xff]  ;;  %v5470_v10 = vpack.c.bf16 %v984_v1, %v981_v63  ;;  %v7674_v25 = vsel %vm764_vm0, %v765_v42, %v768_v48 }
 0x1d3   : > { %v1036_v8 = vld [vmem:[#allocation9 + $0x738] sm:$0xff]  ;;  %v1043_v12 = vld [vmem:[#allocation9 + $0x770] sm:$0xff]  ;;  %v5472_v14 = vpack.c.bf16 %v1038_v5, %v1035_v4  ;;  %v799_v28 = vld [vmem:[#allocation9 + $0x8] sm:$0xff]  ;;  %v1104_v35 = vrot.slane %v7674_v25, 1 }
 0x1d4   : > { %5395 = vmatpush1.bf16.msra.mxu0 %v5394_v16  ;;  %v1040_v11 = vld [vmem:[#allocation9 + $0x758] sm:$0xff]  ;;  %v987_v15 = vld [vmem:[#allocation9 + $0x5b0] sm:$0xff]  ;;  %v990_v16 = vld [vmem:[#allocation9 + $0x5c8] sm:$0xff]  ;;  %v5410_v18 = vpack.c.bf16 %v1036_v8, %v1033_v7 }
 0x1d5   : > { %5397 = vmatprep.subr.bf16.mxu0 %v5396_v19  ;;  %5459 = vmatpush3.bf16.msra.mxu1 %v5458_v23  ;;  %v943_v13 = vld [vmem:[#allocation2 + $0x8] sm:$0xfe]  ;;  %v1044_v20 = vld [vmem:[#allocation9 + $0x778] sm:$0xff]  ;;  %v5412_v21 = vpack.c.bf16 %v1043_v12, %v1040_v11  ;;  %v1039_v22 = vld [vmem:[#allocation9 + $0x750] sm:$0xff] }
 0x1d6   : > { %5461 = vmatprep.subr.bf16.mxu1 %v5460_v27  ;;  %v1106_v17 = vrot.slane %v943_v13, 1  ;;  %v1041_v19 = vld [vmem:[#allocation9 + $0x760] sm:$0xff]  ;;  %v1042_v23 = vld [vmem:[#allocation9 + $0x768] sm:$0xff]  ;;  %v5474_v27 = vpack.c.bf16 %v990_v16, %v987_v15  ;;  %v996_v32 = vld [vmem:[#allocation9 + $0x5f8] sm:$0xff] }
 0x1d7   : > { %v942_v26 = vld [vmem:[#allocation2] sm:$0xfe]  ;;  %v802_v29 = vld [vmem:[#allocation9 + $0x20] sm:$0xff]  ;;  %v5476_v30 = vpack.c.bf16 %v1044_v20, %v1041_v19  ;;  %v5414_v33 = vpack.c.bf16 %v1042_v23, %v1039_v22  ;;  %v1050_v37 = vld [vmem:[#allocation9 + $0x7a8] sm:$0xff] }
 0x1d8   : > { %5399 = vmatpush1.bf16.msra.mxu0 %v5398_v31  ;;  %v1108_v24 = vsel %vm1102_vm1, %v1106_v17, %v1107_v9  ;;  %v993_v31 = vld [vmem:[#allocation9 + $0x5e0] sm:$0xff]  ;;  %v1103_v34 = vrot.slane %v942_v26, 1  ;;  %v946_v38 = vld [vmem:[#allocation2 + $0x38] sm:$0x1]  ;;  %v5512_v39 = vpack.c.bf16 %v802_v29, %v799_v28  ;;  %v801_v41 = vld [vmem:[#allocation9 + $0x18] sm:$0xff] }
 0x1d9   : > { %5401 = vmatprep.subr.bf16.mxu0 %v5400_v36  ;;  %5463 = vmatpush3.bf16.msra.mxu1 %v5462_v43  ;;  %v1047_v36 = vld [vmem:[#allocation9 + $0x790] sm:$0xff]  ;;  %v798_v40 = vld [vmem:[#allocation9] sm:$0xff]  ;;  %v5478_v42 = vpack.c.bf16 %v996_v32, %v993_v31  ;;  %v805_v43 = vld [vmem:[#allocation9 + $0x38] sm:$0xff]  ;;  %v1114_v48 = vrot.slane %v946_v38, 1 }
 0x1da   : > { %5465 = vmatprep.subr.bf16.mxu1 %v5464_v49  ;;  %1188 = vmatprep.mubr.f32.mxu0 %v1108_v24  ;;  %v808_v44 = vld [vmem:[#allocation9 + $0x50] sm:$0xff]  ;;  %v5480_v46 = vpack.c.bf16 %v1050_v37, %v1047_v36  ;;  %v945_v49 = vld [vmem:[#allocation2 + $0x30] sm:$0x1]  ;;  %v1105_v50 = vsel %vm1102_vm1, %v1103_v34, %v1104_v35  ;;  %v5514_v51 = vpack.c.bf16 %v801_v41, %v798_v40  ;;  %v1056_v54 = vld [vmem:[#allocation9 + $0x7d8] sm:$0xff] }
 0x1db   : > { %1342 = vmatprep.mubr.f32.mxu1 %v1108_v24  ;;  %v5516_v55 = vpack.c.bf16 %v808_v44, %v805_v43  ;;  %v807_v52 = vld [vmem:[#allocation9 + $0x48] sm:$0xff]  ;;  %v1112_v59 = vrot.slane %v945_v49, 1  ;;  %v1059_v1 = vld [vmem:[#allocation9 + $0x7f0] sm:$0xff]  ;;  %v810_v5 = vld [vmem:[#allocation9 + $0x60] sm:$0xff] }
 0x1dc   : > { %5403 = vmatpush1.bf16.msra.mxu0 %v5402_v53  ;;  %v1053_v53 = vld [vmem:[#allocation9 + $0x7c0] sm:$0xff]  ;;  %v811_v57 = vld [vmem:[#allocation9 + $0x68] sm:$0xff]  ;;  %v817_v7 = vld [vmem:[#allocation9 + $0x98] sm:$0xff] }
 0x1dd   : > { %5405 = vmatprep.subr.bf16.mxu0 %v5404_v56  ;;  %5467 = vmatpush3.bf16.msra.mxu1 %v5466_v58  ;;  %v804_v56 = vld [vmem:[#allocation9 + $0x30] sm:$0xff]  ;;  %v814_v58 = vld [vmem:[#allocation9 + $0x80] sm:$0xff]  ;;  %v5484_v60 = vpack.c.bf16 %v1056_v54, %v1053_v53  ;;  %v1068_v13 = vld [vmem:[#allocation9 + $0x838] sm:$0xff] }
 0x1de   : > { %5469 = vmatprep.subr.bf16.mxu1 %v5468_v62  ;;  %v1115_v62 = vsel %vm1102_vm1, %v1107_v9, %v1114_v48  ;;  %v5518_v63 = vpack.c.bf16 %v807_v52, %v804_v56  ;;  %v5520_v4 = vpack.c.bf16 %v814_v58, %v811_v57  ;;  %v820_v8 = vld [vmem:[#allocation9 + $0xb0] sm:$0xff]  ;;  %v1065_v12 = vld [vmem:[#allocation9 + $0x820] sm:$0xff]  ;;  %v819_v16 = vld [vmem:[#allocation9 + $0xa8] sm:$0xff] }
 0x1df   : > { %v816_v15 = vld [vmem:[#allocation9 + $0x90] sm:$0xff]  ;;  %v823_v17 = vld [vmem:[#allocation9 + $0xc8] sm:$0xff]  ;;  %v5492_v19 = vpack.c.bf16 %v1068_v13, %v1065_v12  ;;  %v822_v24 = vld [vmem:[#allocation9 + $0xc0] sm:$0xff] }
 0x1e0   : > { %5407 = vmatpush1.bf16.msra.mxu0 %v5406_v2  ;;  %v1062_v2 = vld [vmem:[#allocation9 + $0x808] sm:$0xff]  ;;  %v5526_v20 = vpack.c.bf16 %v819_v16, %v816_v15  ;;  %v825_v26 = vld [vmem:[#allocation9 + $0xd8] sm:$0xff]  ;;  %v832_v28 = vld [vmem:[#allocation9 + $0x110] sm:$0xff] }
 0x1e1   : > { %5409 = vmatprep.subr.bf16.mxu0 %v5408_v6  ;;  %5471 = vmatpush3.bf16.msra.mxu1 %v5470_v10  ;;  %v813_v6 = vld [vmem:[#allocation9 + $0x78] sm:$0xff]  ;;  %v1113_v10 = vsel %vm1102_vm1, %v1104_v35, %v1112_v59  ;;  %v5488_v11 = vpack.c.bf16 %v1062_v2, %v1059_v1  ;;  %v1074_v22 = vld [vmem:[#allocation9 + $0x868] sm:$0xff]  ;;  %v1077_v31 = vld [vmem:[#allocation9 + $0x880] sm:$0xff] }
 0x1e2   : > { %5473 = vmatprep.subr.bf16.mxu1 %v5472_v14  ;;  %v5522_v9 = vpack.c.bf16 %v813_v6, %v810_v5  ;;  %v5524_v14 = vpack.c.bf16 %v820_v8, %v817_v7  ;;  %v1080_v32 = vld [vmem:[#allocation9 + $0x898] sm:$0xff]  ;;  %v831_v34 = vld [vmem:[#allocation9 + $0x108] sm:$0xff]  ;;  %v838_v36 = vld [vmem:[#allocation9 + $0x140] sm:$0xff] }
 0x1e3   : > { %v835_v35 = vld [vmem:[#allocation9 + $0x128] sm:$0xff]  ;;  %v5500_v37 = vpack.c.bf16 %v1080_v32, %v1077_v31  ;;  %v7683_v41 = vld [vmem:[#allocation2 + $0x8] sm:$0xff]  ;;  %v837_v44 = vld [vmem:[#allocation9 + $0x138] sm:$0xff] }
 0x1e4   : > { %5411 = vmatpush1.bf16.msra.mxu0 %v5410_v18  ;;  %v826_v18 = vld [vmem:[#allocation9 + $0xe0] sm:$0xff]  ;;  %v1086_v40 = vld [vmem:[#allocation9 + $0x8c8] sm:$0xff]  ;;  %v844_v48 = vld [vmem:[#allocation9 + $0x170] sm:$0xff] }
 0x1e5   : > { %5413 = vmatprep.subr.bf16.mxu0 %v5412_v21  ;;  %5475 = vmatpush3.bf16.msra.mxu1 %v5474_v27  ;;  %v1071_v21 = vld [vmem:[#allocation9 + $0x850] sm:$0xff]  ;;  %v5528_v23 = vpack.c.bf16 %v826_v18, %v823_v17  ;;  %v829_v27 = vld [vmem:[#allocation9 + $0xf8] sm:$0xff]  ;;  %v834_v43 = vld [vmem:[#allocation9 + $0x120] sm:$0xff] }
 0x1e6   : > { %5477 = vmatprep.subr.bf16.mxu1 %v5476_v30  ;;  %v5496_v29 = vpack.c.bf16 %v1074_v22, %v1071_v21  ;;  %v5530_v30 = vpack.c.bf16 %v825_v26, %v822_v24  ;;  %v1092_v53 = vld [vmem:[#allocation9 + $0x8f8] sm:$0xff]  ;;  %v843_v56 = vld [vmem:[#allocation9 + $0x168] sm:$0xff]  ;;  %v850_v57 = vld [vmem:[#allocation9 + $0x1a0] sm:$0xff] }
 0x1e7   : > { %v847_v52 = vld [vmem:[#allocation9 + $0x188] sm:$0xff]  ;;  %v846_v1 = vld [vmem:[#allocation9 + $0x180] sm:$0xff]  ;;  %v849_v2 = vld [vmem:[#allocation9 + $0x198] sm:$0xff] }
 0x1e8   : > { %5415 = vmatpush1.bf16.msra.mxu0 %v5414_v33  ;;  %v828_v33 = vld [vmem:[#allocation9 + $0xf0] sm:$0xff]  ;;  %v803_v8 = vld [vmem:[#allocation9 + $0x28] sm:$0xff]  ;;  %v862_v17 = vld [vmem:[#allocation9 + $0x200] sm:$0xff] }
 0x1e9   : > { %5513 = vmatprep.subr.bf16.mxu0 %v5512_v39  ;;  %5479 = vmatpush3.bf16.msra.mxu1 %v5478_v42  ;;  %v5534_v38 = vpack.c.bf16 %v831_v34, %v828_v33  ;;  %v1083_v39 = vld [vmem:[#allocation9 + $0x8b0] sm:$0xff]  ;;  %v5536_v42 = vpack.c.bf16 %v838_v36, %v835_v35  ;;  %v859_v16 = vld [vmem:[#allocation9 + $0x1e8] sm:$0xff]  ;;  %v858_v26 = vld [vmem:[#allocation9 + $0x1e0] sm:$0xff] }
 0x1ea   : > { %5481 = vmatprep.subr.bf16.mxu1 %v5480_v46  ;;  %v5504_v49 = vpack.c.bf16 %v1086_v40, %v1083_v39  ;;  %v856_v5 = vld [vmem:[#allocation9 + $0x1d0] sm:$0xff]  ;;  %v5552_v24 = vpack.c.bf16 %v862_v17, %v859_v16  ;;  %v866_v34 = vld [vmem:[#allocation9 + $0x220] sm:$0xff]  ;;  %v869_v35 = vld [vmem:[#allocation9 + $0x238] sm:$0xff] }
 0x1eb   : > { %1189 = vmatmul.mubr.f32.vlgmr.msra.gmra.mrb[0].mxu0 %v1105_v50  ;;  %v800_v7 = vld [vmem:[#allocation9 + $0x10] sm:$0xff]  ;;  %v871_v39 = vld [vmem:[#allocation9 + $0x248] sm:$0xff]  ;;  %v874_v40 = vld [vmem:[#allocation9 + $0x260] sm:$0xff] }
 0x1ec   : > { %5515 = vmatpush1.bf16.msra.mxu0 %v5514_v51  ;;  %1194 = vmatprep.mubr.f32.mxu0 %v1115_v62  ;;  %v1089_v51 = vld [vmem:[#allocation9 + $0x8e0] sm:$0xff]  ;;  %v852_v13 = vld [vmem:[#allocation9 + $0x1b0] sm:$0xff]  ;;  %v5610_v15 = vpack.c.bf16 %v803_v8, %v800_v7  ;;  %v833_v8 = vld [vmem:[#allocation9 + $0x118] sm:$0xff] }
 0x1ed   : > { %1343 = vmatmul.mubr.f32.vlgmr.msra.gmra.mrb[4].mxu1 %v1105_v50  ;;  %5517 = vmatprep.subr.bf16.mxu0 %v5516_v55  ;;  %v5538_v50 = vpack.c.bf16 %v837_v44, %v834_v43  ;;  %v840_v55 = vld [vmem:[#allocation9 + $0x150] sm:$0xff]  ;;  %v5508_v58 = vpack.c.bf16 %v1092_v53, %v1089_v51  ;;  %v818_v43 = vld [vmem:[#allocation9 + $0xa0] sm:$0xff]  ;;  %v873_v51 = vld [vmem:[#allocation9 + $0x258] sm:$0xff] }
 0x1ee   : > { %5483 = vmatpush3.bf16.msra.mxu1 %v5480_v46  ;;  %1347 = vmatprep.mubr.f32.mxu1 %v1115_v62  ;;  %v841_v46 = vld [vmem:[#allocation9 + $0x158] sm:$0xff]  ;;  %v5542_v59 = vpack.c.bf16 %v843_v56, %v840_v55  ;;  %v851_v62 = vld [vmem:[#allocation9 + $0x1a8] sm:$0xff]  ;;  %v860_v22 = vld [vmem:[#allocation9 + $0x1f0] sm:$0xff] }
 0x1ef   : > { %5485 = vmatprep.subr.bf16.mxu1 %v5484_v60  ;;  %1195 = vmatmul.mubr.f32.gmra.mrb[2].mxu0 %v1113_v10  ;;  %v5540_v54 = vpack.c.bf16 %v844_v48, %v841_v46  ;;  %v812_v32 = vld [vmem:[#allocation9 + $0x70] sm:$0xff]  ;;  %v875_v48 = vld [vmem:[#allocation9 + $0x268] sm:$0xff]  ;;  %v830_v7 = vld [vmem:[#allocation9 + $0x100] sm:$0xff] }
 0x1f0   : > { %5519 = vmatpush1.bf16.msra.mxu0 %v5518_v63  ;;  %1492 = vmatprep.mubr.f32.mxu0 %v7683_v41  ;;  %v5544_v63 = vpack.c.bf16 %v850_v57, %v847_v52  ;;  %v864_v36 = vld [vmem:[#allocation9 + $0x210] sm:$0xff]  ;;  %v827_v57 = vld [vmem:[#allocation9 + $0xe8] sm:$0xff]  ;;  %v889_v16 = vld [vmem:[#allocation9 + $0x2d8] sm:$0xff] }
 0x1f1   : > { %5521 = vmatprep.subr.bf16.mxu0 %v5520_v4  ;;  %1348 = vmatmul.mubr.f32.gmra.mrb[6].mxu1 %v1113_v10  ;;  %v853_v4 = vld [vmem:[#allocation9 + $0x1b8] sm:$0xff]  ;;  %v5546_v10 = vpack.c.bf16 %v849_v2, %v846_v1  ;;  %v872_v46 = vld [vmem:[#allocation9 + $0x250] sm:$0xff]  ;;  %v879_v1 = vld [vmem:[#allocation9 + $0x288] sm:$0xff] }
 0x1f2   : > { %5487 = vmatpush3.bf16.msra.mxu1 %v5484_v60  ;;  %4859 = vmatprep.mubr.f32.mxu1 %v7644_v3  ;;  %v5532_v3 = vpack.c.bf16 %v832_v28, %v829_v27  ;;  %v848_v60 = vld [vmem:[#allocation9 + $0x190] sm:$0xff]  ;;  %v5548_v12 = vpack.c.bf16 %v856_v5, %v853_v4  ;;  %v861_v27 = vld [vmem:[#allocation9 + $0x1f8] sm:$0xff]  ;;  %v5624_v56 = vpack.c.bf16 %v875_v48, %v872_v46  ;;  %v883_v4 = vld [vmem:[#allocation9 + $0x2a8] sm:$0xff] }
 0x1f3   : > { %5489 = vmatprep.subr.bf16.mxu1 %v5488_v11  ;;  %v5608_v6 = vpack.c.bf16 %v851_v62, %v848_v60  ;;  %v5554_v33 = vpack.c.bf16 %v861_v27, %v858_v26  ;;  %v880_v55 = vld [vmem:[#allocation9 + $0x290] sm:$0xff]  ;;  %v881_v60 = vld [vmem:[#allocation9 + $0x298] sm:$0xff]  ;;  %v886_v5 = vld [vmem:[#allocation9 + $0x2c0] sm:$0xff] }
 0x1f4   : > { %5523 = vmatpush1.bf16.msra.mxu0 %v5522_v9  ;;  %v857_v9 = vld [vmem:[#allocation9 + $0x1d8] sm:$0xff]  ;;  %v824_v52 = vld [vmem:[#allocation9 + $0xd0] sm:$0xff]  ;;  %v891_v27 = vld [vmem:[#allocation9 + $0x2e8] sm:$0xff] }
 0x1f5   : > { %5525 = vmatprep.subr.bf16.mxu0 %v5524_v14  ;;  %v855_v14 = vld [vmem:[#allocation9 + $0x1c8] sm:$0xff]  ;;  %v5626_v2 = vpack.c.bf16 %v827_v57, %v824_v52  ;;  %v892_v17 = vld [vmem:[#allocation9 + $0x2f0] sm:$0xff]  ;;  %v905_v46 = vld [vmem:[#allocation9 + $0x358] sm:$0xff] }
 0x1f6   : > { %5491 = vmatpush3.bf16.msra.mxu1 %v5488_v11  ;;  %v854_v11 = vld [vmem:[#allocation9 + $0x1c0] sm:$0xff]  ;;  %v5550_v21 = vpack.c.bf16 %v855_v14, %v852_v13  ;;  %v885_v14 = vld [vmem:[#allocation9 + $0x2b8] sm:$0xff]  ;;  %v888_v26 = vld [vmem:[#allocation9 + $0x2d0] sm:$0xff] }
 0x1f7   : > { %5493 = vmatprep.subr.bf16.mxu1 %v5492_v19  ;;  %v5612_v18 = vpack.c.bf16 %v857_v9, %v854_v11  ;;  %v884_v11 = vld [vmem:[#allocation9 + $0x2b0] sm:$0xff]  ;;  %v887_v9 = vld [vmem:[#allocation9 + $0x2c8] sm:$0xff]  ;;  %v882_v13 = vld [vmem:[#allocation9 + $0x2a0] sm:$0xff] }
 0x1f8   : > { %5527 = vmatpush1.bf16.msra.mxu0 %v5526_v20  ;;  %v809_v20 = vld [vmem:[#allocation9 + $0x58] sm:$0xff]  ;;  %v911_v52 = vld [vmem:[#allocation9 + $0x388] sm:$0xff] }
 0x1f9   : > { %5529 = vmatprep.subr.bf16.mxu0 %v5528_v23  ;;  %v863_v23 = vld [vmem:[#allocation9 + $0x208] sm:$0xff] }
 0x1fa   : > { %5495 = vmatpush3.bf16.msra.mxu1 %v5492_v19  ;;  %v806_v19 = vld [vmem:[#allocation9 + $0x40] sm:$0xff]  ;;  %v5616_v31 = vpack.c.bf16 %v863_v23, %v860_v22  ;;  %v893_v23 = vld [vmem:[#allocation9 + $0x2f8] sm:$0xff] }
 0x1fb   : > { %5497 = vmatprep.subr.bf16.mxu1 %v5496_v29  ;;  %v5614_v28 = vpack.c.bf16 %v809_v20, %v806_v19  ;;  %v836_v19 = vld [vmem:[#allocation9 + $0x130] sm:$0xff]  ;;  %v839_v20 = vld [vmem:[#allocation9 + $0x148] sm:$0xff]  ;;  %v890_v22 = vld [vmem:[#allocation9 + $0x2e0] sm:$0xff] }
 0x1fc   : > { %5531 = vmatpush1.bf16.msra.mxu0 %v5530_v30  ;;  %v868_v30 = vld [vmem:[#allocation9 + $0x230] sm:$0xff] }
 0x1fd   : > { %5533 = vmatprep.subr.bf16.mxu0 %v5532_v3  ;;  %v815_v3 = vld [vmem:[#allocation9 + $0x88] sm:$0xff] }
 0x1fe   : > { %5499 = vmatpush3.bf16.msra.mxu1 %v5496_v29  ;;  %v865_v29 = vld [vmem:[#allocation9 + $0x218] sm:$0xff] }
 0x1ff   : > { %5501 = vmatprep.subr.bf16.mxu1 %v5500_v37 }
 0x200   : > { %5535 = vmatpush1.bf16.msra.mxu0 %v5534_v38  ;;  %v5618_v38 = vpack.c.bf16 %v815_v3, %v812_v32  ;;  %v842_v32 = vld [vmem:[#allocation9 + $0x160] sm:$0xff]  ;;  %v845_v3 = vld [vmem:[#allocation9 + $0x178] sm:$0xff] }
 0x201   : > { %5537 = vmatprep.subr.bf16.mxu0 %v5536_v42  ;;  %v5620_v42 = vpack.c.bf16 %v869_v35, %v866_v34  ;;  %v896_v34 = vld [vmem:[#allocation9 + $0x310] sm:$0xff]  ;;  %v899_v35 = vld [vmem:[#allocation9 + $0x328] sm:$0xff] }
 0x202   : > { %5503 = vmatpush3.bf16.msra.mxu1 %v5500_v37  ;;  %v867_v37 = vld [vmem:[#allocation9 + $0x228] sm:$0xff] }
 0x203   : > { %5505 = vmatprep.subr.bf16.mxu1 %v5504_v49  ;;  %v5558_v44 = vpack.c.bf16 %v867_v37, %v864_v36  ;;  %v894_v36 = vld [vmem:[#allocation9 + $0x300] sm:$0xff]  ;;  %v897_v37 = vld [vmem:[#allocation9 + $0x318] sm:$0xff] }
 0x204   : > { %5539 = vmatpush1.bf16.msra.mxu0 %v5538_v50  ;;  %v870_v50 = vld [vmem:[#allocation9 + $0x240] sm:$0xff] }
 0x205   : > { %5541 = vmatprep.subr.bf16.mxu0 %v5540_v54  ;;  %v877_v54 = vld [vmem:[#allocation9 + $0x278] sm:$0xff] }
 0x206   : > { %5507 = vmatpush3.bf16.msra.mxu1 %v5504_v49  ;;  %v5560_v49 = vpack.c.bf16 %v874_v40, %v871_v39  ;;  %v5564_v62 = vpack.c.bf16 %v880_v55, %v877_v54  ;;  %v901_v39 = vld [vmem:[#allocation9 + $0x338] sm:$0xff]  ;;  %v904_v40 = vld [vmem:[#allocation9 + $0x350] sm:$0xff] }
 0x207   : > { %5509 = vmatprep.subr.bf16.mxu1 %v5508_v58  ;;  %v5580_v48 = vpack.c.bf16 %v904_v40, %v901_v39  ;;  %v938_v39 = vld [vmem:[#allocation9 + $0x460] sm:$0xff]  ;;  %v941_v40 = vld [vmem:[#allocation9 + $0x478] sm:$0xff] }
 0x208   : > { %5543 = vmatpush1.bf16.msra.mxu0 %v5542_v59  ;;  %v878_v59 = vld [vmem:[#allocation9 + $0x280] sm:$0xff] }
 0x209   : > { %5545 = vmatprep.subr.bf16.mxu0 %v5544_v63  ;;  %v876_v63 = vld [vmem:[#allocation9 + $0x270] sm:$0xff] }
 0x20a   : > { %5511 = vmatpush3.bf16.msra.mxu1 %v5508_v58  ;;  %v5562_v58 = vpack.c.bf16 %v873_v51, %v870_v50  ;;  %v903_v50 = vld [vmem:[#allocation9 + $0x348] sm:$0xff] }
 0x20b   : > { %5609 = vmatprep.subr.bf16.mxu1 %v5608_v6  ;;  %v5628_v6 = vpack.c.bf16 %v881_v60, %v878_v59  ;;  %v907_v51 = vld [vmem:[#allocation9 + $0x368] sm:$0xff]  ;;  %v909_v59 = vld [vmem:[#allocation9 + $0x378] sm:$0xff] }
 0x20c   : > { %5547 = vmatpush1.bf16.msra.mxu0 %v5546_v10  ;;  %v5566_v10 = vpack.c.bf16 %v879_v1, %v876_v63  ;;  %v913_v60 = vld [vmem:[#allocation9 + $0x398] sm:$0xff]  ;;  %v7691_v1 = vld [vmem:[#allocation2 + $0x10] sm:$0xff] }
 0x20d   : > { %4860 = vmatmul.mubr.f32.vlgmr.msra.gmra.mrb[8].mxu1 %v7662_v47  ;;  %5549 = vmatprep.subr.bf16.mxu0 %v5548_v12  ;;  %v5556_v47 = vpack.c.bf16 %v868_v30, %v865_v29  ;;  %v5568_v12 = vpack.c.bf16 %v886_v5, %v883_v4  ;;  %v895_v29 = vld [vmem:[#allocation9 + $0x308] sm:$0xff]  ;;  %v898_v30 = vld [vmem:[#allocation9 + $0x320] sm:$0xff]  ;;  %v917_v5 = vld [vmem:[#allocation9 + $0x3b8] sm:$0xff] }
 0x20e   : > { %5611 = vmatpush3.bf16.msra.mxu1 %v5610_v15  ;;  %1646 = vmatprep.mubr.f32.mxu1 %v7683_v41  ;;  %v821_v41 = vld [vmem:[#allocation9 + $0xb8] sm:$0xff]  ;;  %v5630_v15 = vpack.c.bf16 %v833_v8, %v830_v7  ;;  %v914_v4 = vld [vmem:[#allocation9 + $0x3a0] sm:$0xff]  ;;  %v912_v7 = vld [vmem:[#allocation9 + $0x390] sm:$0xff] }
 0x20f   : > { %5613 = vmatprep.subr.bf16.mxu1 %v5612_v18  ;;  %v5622_v53 = vpack.c.bf16 %v821_v41, %v818_v43  ;;  %v5632_v18 = vpack.c.bf16 %v887_v9, %v884_v11  ;;  %v792_v43 = vld [vmem:[#allocation2] sm:$0xff]  ;;  %v5578_v41 = vpack.c.bf16 %v897_v37, %v894_v36  ;;  %v915_v8 = vld [vmem:[#allocation9 + $0x3a8] sm:$0xff]  ;;  %v922_v11 = vld [vmem:[#allocation9 + $0x3e0] sm:$0xff]  ;;  %v5652_v9 = vpack.c.bf16 %v917_v5, %v914_v4 }
 0x210   : > { %5551 = vmatpush1.bf16.msra.mxu0 %v5550_v21  ;;  %v5570_v21 = vpack.c.bf16 %v885_v14, %v882_v13  ;;  %v920_v13 = vld [vmem:[#allocation9 + $0x3d0] sm:$0xff]  ;;  %v923_v14 = vld [vmem:[#allocation9 + $0x3e8] sm:$0xff]  ;;  %v1795_v4 = vld [vmem:[#allocation9 + $0xac0] sm:$0xff] }
 0x211   : > { %5553 = vmatprep.subr.bf16.mxu0 %v5552_v24  ;;  %v5572_v24 = vpack.c.bf16 %v892_v17, %v889_v16  ;;  %v918_v16 = vld [vmem:[#allocation9 + $0x3c0] sm:$0xff]  ;;  %v921_v17 = vld [vmem:[#allocation9 + $0x3d8] sm:$0xff]  ;;  %v940_v36 = vld [vmem:[#allocation9 + $0x470] sm:$0xff] }
 0x212   : > { %5615 = vmatpush3.bf16.msra.mxu1 %v5614_v28  ;;  %v5634_v28 = vpack.c.bf16 %v839_v20, %v836_v19  ;;  %v928_v19 = vld [vmem:[#allocation9 + $0x410] sm:$0xff]  ;;  %v5656_v20 = vpack.c.bf16 %v923_v14, %v920_v13  ;;  %v1798_v5 = vld [vmem:[#allocation9 + $0xad8] sm:$0xff]  ;;  %v1747_v13 = vld [vmem:[#allocation9 + $0x940] sm:$0xff] }
 0x213   : > { %5617 = vmatprep.subr.bf16.mxu1 %v5616_v31  ;;  %v5636_v31 = vpack.c.bf16 %v893_v23, %v890_v22  ;;  %v926_v22 = vld [vmem:[#allocation9 + $0x400] sm:$0xff]  ;;  %v929_v23 = vld [vmem:[#allocation9 + $0x418] sm:$0xff] }
 0x214   : > { %5555 = vmatpush1.bf16.msra.mxu0 %v5554_v33  ;;  %v5574_v33 = vpack.c.bf16 %v891_v27, %v888_v26  ;;  %v924_v26 = vld [vmem:[#allocation9 + $0x3f0] sm:$0xff]  ;;  %v927_v27 = vld [vmem:[#allocation9 + $0x408] sm:$0xff]  ;;  %v1750_v14 = vld [vmem:[#allocation9 + $0x958] sm:$0xff] }
 0x215   : > { %5557 = vmatprep.subr.bf16.mxu0 %v5556_v47  ;;  %v5576_v47 = vpack.c.bf16 %v898_v30, %v895_v29  ;;  %v934_v29 = vld [vmem:[#allocation9 + $0x440] sm:$0xff]  ;;  %v5660_v30 = vpack.c.bf16 %v929_v23, %v926_v22  ;;  %v1758_v22 = vld [vmem:[#allocation9 + $0x998] sm:$0xff]  ;;  %v1761_v23 = vld [vmem:[#allocation9 + $0x9b0] sm:$0xff] }
 0x216   : > { %5619 = vmatpush3.bf16.msra.mxu1 %v5618_v38  ;;  %v5638_v38 = vpack.c.bf16 %v845_v3, %v842_v32  ;;  %v932_v32 = vld [vmem:[#allocation9 + $0x430] sm:$0xff]  ;;  %v935_v3 = vld [vmem:[#allocation9 + $0x448] sm:$0xff] }
 0x217   : > { %5621 = vmatprep.subr.bf16.mxu1 %v5620_v42  ;;  %v5640_v42 = vpack.c.bf16 %v899_v35, %v896_v34  ;;  %v930_v34 = vld [vmem:[#allocation9 + $0x420] sm:$0xff]  ;;  %v933_v35 = vld [vmem:[#allocation9 + $0x438] sm:$0xff]  ;;  %v5664_v37 = vpack.c.bf16 %v935_v3, %v932_v32  ;;  %v1757_v32 = vld [vmem:[#allocation9 + $0x990] sm:$0xff] }
 0x218   : > { %5559 = vmatpush1.bf16.msra.mxu0 %v5558_v44  ;;  %v902_v44 = vld [vmem:[#allocation9 + $0x340] sm:$0xff]  ;;  %v1760_v3 = vld [vmem:[#allocation9 + $0x9a8] sm:$0xff] }
 0x219   : > { %5561 = vmatprep.subr.bf16.mxu0 %v5560_v49  ;;  %v900_v49 = vld [vmem:[#allocation9 + $0x330] sm:$0xff]  ;;  %v5644_v54 = vpack.c.bf16 %v905_v46, %v902_v44  ;;  %v1740_v44 = vld [vmem:[#allocation9 + $0x908] sm:$0xff]  ;;  %v1743_v46 = vld [vmem:[#allocation9 + $0x920] sm:$0xff] }
 0x21a   : > { %5623 = vmatpush3.bf16.msra.mxu1 %v5622_v53  ;;  %v910_v53 = vld [vmem:[#allocation9 + $0x380] sm:$0xff]  ;;  %v5582_v55 = vpack.c.bf16 %v903_v50, %v900_v49  ;;  %v1789_v50 = vld [vmem:[#allocation9 + $0xa90] sm:$0xff] }
 0x21b   : > { %5625 = vmatprep.subr.bf16.mxu1 %v5624_v56  ;;  %v908_v56 = vld [vmem:[#allocation9 + $0x370] sm:$0xff]  ;;  %v5584_v57 = vpack.c.bf16 %v910_v53, %v907_v51  ;;  %v1792_v51 = vld [vmem:[#allocation9 + $0xaa8] sm:$0xff]  ;;  %v1733_v53 = vld [vmem:[#allocation2 + $0x8] sm:$0xfc] }
 0x21c   : > { %5563 = vmatpush1.bf16.msra.mxu0 %v5562_v58  ;;  %v906_v58 = vld [vmem:[#allocation9 + $0x360] sm:$0xff]  ;;  %v5648_v63 = vpack.c.bf16 %v911_v52, %v908_v56  ;;  %v1742_v56 = vld [vmem:[#allocation9 + $0x918] sm:$0xff] }
 0x21d   : > { %5565 = vmatprep.subr.bf16.mxu0 %v5564_v62  ;;  %v916_v62 = vld [vmem:[#allocation9 + $0x3b0] sm:$0xff]  ;;  %v1746_v52 = vld [vmem:[#allocation9 + $0x938] sm:$0xff] }
 0x21e   : > { %5627 = vmatpush3.bf16.msra.mxu1 %v5626_v2  ;;  %v5586_v2 = vpack.c.bf16 %v909_v59, %v906_v58  ;;  %v5768_v58 = vpack.c.bf16 %v1792_v51, %v1789_v50  ;;  %v1741_v59 = vld [vmem:[#allocation9 + $0x910] sm:$0xff]  ;;  %v1768_v51 = vld [vmem:[#allocation9 + $0x9e8] sm:$0xff] }
 0x21f   : > { %5629 = vmatprep.subr.bf16.mxu1 %v5628_v6  ;;  %v5588_v6 = vpack.c.bf16 %v916_v62, %v913_v60  ;;  %v1744_v60 = vld [vmem:[#allocation9 + $0x928] sm:$0xff]  ;;  %v1893_v62 = vrot.slane %v1733_v53, 2  ;;  %v1765_v50 = vld [vmem:[#allocation9 + $0x9d0] sm:$0xff] }
 0x220   : > { %5567 = vmatpush1.bf16.msra.mxu0 %v5566_v10  ;;  %v919_v10 = vld [vmem:[#allocation9 + $0x3c8] sm:$0xff] }
 0x221   : > { %5569 = vmatprep.subr.bf16.mxu0 %v5568_v12  ;;  %v5590_v12 = vpack.c.bf16 %v915_v8, %v912_v7  ;;  %v1745_v7 = vld [vmem:[#allocation9 + $0x930] sm:$0xff]  ;;  %v1748_v8 = vld [vmem:[#allocation9 + $0x948] sm:$0xff] }
 0x222   : > { %5631 = vmatpush3.bf16.msra.mxu1 %v5630_v15  ;;  %v5592_v15 = vpack.c.bf16 %v922_v11, %v919_v10  ;;  %v5770_v10 = vpack.c.bf16 %v1744_v60, %v1741_v59  ;;  %v1752_v11 = vld [vmem:[#allocation9 + $0x968] sm:$0xff]  ;;  %v1779_v60 = vld [vmem:[#allocation9 + $0xa40] sm:$0xff] }
 0x223   : > { %5633 = vmatprep.subr.bf16.mxu1 %v5632_v18  ;;  %v925_v18 = vld [vmem:[#allocation9 + $0x3f8] sm:$0xff]  ;;  %v1776_v59 = vld [vmem:[#allocation9 + $0xa28] sm:$0xff] }
 0x224   : > { %5571 = vmatpush1.bf16.msra.mxu0 %v5570_v21  ;;  %v5594_v21 = vpack.c.bf16 %v921_v17, %v918_v16  ;;  %v5678_v16 = vpack.c.bf16 %v1748_v8, %v1745_v7  ;;  %v1801_v17 = vld [vmem:[#allocation9 + $0xaf0] sm:$0xff]  ;;  %v1828_v7 = vld [vmem:[#allocation9 + $0xbc8] sm:$0xff]  ;;  %v5696_v8 = vpack.c.bf16 %v1779_v60, %v1776_v59 }
 0x225   : > { %5573 = vmatprep.subr.bf16.mxu0 %v5572_v24  ;;  %v5596_v24 = vpack.c.bf16 %v928_v19, %v925_v18  ;;  %v1804_v18 = vld [vmem:[#allocation9 + $0xb08] sm:$0xff]  ;;  %v1849_v60 = vld [vmem:[#allocation9 + $0xc70] sm:$0xff] }
 0x226   : > { %5635 = vmatpush3.bf16.msra.mxu1 %v5634_v28  ;;  %v931_v28 = vld [vmem:[#allocation9 + $0x428] sm:$0xff] }
 0x227   : > { %5637 = vmatprep.subr.bf16.mxu1 %v5636_v31  ;;  %v5598_v31 = vpack.c.bf16 %v927_v27, %v924_v26  ;;  %v1753_v26 = vld [vmem:[#allocation9 + $0x970] sm:$0xff]  ;;  %v1756_v27 = vld [vmem:[#allocation9 + $0x988] sm:$0xff] }
 0x228   : > { %5575 = vmatpush1.bf16.msra.mxu0 %v5574_v33  ;;  %v5600_v33 = vpack.c.bf16 %v934_v29, %v931_v28  ;;  %v1807_v29 = vld [vmem:[#allocation9 + $0xb20] sm:$0xff] }
 0x229   : > { %5577 = vmatprep.subr.bf16.mxu0 %v5576_v47  ;;  %v937_v47 = vld [vmem:[#allocation9 + $0x458] sm:$0xff] }
 0x22a   : > { %5639 = vmatpush3.bf16.msra.mxu1 %v5638_v38  ;;  %v5602_v38 = vpack.c.bf16 %v933_v35, %v930_v34  ;;  %v1764_v34 = vld [vmem:[#allocation9 + $0x9c8] sm:$0xff]  ;;  %v1767_v35 = vld [vmem:[#allocation9 + $0x9e0] sm:$0xff] }
 0x22b   : > { %5641 = vmatprep.subr.bf16.mxu1 %v5640_v42  ;;  %1493 = vmatmul.mubr.f32.vlgmr.msra.gmra.mrb[4].mxu0 %v792_v43 }
 0x22c   : > { %5579 = vmatpush1.bf16.msra.mxu0 %v5578_v41  ;;  %1498 = vmatprep.mubr.f32.mxu0 %v7667_v61  ;;  %v939_v41 = vld [vmem:[#allocation9 + $0x468] sm:$0xff] }
 0x22d   : > { %1647 = vmatmul.mubr.f32.vlgmr.msra.gmra.mrb[10].mxu1 %v792_v43  ;;  %5581 = vmatprep.subr.bf16.mxu0 %v5580_v48  ;;  %v936_v43 = vld [vmem:[#allocation9 + $0x450] sm:$0xff]  ;;  %v5668_v48 = vpack.c.bf16 %v941_v40, %v938_v39  ;;  %v1816_v40 = vld [vmem:[#allocation9 + $0xb68] sm:$0xff] }
 0x22e   : > { %5643 = vmatpush3.bf16.msra.mxu1 %v5640_v42  ;;  %1651 = vmatprep.mubr.f32.mxu1 %v7667_v61  ;;  %v5604_v42 = vpack.c.bf16 %v940_v36, %v937_v47  ;;  %v5606_v49 = vpack.c.bf16 %v939_v41, %v936_v43  ;;  %v1759_v36 = vld [vmem:[#allocation9 + $0x9a0] sm:$0xff]  ;;  %v1813_v39 = vld [vmem:[#allocation9 + $0xb50] sm:$0xff]  ;;  %v1766_v41 = vld [vmem:[#allocation9 + $0x9d8] sm:$0xff] }
 0x22f   : > { %5645 = vmatprep.subr.bf16.mxu1 %v5644_v54  ;;  %1499 = vmatmul.mubr.f32.gmra.mrb[6].mxu0 %v7674_v25  ;;  %v1763_v43 = vld [vmem:[#allocation9 + $0x9c0] sm:$0xff] }
 0x230   : > { %5583 = vmatpush1.bf16.msra.mxu0 %v5582_v55  ;;  %1569 = vmatprep.mubr.f32.mxu0 %v7081_v0  ;;  %v1739_v55 = vld [vmem:[#allocation9 + $0x900] sm:$0xff]  ;;  %v5690_v53 = vpack.c.bf16 %v1766_v41, %v1763_v43  ;;  %v1735_v43 = vld [vmem:[#allocation2 + $0x30] sm:$0x3] }
 0x231   : > { %5585 = vmatprep.subr.bf16.mxu0 %v5584_v57  ;;  %1652 = vmatmul.mubr.f32.gmra.mrb[12].mxu1 %v7674_v25  ;;  %v1749_v57 = vld [vmem:[#allocation9 + $0x950] sm:$0xff] }
 0x232   : > { %5647 = vmatpush3.bf16.msra.mxu1 %v5644_v54  ;;  %4894 = vmatprep.mubr.f32.mxu1 %v7691_v1  ;;  %v5672_v54 = vpack.c.bf16 %v1743_v46, %v1740_v44  ;;  %v1770_v46 = vld [vmem:[#allocation9 + $0x9f8] sm:$0xff] }
 0x233   : > { %5649 = vmatprep.subr.bf16.mxu1 %v5648_v63 }
 0x234   : > { %5587 = vmatpush1.bf16.msra.mxu0 %v5586_v2  ;;  %v5674_v2 = vpack.c.bf16 %v1742_v56, %v1739_v55  ;;  %v1822_v55 = vld [vmem:[#allocation9 + $0xb98] sm:$0xff] }
 0x235   : > { %5589 = vmatprep.subr.bf16.mxu0 %v5588_v6  ;;  %v5676_v6 = vpack.c.bf16 %v1749_v57, %v1746_v52  ;;  %v1769_v52 = vld [vmem:[#allocation9 + $0x9f0] sm:$0xff]  ;;  %v1772_v57 = vld [vmem:[#allocation9 + $0xa08] sm:$0xff] }
 0x236   : > { %5651 = vmatpush3.bf16.msra.mxu1 %v5648_v63  ;;  %v1894_v63 = vrot.slane %v7667_v61, 2 }
 0x237   : > { %5653 = vmatprep.subr.bf16.mxu1 %v5652_v9 }
 0x238   : > { %5591 = vmatpush1.bf16.msra.mxu0 %v5590_v12  ;;  %v5772_v12 = vpack.c.bf16 %v1798_v5, %v1795_v4  ;;  %v1774_v4 = vld [vmem:[#allocation9 + $0xa18] sm:$0xff]  ;;  %v5694_v5 = vpack.c.bf16 %v1772_v57, %v1769_v52 }
 0x239   : > { %5593 = vmatprep.subr.bf16.mxu0 %v5592_v15  ;;  %v1895_v15 = vsel %vm1889_vm2, %v1893_v62, %v1894_v63 }
 0x23a   : > { %5655 = vmatpush3.bf16.msra.mxu1 %v5652_v9  ;;  %v1755_v9 = vld [vmem:[#allocation9 + $0x980] sm:$0xff] }
 0x23b   : > { %5657 = vmatprep.subr.bf16.mxu1 %v5656_v20  ;;  %v5680_v19 = vpack.c.bf16 %v1755_v9, %v1752_v11  ;;  %v1778_v11 = vld [vmem:[#allocation9 + $0xa38] sm:$0xff] }
 0x23c   : > { %5595 = vmatpush1.bf16.msra.mxu0 %v5594_v21  ;;  %v1754_v21 = vld [vmem:[#allocation9 + $0x978] sm:$0xff] }
 0x23d   : > { %5597 = vmatprep.subr.bf16.mxu0 %v5596_v24  ;;  %v5776_v24 = vpack.c.bf16 %v1804_v18, %v1801_v17  ;;  %v1831_v18 = vld [vmem:[#allocation9 + $0xbe0] sm:$0xff] }
 0x23e   : > { %5659 = vmatpush3.bf16.msra.mxu1 %v5656_v20  ;;  %v1751_v20 = vld [vmem:[#allocation9 + $0x960] sm:$0xff] }
 0x23f   : > { %5661 = vmatprep.subr.bf16.mxu1 %v5660_v30  ;;  %v5682_v28 = vpack.c.bf16 %v1754_v21, %v1751_v20  ;;  %v1781_v21 = vld [vmem:[#allocation9 + $0xa50] sm:$0xff] }
 0x240   : > { %5599 = vmatpush1.bf16.msra.mxu0 %v5598_v31  ;;  %v5684_v31 = vpack.c.bf16 %v1761_v23, %v1758_v22  ;;  %v1788_v23 = vld [vmem:[#allocation9 + $0xa88] sm:$0xff] }
 0x241   : > { %5601 = vmatprep.subr.bf16.mxu0 %v5600_v33  ;;  %v5778_v33 = vpack.c.bf16 %v1756_v27, %v1753_v26  ;;  %v1783_v27 = vld [vmem:[#allocation9 + $0xa60] sm:$0xff] }
 0x242   : > { %5663 = vmatpush3.bf16.msra.mxu1 %v5660_v30  ;;  %v1810_v30 = vld [vmem:[#allocation9 + $0xb38] sm:$0xff] }
 0x243   : > { %5665 = vmatprep.subr.bf16.mxu1 %v5664_v37  ;;  %v5780_v47 = vpack.c.bf16 %v1810_v30, %v1807_v29  ;;  %v1732_v29 = vld [vmem:[#allocation2] sm:$0xfc] }
 0x244   : > { %5603 = vmatpush1.bf16.msra.mxu0 %v5602_v38  ;;  %v5686_v38 = vpack.c.bf16 %v1760_v3, %v1757_v32  ;;  %v1840_v32 = vld [vmem:[#allocation9 + $0xc28] sm:$0xff]  ;;  %v1736_v3 = vld [vmem:[#allocation2 + $0x38] sm:$0x3] }
 0x245   : > { %5605 = vmatprep.subr.bf16.mxu0 %v5604_v42  ;;  %v5688_v42 = vpack.c.bf16 %v1767_v35, %v1764_v34  ;;  %v1787_v34 = vld [vmem:[#allocation9 + $0xa80] sm:$0xff]  ;;  %v1790_v35 = vld [vmem:[#allocation9 + $0xa98] sm:$0xff] }
 0x246   : > { %5667 = vmatpush3.bf16.msra.mxu1 %v5664_v37  ;;  %v1762_v37 = vld [vmem:[#allocation9 + $0x9b8] sm:$0xff]  ;;  %v5706_v41 = vpack.c.bf16 %v1790_v35, %v1787_v34 }
 0x247   : > { %5669 = vmatprep.subr.bf16.mxu1 %v5668_v48  ;;  %v5782_v44 = vpack.c.bf16 %v1762_v37, %v1759_v36  ;;  %v1890_v36 = vrot.slane %v1732_v29, 2  ;;  %v1891_v37 = vrot.slane %v7674_v25, 2  ;;  %v1899_v25 = vrot.slane %v1735_v43, 2  ;;  %v1870_v29 = vld [vmem:[#allocation9 + $0xd18] sm:$0xff] }
 0x248   : > { %5607 = vmatpush1.bf16.msra.mxu0 %v5606_v49  ;;  %v5784_v49 = vpack.c.bf16 %v1816_v40, %v1813_v39  ;;  %v1797_v39 = vld [vmem:[#allocation9 + $0xad0] sm:$0xff] }
 0x249   : > { %5673 = vmatprep.subr.bf16.mxu0 %v5672_v54  ;;  %v1819_v54 = vld [vmem:[#allocation9 + $0xb80] sm:$0xff]  ;;  %v7717_v61 = vsel %vm1889_vm2, %v1891_v37, %v1899_v25 }
 0x24a   : > { %5671 = vmatpush3.bf16.msra.mxu1 %v5668_v48  ;;  %v1773_v48 = vld [vmem:[#allocation9 + $0xa10] sm:$0xff]  ;;  %v5788_v62 = vpack.c.bf16 %v1822_v55, %v1819_v54  ;;  %v1800_v54 = vld [vmem:[#allocation9 + $0xae8] sm:$0xff]  ;;  %v1803_v55 = vld [vmem:[#allocation9 + $0xb00] sm:$0xff] }
 0x24b   : > { %5769 = vmatprep.subr.bf16.mxu1 %v5768_v58  ;;  %1570 = vmatmul.mubr.f32.vlgmr.msra.gmra.mrb[4].mxu0 %v7691_v1  ;;  %v5774_v1 = vpack.c.bf16 %v1750_v14, %v1747_v13  ;;  %v5692_v56 = vpack.c.bf16 %v1773_v48, %v1770_v46  ;;  %v5786_v58 = vpack.c.bf16 %v1768_v51, %v1765_v50  ;;  %v1785_v13 = vld [vmem:[#allocation9 + $0xa70] sm:$0xff]  ;;  %v1846_v46 = vld [vmem:[#allocation9 + $0xc58] sm:$0xff]  ;;  %v1734_v48 = vld [vmem:[#allocation2 + $0x10] sm:$0xfc] }
 0x24c   : > { %5675 = vmatpush1.bf16.msra.mxu0 %v5674_v2  ;;  %1575 = vmatprep.mubr.f32.mxu0 %v7081_v0  ;;  %v1771_v2 = vld [vmem:[#allocation9 + $0xa00] sm:$0xff]  ;;  %v1793_v50 = vld [vmem:[#allocation9 + $0xab0] sm:$0xff]  ;;  %v1796_v51 = vld [vmem:[#allocation9 + $0xac8] sm:$0xff]  ;;  %v1896_v57 = vrot.slane %v1734_v48, 2 }
 0x24d   : > { %4895 = vmatmul.mubr.f32.vlgmr.msra.gmra.mrb[8].mxu1 %v7638_v45  ;;  %5677 = vmatprep.subr.bf16.mxu0 %v5676_v6  ;;  %v1825_v6 = vld [vmem:[#allocation9 + $0xbb0] sm:$0xff]  ;;  %v5790_v9 = vpack.c.bf16 %v1774_v4, %v1771_v2  ;;  %v5710_v59 = vpack.c.bf16 %v1796_v51, %v1793_v50  ;;  %v5712_v2 = vpack.c.bf16 %v1803_v55, %v1800_v54  ;;  %v1799_v4 = vld [vmem:[#allocation9 + $0xae0] sm:$0xff]  ;;  %v1832_v50 = vld [vmem:[#allocation9 + $0xbe8] sm:$0xff] }
 0x24e   : > { %5771 = vmatpush3.bf16.msra.mxu1 %v5770_v10  ;;  %2129 = vmatprep.mubr.f32.mxu1 %v1895_v15  ;;  %v1775_v10 = vld [vmem:[#allocation9 + $0xa20] sm:$0xff]  ;;  %v5792_v14 = vpack.c.bf16 %v1828_v7, %v1825_v6  ;;  %v1809_v6 = vld [vmem:[#allocation9 + $0xb30] sm:$0xff]  ;;  %v1836_v51 = vld [vmem:[#allocation9 + $0xc08] sm:$0xff] }
 0x24f   : > { %5773 = vmatprep.subr.bf16.mxu1 %v5772_v12  ;;  %1576 = vmatmul.mubr.f32.gmra.mrb[6].mxu0 %v7638_v45  ;;  %v1782_v12 = vld [vmem:[#allocation9 + $0xa58] sm:$0xff]  ;;  %v5698_v17 = vpack.c.bf16 %v1778_v11, %v1775_v10  ;;  %v1855_v11 = vld [vmem:[#allocation9 + $0xca0] sm:$0xff] }
 0x250   : > { %5679 = vmatpush1.bf16.msra.mxu0 %v5678_v16  ;;  %1975 = vmatprep.mubr.f32.mxu0 %v1895_v15  ;;  %v1777_v15 = vld [vmem:[#allocation9 + $0xa30] sm:$0xff]  ;;  %v1780_v16 = vld [vmem:[#allocation9 + $0xa48] sm:$0xff]  ;;  %v5700_v20 = vpack.c.bf16 %v1785_v13, %v1782_v12  ;;  %v1839_v25 = vld [vmem:[#allocation9 + $0xc20] sm:$0xff] }
 0x251   : > { %5681 = vmatprep.subr.bf16.mxu0 %v5680_v19  ;;  %v1834_v19 = vld [vmem:[#allocation9 + $0xbf8] sm:$0xff]  ;;  %v5794_v22 = vpack.c.bf16 %v1780_v16, %v1777_v15  ;;  %v1805_v13 = vld [vmem:[#allocation9 + $0xb10] sm:$0xff]  ;;  %v1812_v15 = vld [vmem:[#allocation9 + $0xb48] sm:$0xff] }
 0x252   : > { %5775 = vmatpush3.bf16.msra.mxu1 %v5774_v1  ;;  %v1784_v1 = vld [vmem:[#allocation9 + $0xa68] sm:$0xff]  ;;  %v5796_v26 = vpack.c.bf16 %v1834_v19, %v1831_v18  ;;  %v1815_v16 = vld [vmem:[#allocation9 + $0xb60] sm:$0xff]  ;;  %v1861_v19 = vld [vmem:[#allocation9 + $0xcd0] sm:$0xff] }
 0x253   : > { %5777 = vmatprep.subr.bf16.mxu1 %v5776_v24  ;;  %v1791_v24 = vld [vmem:[#allocation9 + $0xaa0] sm:$0xff]  ;;  %v5702_v30 = vpack.c.bf16 %v1784_v1, %v1781_v21  ;;  %v5720_v21 = vpack.c.bf16 %v1815_v16, %v1812_v15  ;;  %v1737_v55 = vld [vmem:[#allocation2 + $0x40] sm:$0x3] }
 0x254   : > { %5683 = vmatpush1.bf16.msra.mxu0 %v5682_v28  ;;  %v1786_v28 = vld [vmem:[#allocation9 + $0xa78] sm:$0xff]  ;;  %v1811_v1 = vld [vmem:[#allocation9 + $0xb40] sm:$0xff] }
 0x255   : > { %5685 = vmatprep.subr.bf16.mxu0 %v5684_v31  ;;  %v1837_v31 = vld [vmem:[#allocation9 + $0xc10] sm:$0xff]  ;;  %v1850_v15 = vld [vmem:[#allocation9 + $0xc78] sm:$0xff] }
 0x256   : > { %5779 = vmatpush3.bf16.msra.mxu1 %v5778_v33  ;;  %v5704_v33 = vpack.c.bf16 %v1791_v24, %v1788_v23  ;;  %v5800_v40 = vpack.c.bf16 %v1840_v32, %v1837_v31  ;;  %v1818_v23 = vld [vmem:[#allocation9 + $0xb78] sm:$0xff]  ;;  %v1821_v24 = vld [vmem:[#allocation9 + $0xb90] sm:$0xff]  ;;  %v1820_v32 = vld [vmem:[#allocation9 + $0xb88] sm:$0xff] }
 0x257   : > { %5781 = vmatprep.subr.bf16.mxu1 %v5780_v47  ;;  %v5798_v47 = vpack.c.bf16 %v1786_v28, %v1783_v27  ;;  %v1867_v28 = vld [vmem:[#allocation9 + $0xd00] sm:$0xff]  ;;  %v1817_v31 = vld [vmem:[#allocation9 + $0xb70] sm:$0xff]  ;;  %v1854_v16 = vld [vmem:[#allocation9 + $0xc98] sm:$0xff] }
 0x258   : > { %5687 = vmatpush1.bf16.msra.mxu0 %v5686_v38  ;;  %v1794_v38 = vld [vmem:[#allocation9 + $0xab8] sm:$0xff]  ;;  %v5820_v34 = vpack.c.bf16 %v1870_v29, %v1867_v28  ;;  %v5726_v35 = vpack.c.bf16 %v1820_v32, %v1817_v31  ;;  %v1868_v28 = vld [vmem:[#allocation9 + $0xd08] sm:$0xff] }
 0x259   : > { %5689 = vmatprep.subr.bf16.mxu0 %v5688_v42  ;;  %v1901_v42 = vrot.slane %v1736_v3, 2  ;;  %v1824_v3 = vld [vmem:[#allocation9 + $0xba8] sm:$0xff] }
 0x25a   : > { %5783 = vmatpush3.bf16.msra.mxu1 %v5782_v44  ;;  %v1843_v44 = vld [vmem:[#allocation9 + $0xc40] sm:$0xff]  ;;  %v1872_v29 = vld [vmem:[#allocation9 + $0xd28] sm:$0xff] }
 0x25b   : > { %5785 = vmatprep.subr.bf16.mxu1 %v5784_v49  ;;  %v5708_v49 = vpack.c.bf16 %v1797_v39, %v1794_v38  ;;  %v5804_v52 = vpack.c.bf16 %v1846_v46, %v1843_v44  ;;  %v1823_v38 = vld [vmem:[#allocation9 + $0xba0] sm:$0xff]  ;;  %v1826_v39 = vld [vmem:[#allocation9 + $0xbb8] sm:$0xff] }
 0x25c   : > { %5691 = vmatpush1.bf16.msra.mxu0 %v5690_v53  ;;  %v7706_v53 = vsel %vm1889_vm2, %v1890_v36, %v1891_v37  ;;  %v1876_v36 = vld [vmem:[#allocation9 + $0xd48] sm:$0xff]  ;;  %v1879_v44 = vld [vmem:[#allocation9 + $0xd60] sm:$0xff]  ;;  %v1882_v46 = vld [vmem:[#allocation9 + $0xd78] sm:$0xff] }
 0x25d   : > { %5693 = vmatprep.subr.bf16.mxu0 %v5692_v56  ;;  %v7711_v56 = vsel %vm1889_vm2, %v1894_v63, %v1901_v42  ;;  %v1806_v63 = vld [vmem:[#allocation9 + $0xb18] sm:$0xff]  ;;  %v1833_v42 = vld [vmem:[#allocation9 + $0xbf0] sm:$0xff]  ;;  %v5828_v54 = vpack.c.bf16 %v1882_v46, %v1879_v44 }
 0x25e   : > { %5787 = vmatpush3.bf16.msra.mxu1 %v5786_v58  ;;  %v1897_v58 = vrot.slane %v7638_v45, 2  ;;  %v5716_v12 = vpack.c.bf16 %v1809_v6, %v1806_v63  ;;  %v1841_v6 = vld [vmem:[#allocation9 + $0xc30] sm:$0xff] }
 0x25f   : > { %5789 = vmatprep.subr.bf16.mxu1 %v5788_v62  ;;  %v1852_v62 = vld [vmem:[#allocation9 + $0xc88] sm:$0xff] }
 0x260   : > { %5695 = vmatpush1.bf16.msra.mxu0 %v5694_v5  ;;  %v1802_v5 = vld [vmem:[#allocation9 + $0xaf8] sm:$0xff]  ;;  %v5808_v7 = vpack.c.bf16 %v1852_v62, %v1849_v60  ;;  %v1903_v62 = vrot.slane %v1737_v55, 2 }
 0x261   : > { %5697 = vmatprep.subr.bf16.mxu0 %v5696_v8  ;;  %v7722_v8 = vsel %vm1889_vm2, %v1896_v57, %v1897_v58  ;;  %v5714_v10 = vpack.c.bf16 %v1802_v5, %v1799_v4  ;;  %v5736_v57 = vpack.c.bf16 %v1839_v25, %v1836_v51  ;;  %v1838_v60 = vld [vmem:[#allocation9 + $0xc18] sm:$0xff]  ;;  %v1845_v4 = vld [vmem:[#allocation9 + $0xc50] sm:$0xff] }
 0x262   : > { %5791 = vmatpush3.bf16.msra.mxu1 %v5790_v9  ;;  %v1858_v9 = vld [vmem:[#allocation9 + $0xcb8] sm:$0xff] }
 0x263   : > { %5793 = vmatprep.subr.bf16.mxu1 %v5792_v14  ;;  %v1808_v14 = vld [vmem:[#allocation9 + $0xb28] sm:$0xff] }
 0x264   : > { %5699 = vmatpush1.bf16.msra.mxu0 %v5698_v17  ;;  %v5812_v17 = vpack.c.bf16 %v1858_v9, %v1855_v11  ;;  %v5718_v18 = vpack.c.bf16 %v1808_v14, %v1805_v13  ;;  %v1848_v11 = vld [vmem:[#allocation9 + $0xc68] sm:$0xff]  ;;  %v1851_v9 = vld [vmem:[#allocation9 + $0xc80] sm:$0xff] }
 0x265   : > { %5701 = vmatprep.subr.bf16.mxu0 %v5700_v20  ;;  %v1864_v20 = vld [vmem:[#allocation9 + $0xce8] sm:$0xff]  ;;  %v5744_v13 = vpack.c.bf16 %v1851_v9, %v1848_v11  ;;  %v1847_v14 = vld [vmem:[#allocation9 + $0xc60] sm:$0xff] }
 0x266   : > { %5795 = vmatpush3.bf16.msra.mxu1 %v5794_v22  ;;  %v1814_v22 = vld [vmem:[#allocation9 + $0xb58] sm:$0xff]  ;;  %v5746_v45 = vpack.c.bf16 %v1850_v15, %v1847_v14  ;;  %v2729_v11 = vld [vmem:[#allocation12 + $0x300] sm:$0xff]  ;;  %v2730_v9 = vld [vmem:[#allocation12 + $0x308] sm:$0xff] }
 0x267   : > { %5797 = vmatprep.subr.bf16.mxu1 %v5796_v26  ;;  %v5816_v26 = vpack.c.bf16 %v1864_v20, %v1861_v19  ;;  %v5722_v27 = vpack.c.bf16 %v1814_v22, %v1811_v1  ;;  %v1860_v19 = vld [vmem:[#allocation9 + $0xcc8] sm:$0xff]  ;;  %v1859_v1 = vld [vmem:[#allocation9 + $0xcc0] sm:$0xff]  ;;  %v1862_v22 = vld [vmem:[#allocation9 + $0xcd8] sm:$0xff] }
 0x268   : > { %5703 = vmatpush1.bf16.msra.mxu0 %v5702_v30  ;;  %v5724_v30 = vpack.c.bf16 %v1821_v24, %v1818_v23  ;;  %v1866_v23 = vld [vmem:[#allocation9 + $0xcf8] sm:$0xff]  ;;  %v1869_v24 = vld [vmem:[#allocation9 + $0xd10] sm:$0xff] }
 0x269   : > { %5705 = vmatprep.subr.bf16.mxu0 %v5704_v33  ;;  %v1827_v33 = vld [vmem:[#allocation9 + $0xbc0] sm:$0xff]  ;;  %v2346_v15 = vld [vmem:[#allocation12 + $0x190] sm:$0xff] }
 0x26a   : > { %5799 = vmatpush3.bf16.msra.mxu1 %v5798_v47  ;;  %v1873_v47 = vld [vmem:[#allocation9 + $0xd30] sm:$0xff]  ;;  %v5728_v37 = vpack.c.bf16 %v1827_v33, %v1824_v3  ;;  %v1871_v3 = vld [vmem:[#allocation9 + $0xd20] sm:$0xff]  ;;  %v1874_v33 = vld [vmem:[#allocation9 + $0xd38] sm:$0xff] }
 0x26b   : > { %5801 = vmatprep.subr.bf16.mxu1 %v5800_v40  ;;  %v5824_v43 = vpack.c.bf16 %v1876_v36, %v1873_v47  ;;  %v5762_v47 = vpack.c.bf16 %v1874_v33, %v1871_v3  ;;  %v2363_v14 = vld [vmem:[#allocation12 + $0x218] sm:$0xff] }
 0x26c   : > { %5707 = vmatpush1.bf16.msra.mxu0 %v5706_v41  ;;  %v5730_v41 = vpack.c.bf16 %v1826_v39, %v1823_v38  ;;  %v1877_v38 = vld [vmem:[#allocation9 + $0xd50] sm:$0xff]  ;;  %v1880_v39 = vld [vmem:[#allocation9 + $0xd68] sm:$0xff]  ;;  %v2367_v3 = vld [vmem:[#allocation12 + $0x238] sm:$0xff] }
 0x26d   : > { %2130 = vmatmul.mubr.f32.vlgmr.msra.gmra.mrb[14].mxu1 %v7706_v53  ;;  %5709 = vmatprep.subr.bf16.mxu0 %v5708_v49  ;;  %v1829_v49 = vld [vmem:[#allocation9 + $0xbd0] sm:$0xff] }
 0x26e   : > { %5803 = vmatpush3.bf16.msra.mxu1 %v5800_v40  ;;  %2134 = vmatprep.mubr.f32.mxu1 %v7711_v56  ;;  %v1830_v40 = vld [vmem:[#allocation9 + $0xbd8] sm:$0xff] }
 0x26f   : > { %5805 = vmatprep.subr.bf16.mxu1 %v5804_v52  ;;  %v5732_v48 = vpack.c.bf16 %v1833_v42, %v1830_v40  ;;  %v5766_v42 = vpack.c.bf16 %v1880_v39, %v1877_v38  ;;  %v2752_v38 = vld [vmem:[#allocation12 + $0x3b8] sm:$0xff]  ;;  %v2735_v39 = vld [vmem:[#allocation12 + $0x330] sm:$0xff] }
 0x270   : > { %5711 = vmatpush1.bf16.msra.mxu0 %v5710_v59  ;;  %v1835_v59 = vld [vmem:[#allocation9 + $0xc00] sm:$0xff] }
 0x271   : > { %2135 = vmatmul.mubr.f32.gmra.mrb[16].mxu1 %v7717_v61  ;;  %5713 = vmatprep.subr.bf16.mxu0 %v5712_v2  ;;  %v1842_v2 = vld [vmem:[#allocation9 + $0xc38] sm:$0xff]  ;;  %v5738_v5 = vpack.c.bf16 %v1838_v60, %v1835_v59  ;;  %v2360_v60 = vld [vmem:[#allocation12 + $0x200] sm:$0xff] }
 0x272   : > { %5807 = vmatpush3.bf16.msra.mxu1 %v5804_v52  ;;  %4929 = vmatprep.mubr.f32.mxu1 %v7722_v8  ;;  %v5734_v52 = vpack.c.bf16 %v1832_v50, %v1829_v49  ;;  %v5740_v63 = vpack.c.bf16 %v1845_v4, %v1842_v2  ;;  %v2344_v2 = vld [vmem:[#allocation12 + $0x180] sm:$0xff] }
 0x273   : > { %5809 = vmatprep.subr.bf16.mxu1 %v5808_v7 }
 0x274   : > { %5715 = vmatpush1.bf16.msra.mxu0 %v5714_v10  ;;  %v7729_v10 = vsel %vm1889_vm2, %v1897_v58, %v1903_v62  ;;  %v1853_v58 = vld [vmem:[#allocation9 + $0xc90] sm:$0xff] }
 0x275   : > { %5717 = vmatprep.subr.bf16.mxu0 %v5716_v12  ;;  %v2361_v62 = vld [vmem:[#allocation12 + $0x208] sm:$0xff] }
 0x276   : > { %5811 = vmatpush3.bf16.msra.mxu1 %v5808_v7  ;;  %v1844_v7 = vld [vmem:[#allocation9 + $0xc48] sm:$0xff]  ;;  %v5832_v4 = vpack.c.bf16 %v2361_v62, %v2360_v60 }
 0x277   : > { %5813 = vmatprep.subr.bf16.mxu1 %v5812_v17  ;;  %v5742_v12 = vpack.c.bf16 %v1844_v7, %v1841_v6  ;;  %v2746_v6 = vld [vmem:[#allocation12 + $0x388] sm:$0xff] }
 0x278   : > { %5719 = vmatpush1.bf16.msra.mxu0 %v5718_v18  ;;  %v1856_v18 = vld [vmem:[#allocation9 + $0xca8] sm:$0xff] }
 0x279   : > { %5721 = vmatprep.subr.bf16.mxu0 %v5720_v21  ;;  %v5750_v20 = vpack.c.bf16 %v1856_v18, %v1853_v58  ;;  %v2748_v58 = vld [vmem:[#allocation12 + $0x398] sm:$0xff] }
 0x27a   : > { %5815 = vmatpush3.bf16.msra.mxu1 %v5812_v17  ;;  %v1857_v17 = vld [vmem:[#allocation9 + $0xcb0] sm:$0xff] }
 0x27b   : > { %5817 = vmatprep.subr.bf16.mxu1 %v5816_v26 }
 0x27c   : > { %5723 = vmatpush1.bf16.msra.mxu0 %v5722_v27  ;;  %v1865_v27 = vld [vmem:[#allocation9 + $0xcf0] sm:$0xff] }
 0x27d   : > { %5725 = vmatprep.subr.bf16.mxu0 %v5724_v30  ;;  %v1875_v30 = vld [vmem:[#allocation9 + $0xd40] sm:$0xff]  ;;  %v5758_v31 = vpack.c.bf16 %v1868_v28, %v1865_v27  ;;  %v2750_v27 = vld [vmem:[#allocation12 + $0x3a8] sm:$0xff] }
 0x27e   : > { %5819 = vmatpush3.bf16.msra.mxu1 %v5816_v26  ;;  %v5756_v26 = vpack.c.bf16 %v1869_v24, %v1866_v23  ;;  %v5760_v32 = vpack.c.bf16 %v1875_v30, %v1872_v29  ;;  %v2348_v23 = vld [vmem:[#allocation12 + $0x1a0] sm:$0xff]  ;;  %v2349_v24 = vld [vmem:[#allocation12 + $0x1a8] sm:$0xff] }
 0x27f   : > { %5821 = vmatprep.subr.bf16.mxu1 %v5820_v34  ;;  %v2733_v28 = vld [vmem:[#allocation12 + $0x320] sm:$0xff]  ;;  %v2734_v29 = vld [vmem:[#allocation12 + $0x328] sm:$0xff] }
 0x280   : > { %5727 = vmatpush1.bf16.msra.mxu0 %v5726_v35  ;;  %v1881_v35 = vld [vmem:[#allocation9 + $0xd70] sm:$0xff] }
 0x281   : > { %5729 = vmatprep.subr.bf16.mxu0 %v5728_v37 }
 0x282   : > { %5823 = vmatpush3.bf16.msra.mxu1 %v5820_v34  ;;  %v1878_v34 = vld [vmem:[#allocation9 + $0xd58] sm:$0xff] }
 0x283   : > { %5825 = vmatprep.subr.bf16.mxu1 %v5824_v43  ;;  %v5764_v37 = vpack.c.bf16 %v1881_v35, %v1878_v34  ;;  %v2350_v34 = vld [vmem:[#allocation12 + $0x1b0] sm:$0xff]  ;;  %v2351_v35 = vld [vmem:[#allocation12 + $0x1b8] sm:$0xff] }
 0x284   : > { %5731 = vmatpush1.bf16.msra.mxu0 %v5730_v41 }
 0x285   : > { %5733 = vmatprep.subr.bf16.mxu0 %v5732_v48 }
 0x286   : > { %5827 = vmatpush3.bf16.msra.mxu1 %v5824_v43 }
 0x287   : > { %5829 = vmatprep.subr.bf16.mxu1 %v5828_v54 }
 0x288   : > { %5735 = vmatpush1.bf16.msra.mxu0 %v5734_v52 }
 0x289   : > { %5737 = vmatprep.subr.bf16.mxu0 %v5736_v57 }
 0x28a   : > { %5831 = vmatpush3.bf16.msra.mxu1 %v5828_v54 }
 0x28b   : > { %1976 = vmatmul.mubr.f32.vlgmr.msra.gmra.mrb[4].mxu0 %v7706_v53  ;;  %v5748_v53 = vpack.c.bf16 %v1857_v17, %v1854_v16  ;;  %5833 = vmatprep.subr.bf16.mxu1 %v5832_v4  ;;  %v2347_v16 = vld [vmem:[#allocation12 + $0x198] sm:$0xff]  ;;  %v2737_v4 = vld [vmem:[#allocation12 + $0x340] sm:$0xff] }
 0x28c   : > { %5739 = vmatpush1.bf16.msra.mxu0 %v5738_v5  ;;  %1981 = vmatprep.mubr.f32.mxu0 %v7711_v56  ;;  %v1863_v56 = vld [vmem:[#allocation9 + $0xce0] sm:$0xff]  ;;  %v2345_v5 = vld [vmem:[#allocation12 + $0x188] sm:$0xff] }
 0x28d   : > { %4930 = vmatmul.mubr.f32.vlgmr.msra.gmra.mrb[8].mxu1 %v7729_v10  ;;  %5741 = vmatprep.subr.bf16.mxu0 %v5740_v63  ;;  %v5752_v21 = vpack.c.bf16 %v1863_v56, %v1860_v19  ;;  %v2745_v63 = vld [vmem:[#allocation12 + $0x380] sm:$0xff]  ;;  %v5834_v7 = vpack.c.bf16 %v2345_v5, %v2344_v2  ;;  %v2731_v19 = vld [vmem:[#allocation12 + $0x310] sm:$0xff]  ;;  %v2732_v56 = vld [vmem:[#allocation12 + $0x318] sm:$0xff] }
 0x28e   : > { %v2754_v2 = vld [vmem:[#allocation12 + $0x3c8] sm:$0xff] }
 0x28f   : > { %1982 = vmatmul.mubr.f32.gmra.mrb[6].mxu0 %v7717_v61  ;;  %v5754_v61 = vpack.c.bf16 %v1862_v22, %v1859_v1  ;;  %5835 = vmatpush3.bf16.msra.mxu1 %v5834_v7  ;;  %v2365_v1 = vld [vmem:[#allocation12 + $0x228] sm:$0xff] }
 0x290   : > { %5743 = vmatpush1.bf16.msra.mxu0 %v5742_v12  ;;  %2052 = vmatprep.mubr.f32.mxu0 %v7081_v0  ;;  %v2362_v12 = vld [vmem:[#allocation12 + $0x210] sm:$0xff]  ;;  %v2738_v5 = vld [vmem:[#allocation12 + $0x348] sm:$0xff] }
 0x291   : > { %5745 = vmatprep.subr.bf16.mxu0 %v5744_v13  ;;  %v5962_v13 = vpack.c.bf16 %v2730_v9, %v2729_v11  ;;  %v5836_v17 = vpack.c.bf16 %v2363_v14, %v2362_v12  ;;  %v5978_v7 = vpack.c.bf16 %v2738_v5, %v2737_v4  ;;  %v2370_v11 = vld [vmem:[#allocation12 + $0x250] sm:$0xff]  ;;  %v2371_v9 = vld [vmem:[#allocation12 + $0x258] sm:$0xff] }
 0x292   : > { %v5852_v12 = vpack.c.bf16 %v2371_v9, %v2370_v11  ;;  %v2355_v14 = vld [vmem:[#allocation12 + $0x1d8] sm:$0xff] }
 0x293   : > { %5837 = vmatprep.subr.bf16.mxu1 %v5836_v17  ;;  %v2756_v17 = vld [vmem:[#allocation12 + $0x3d8] sm:$0xff] }
 0x294   : > { %5747 = vmatpush1.bf16.msra.mxu0 %v5746_v45  ;;  %v5838_v45 = vpack.c.bf16 %v2347_v16, %v2346_v15 }
 0x295   : > { %5749 = vmatprep.subr.bf16.mxu0 %v5748_v53  ;;  %v2747_v53 = vld [vmem:[#allocation12 + $0x390] sm:$0xff] }
 0x296   : > { %v5964_v18 = vpack.c.bf16 %v2748_v58, %v2747_v53  ;;  %5839 = vmatpush3.bf16.msra.mxu1 %v5838_v45  ;;  %v2739_v45 = vld [vmem:[#allocation12 + $0x350] sm:$0xff]  ;;  %v2740_v53 = vld [vmem:[#allocation12 + $0x358] sm:$0xff] }
 0x298   : > { %5751 = vmatpush1.bf16.msra.mxu0 %v5750_v20  ;;  %v5966_v20 = vpack.c.bf16 %v2732_v56, %v2731_v19  ;;  %v2372_v19 = vld [vmem:[#allocation12 + $0x260] sm:$0xff]  ;;  %v2373_v56 = vld [vmem:[#allocation12 + $0x268] sm:$0xff] }
 0x299   : > { %5753 = vmatprep.subr.bf16.mxu0 %v5752_v21  ;;  %v2364_v21 = vld [vmem:[#allocation12 + $0x220] sm:$0xff] }
 0x29a   : > { %v5840_v22 = vpack.c.bf16 %v2365_v1, %v2364_v21  ;;  %v2356_v21 = vld [vmem:[#allocation12 + $0x1e0] sm:$0xff]  ;;  %v2357_v1 = vld [vmem:[#allocation12 + $0x1e8] sm:$0xff] }
 0x29c   : > { %5755 = vmatpush1.bf16.msra.mxu0 %v5754_v61  ;;  %v2749_v61 = vld [vmem:[#allocation12 + $0x3a0] sm:$0xff]  ;;  %5841 = vmatprep.subr.bf16.mxu1 %v5840_v22 }
 0x29d   : > { %5757 = vmatprep.subr.bf16.mxu0 %v5756_v26  ;;  %v5842_v26 = vpack.c.bf16 %v2349_v24, %v2348_v23  ;;  %v5968_v30 = vpack.c.bf16 %v2750_v27, %v2749_v61  ;;  %v2757_v22 = vld [vmem:[#allocation12 + $0x3e0] sm:$0xff]  ;;  %v5858_v23 = vpack.c.bf16 %v2357_v1, %v2356_v21  ;;  %v2758_v24 = vld [vmem:[#allocation12 + $0x3e8] sm:$0xff] }
 0x29e   : > { %v2742_v61 = vld [vmem:[#allocation12 + $0x368] sm:$0xff] }
 0x29f   : > { %v1267_v36 = vpop.f32.mrb[0].mxu1  ;;  %5843 = vmatpush3.bf16.msra.mxu1 %v5842_v26  ;;  %v5984_v26 = vpack.c.bf16 %v2758_v24, %v2757_v22 }
 0x2a0   : > { %5759 = vmatpush1.bf16.msra.mxu0 %v5758_v31  ;;  %v1269_v40 = vpop.f32.mrb[1].mxu1  ;;  %v5970_v31 = vpack.c.bf16 %v2734_v29, %v2733_v28  ;;  %v2374_v28 = vld [vmem:[#allocation12 + $0x270] sm:$0xff]  ;;  %v2375_v29 = vld [vmem:[#allocation12 + $0x278] sm:$0xff] }
 0x2a1   : > { %5761 = vmatprep.subr.bf16.mxu0 %v5760_v32  ;;  %v2366_v32 = vld [vmem:[#allocation12 + $0x230] sm:$0xff] }
 0x2a2   : > { %v5844_v33 = vpack.c.bf16 %v2367_v3, %v2366_v32  ;;  %v2359_v32 = vld [vmem:[#allocation12 + $0x1f8] sm:$0xff]  ;;  %v2759_v3 = vld [vmem:[#allocation12 + $0x3f0] sm:$0xff] }
 0x2a3   : > { %v1273_v43 = vpop.f32.mrb[2].mxu1 }
 0x2a4   : > { %5763 = vmatpush1.bf16.msra.mxu0 %v5762_v47  ;;  %v1275_v41 = vpop.f32.mrb[3].mxu1  ;;  %v2751_v47 = vld [vmem:[#allocation12 + $0x3b0] sm:$0xff]  ;;  %5845 = vmatprep.subr.bf16.mxu1 %v5844_v33  ;;  %v2760_v33 = vld [vmem:[#allocation12 + $0x3f8] sm:$0xff] }
 0x2a5   : > { %5765 = vmatprep.subr.bf16.mxu0 %v5764_v37  ;;  %v5846_v37 = vpack.c.bf16 %v2351_v35, %v2350_v34  ;;  %v5988_v35 = vpack.c.bf16 %v2760_v33, %v2759_v3 }
 0x2a7   : > { %5847 = vmatpush3.bf16.msra.mxu1 %v5846_v37 }
 0x2a8   : > { %5767 = vmatpush1.bf16.msra.mxu0 %v5766_v42 }
 0x2ab   : > { %2053 = vmatmul.mubr.f32.vlgmr.msra.gmra.mrb[4].mxu0 %v7722_v8 }
 0x2ac   : > { %2058 = vmatprep.mubr.f32.mxu0 %v7081_v0 }
 0x2af   : > { %2059 = vmatmul.mubr.f32.gmra.mrb[6].mxu0 %v7729_v10  ;;  %v5960_v10 = vpack.c.bf16 %v2746_v6, %v2745_v63 }
 0x2b1   : > { %5961 = vmatprep.subr.bf16.mxu0 %v5960_v10 }
 0x2b2   : > { %5963 = vmatpush3.bf16.msra.mxu0 %v5962_v13  ;;  %v2354_v13 = vld [vmem:[#allocation12 + $0x1d0] sm:$0xff] }
 0x2b3   : > { %5965 = vmatprep.subr.bf16.mxu0 %v5964_v18  ;;  %v5854_v16 = vpack.c.bf16 %v2355_v14, %v2354_v13  ;;  %v5982_v18 = vpack.c.bf16 %v2740_v53, %v2739_v45 }
 0x2b6   : > { %5967 = vmatpush3.bf16.msra.mxu0 %v5966_v20  ;;  %v5856_v20 = vpack.c.bf16 %v2373_v56, %v2372_v19 }
 0x2b7   : > { %5969 = vmatprep.subr.bf16.mxu0 %v5968_v30  ;;  %v2358_v30 = vld [vmem:[#allocation12 + $0x1f0] sm:$0xff] }
 0x2b8   : > { %v5862_v34 = vpack.c.bf16 %v2359_v32, %v2358_v30  ;;  %v2378_v30 = vld [vmem:[#allocation12 + $0x290] sm:$0xff]  ;;  %v2379_v32 = vld [vmem:[#allocation12 + $0x298] sm:$0xff] }
 0x2ba   : > { %5971 = vmatpush3.bf16.msra.mxu0 %v5970_v31  ;;  %v5860_v31 = vpack.c.bf16 %v2375_v29, %v2374_v28 }
 0x2be   : > { %v1190_v44 = vpop.f32.mrb[0].mxu0 }
 0x2bf   : > { %v7739_v46 = vadd.f32 %v1267_v36, %v1190_v44  ;;  %v1192_v48 = vpop.f32.mrb[1].mxu0 }
 0x2c0   : > { %v7741_v49 = vadd.f32 %v1269_v40, %v1192_v48  ;;  %v4361_v50 = vpop.f32.mrb[4].mxu1  ;;  %v2736_v40 = vld [vmem:[#allocation12 + $0x338] sm:$0xff]  ;;  %v2368_v48 = vld [vmem:[#allocation12 + $0x240] sm:$0xff] }
 0x2c1   : > { %v4362_v51 = vpop.f32.mrb[5].mxu1 }
 0x2c2   : > { %v1196_v25 = vpop.f32.mrb[2].mxu0  ;;  %v7743_v54 = vadd.f32 %v4362_v51, %v4361_v50  ;;  %v2369_v50 = vld [vmem:[#allocation12 + $0x248] sm:$0xff] }
 0x2c3   : > { %v7745_v55 = vadd.f32 %v1273_v43, %v1196_v25  ;;  %v1198_v52 = vpop.f32.mrb[3].mxu0  ;;  %v5972_v43 = vpack.c.bf16 %v2752_v38, %v2751_v47  ;;  %v5848_v51 = vpack.c.bf16 %v2369_v50, %v2368_v48  ;;  %v2352_v25 = vld [vmem:[#allocation12 + $0x1c0] sm:$0xff]  ;;  %v2743_v47 = vld [vmem:[#allocation12 + $0x370] sm:$0xff] }
 0x2c4   : > { %v7747_v8 = vadd.f32 %v1275_v41, %v1198_v52  ;;  %v4364_v57 = vpop.f32.mrb[6].mxu1  ;;  %v5974_v41 = vpack.c.bf16 %v2736_v40, %v2735_v39  ;;  %v2353_v52 = vld [vmem:[#allocation12 + $0x1c8] sm:$0xff]  ;;  %v2376_v38 = vld [vmem:[#allocation12 + $0x280] sm:$0xff] }
 0x2c5   : > { %v4365_v0 = vpop.f32.mrb[7].mxu1  ;;  %5973 = vmatprep.subr.bf16.mxu0 %v5972_v43  ;;  %v5850_v62 = vpack.c.bf16 %v2353_v52, %v2352_v25  ;;  %5849 = vmatprep.subr.bf16.mxu1 %v5848_v51  ;;  %v2377_v39 = vld [vmem:[#allocation12 + $0x288] sm:$0xff]  ;;  %v2223_v52 = vlaneseq }
 0x2c6   : > { %v7749_v59 = vadd.f32 %v4365_v0, %v4364_v57  ;;  %v2753_v57 = vld [vmem:[#allocation12 + $0x3c0] sm:$0xff]  ;;  %5975 = vmatpush3.bf16.msra.mxu0 %v5974_v41  ;;  %v7755_v40 = vpack.c.bf16 %v2377_v39, %v2376_v38 }
 0x2c7   : > { %v5976_v6 = vpack.c.bf16 %v2754_v2, %v2753_v57  ;;  %5851 = vmatpush3.bf16.msra.mxu1 %v5850_v62  ;;  %v2224_v57 = vshrl.u32 %v2223_v52, 7  ;;  %v2221_v62 = vld [vmem:[#allocation11] sm:$0x7]  ;;  %v2381_v52 = vld [vmem:[#allocation12 + $0x2a8] sm:$0xff] }
 0x2c8   : > { %5853 = vmatprep.subr.bf16.mxu1 %v5852_v12 }
 0x2c9   : > { %5977 = vmatprep.subr.bf16.mxu0 %v5976_v6  ;;  %v2225_v14 = vsub.s32 0, %v2224_v57 }
 0x2ca   : > { %5979 = vmatpush3.bf16.msra.mxu0 %v5978_v7 }
 0x2cb   : > { %5855 = vmatpush3.bf16.msra.mxu1 %v5854_v16 }
 0x2cc   : > { %5857 = vmatprep.subr.bf16.mxu1 %v5856_v20 }
 0x2cf   : > { %5859 = vmatpush3.bf16.msra.mxu1 %v5858_v23 }
 0x2d0   : > { %5861 = vmatprep.subr.bf16.mxu1 %v5860_v31 }
 0x2d3   : > { %5863 = vmatpush3.bf16.msra.mxu1 %v5862_v34 }
 0x2d4   : > { %5865 = vmatprep.subr.bf16.mxu1 %v7755_v40 }
 0x300   : > { %v4417_v36 = vpop.f32.mrb[10].mxu1 }
 0x301   : > { %v4418_v42 = vpop.f32.mrb[11].mxu1 }
 0x302   : > { %v4419_v44 = vadd.f32 %v4418_v42, %v4417_v36  ;;  %v2744_v36 = vld [vmem:[#allocation12 + $0x378] sm:$0xff] }
 0x303   : > { %v5990_v37 = vpack.c.bf16 %v2744_v36, %v2743_v47 }
 0x304   : > { %v7752_v0 = vadd.f32 %v4419_v44, %v7743_v54  ;;  %v4420_v60 = vpop.f32.mrb[12].mxu1  ;;  %v2755_v54 = vld [vmem:[#allocation12 + $0x3d0] sm:$0xff] }
 0x305   : > { %v4421_v63 = vpop.f32.mrb[13].mxu1  ;;  %v5980_v58 = vpack.c.bf16 %v2756_v17, %v2755_v54  ;;  %v2229_v54 = vsub.s32 1, %v2224_v57 }
 0x306   : > { %v4422_v10 = vadd.f32 %v4421_v63, %v4420_v60  ;;  %v2233_v60 = vsub.s32 2, %v2224_v57 }
 0x307   : > { %5981 = vmatprep.subr.bf16.mxu0 %v5980_v58  ;;  %v2230_v17 = vrot.slane %v2221_v62, %v2229_v54  ;;  %v2382_v54 = vld [vmem:[#allocation12 + $0x2b0] sm:$0xff] }
 0x308   : > { %v6320_v15 = vadd.f32 %v4422_v10, %v7749_v59  ;;  %5983 = vmatpush3.bf16.msra.mxu0 %v5982_v18  ;;  %v2741_v59 = vld [vmem:[#allocation12 + $0x360] sm:$0xff]  ;;  %v2234_v2 = vrot.slane %v2221_v62, %v2233_v60 }
 0x309   : > { %v5986_v27 = vpack.c.bf16 %v2742_v61, %v2741_v59  ;;  %5985 = vmatprep.subr.bf16.mxu0 %v5984_v26 }
 0x30c   : > { %5987 = vmatpush3.bf16.msra.mxu0 %v5986_v27 }
 0x30d   : > { %5989 = vmatprep.subr.bf16.mxu0 %v5988_v35 }
 0x310   : > { %5991 = vmatpush3.bf16.msra.mxu0 %v5990_v37 }
 0x340   : > { %v4473_v42 = vpop.f32.mrb[14].mxu1 }
 0x341   : > { %v4474_v43 = vpop.f32.mrb[15].mxu1 }
 0x342   : > { %v4475_v41 = vadd.f32 %v4474_v43, %v4473_v42 }
 0x344   : > { %v4476_v44 = vpop.f32.mrb[16].mxu1  ;;  %v6324_v48 = vadd.f32 %v7752_v0, %v4475_v41  ;;  %v2380_v41 = vld [vmem:[#allocation12 + $0x2a0] sm:$0xff] }
 0x345   : > { %v4477_v50 = vpop.f32.mrb[17].mxu1 }
 0x346   : > { %v4478_v51 = vadd.f32 %v4477_v50, %v4476_v44  ;;  %v5868_v50 = vpack.c.bf16 %v2379_v32, %v2378_v30  ;;  %v2308_v30 = vld [vmem:[#allocation12 + $0x98] sm:$0xff]  ;;  %v2291_v32 = vld [vmem:[#allocation12 + $0x10] sm:$0xff] }
 0x348   : > { %v6321_v25 = vadd.f32 %v6320_v15, %v4478_v51  ;;  %v2226_v15 = vrot.slane %v2221_v62, %v2225_v14 }
 0x360   : > { %v4931_v4 = vpop.f32.mrb[8].mxu1 }
 0x361   : > { %v6322_v5 = vadd.f32 %v6321_v25, %v4931_v4  ;;  %v2206_v63 = vpop.f32.mrb[9].mxu1 }
 0x362   : > { %v6325_v6 = vadd.f32 %v6324_v48, %v2206_v63 }
 0x363   : > { %v2243_v7 = vadd.f32 %v6322_v5, %v2234_v2 }
 0x364   : > { %v2240_v10 = vadd.f32 %v6325_v6, %v2234_v2 }
 0x365   : > { %v2249_v11 = vmax.f32 %v2243_v7, 0.0 }
 0x366   : > { %v2246_v9 = vmax.f32 %v2240_v10, 0.0 }
 0x367   : > { %v2263_v12 = vrot.slane %v2249_v11, 7 }
 0x368   : > { %v2258_v13 = vrot.slane %v2246_v9, 7 }
 0x369   : > { %2282 = vst [vmem:[#allocation2 + $0x40] sm:$0x1] %v2263_v12 }
 0x36a   : > { %v7760_v0 = vsel %vm764_vm0, %v2258_v13, %v2263_v12  ;;  %2276 = vst [vmem:[#allocation2 + $0x10] sm:$0xfe] %v2258_v13  ;;  %v5872_v12 = vpack.c.bf16 %v2381_v52, %v2380_v41 }
 0x36b   : > { %v2408_v9 = vrot.slane %v7760_v0, 1 }
 0x371   : > { %v2339_v43 = vld [vmem:[#allocation2 + $0x10] sm:$0xfe] }
 0x372   : > { %v2407_v7 = vrot.slane %v2339_v43, 1  ;;  %v2312_v43 = vld [vmem:[#allocation12 + $0xb8] sm:$0xff] }
 0x37e   : > { %v2054_v16 = vpop.f32.mrb[4].mxu0 }
 0x37f   : > { %v6313_v45 = vadd.f32 %v2054_v16, %v7739_v46  ;;  %v2056_v53 = vpop.f32.mrb[5].mxu0 }
 0x380   : > { %v6315_v58 = vadd.f32 %v2056_v53, %v7741_v49 }
 0x381   : > { %v2238_v18 = vadd.f32 %v6313_v45, %v2226_v15  ;;  %v2385_v45 = vld [vmem:[#allocation12 + $0x2c8] sm:$0xff] }
 0x382   : > { %v2239_v19 = vadd.f32 %v6315_v58, %v2230_v17  ;;  %v2060_v56 = vpop.f32.mrb[6].mxu0  ;;  %v2386_v58 = vld [vmem:[#allocation12 + $0x2d0] sm:$0xff] }
 0x383   : > { %v2244_v20 = vmax.f32 %v2238_v18, 0.0  ;;  %v6317_v21 = vadd.f32 %v2060_v56, %v7745_v55  ;;  %v2062_v1 = vpop.f32.mrb[7].mxu0  ;;  %v2387_v18 = vld [vmem:[#allocation12 + $0x2d8] sm:$0xff]  ;;  %v2388_v56 = vld [vmem:[#allocation12 + $0x2e0] sm:$0xff] }
 0x384   : > { %v2245_v22 = vmax.f32 %v2239_v19, 0.0  ;;  %v6319_v23 = vadd.f32 %v2062_v1, %v7747_v8  ;;  %v5884_v19 = vpack.c.bf16 %v2387_v18, %v2386_v58  ;;  %v2390_v1 = vld [vmem:[#allocation12 + $0x2f0] sm:$0xff]  ;;  %v2322_v58 = vld [vmem:[#allocation12 + $0x108] sm:$0xff] }
 0x385   : > { %v2256_v24 = vrot.slane %v2244_v20, 7  ;;  %v2241_v59 = vadd.f32 %v6317_v21, %v2226_v15  ;;  %v2383_v15 = vld [vmem:[#allocation12 + $0x2b8] sm:$0xff]  ;;  %v2389_v20 = vld [vmem:[#allocation12 + $0x2e8] sm:$0xff] }
 0x386   : > { %v2257_v61 = vrot.slane %v2245_v22, 7  ;;  %v2242_v26 = vadd.f32 %v6319_v23, %v2230_v17  ;;  %v5876_v16 = vpack.c.bf16 %v2383_v15, %v2382_v54  ;;  %v2384_v17 = vld [vmem:[#allocation12 + $0x2c0] sm:$0xff]  ;;  %v5888_v21 = vpack.c.bf16 %v2389_v20, %v2388_v56  ;;  %v2391_v22 = vld [vmem:[#allocation12 + $0x2f8] sm:$0xff]  ;;  %v2319_v54 = vld [vmem:[#allocation12 + $0xf0] sm:$0xff] }
 0x387   : > { %2274 = vst [vmem:[#allocation2] sm:$0xfe] %v2256_v24  ;;  %v2247_v27 = vmax.f32 %v2241_v59, 0.0  ;;  %v5880_v53 = vpack.c.bf16 %v2385_v45, %v2384_v17  ;;  %v5892_v23 = vpack.c.bf16 %v2391_v22, %v2390_v1  ;;  %v2306_v59 = vld [vmem:[#allocation12 + $0x88] sm:$0xff]  ;;  %v2320_v15 = vld [vmem:[#allocation12 + $0xf8] sm:$0xff]  ;;  %v2303_v17 = vld [vmem:[#allocation12 + $0x70] sm:$0xff] }
 0x388   : > { %2275 = vst [vmem:[#allocation2 + $0x8] sm:$0xfe] %v2257_v61  ;;  %v2248_v46 = vmax.f32 %v2242_v26, 0.0  ;;  %v2304_v45 = vld [vmem:[#allocation12 + $0x78] sm:$0xff]  ;;  %v2323_v56 = vld [vmem:[#allocation12 + $0x110] sm:$0xff]  ;;  %v2325_v22 = vld [vmem:[#allocation12 + $0x120] sm:$0xff] }
 0x389   : > { %v2259_v28 = vrot.slane %v2247_v27, 7  ;;  %v2289_v27 = vld [vmem:[#allocation12] sm:$0xff]  ;;  %v5926_v18 = vpack.c.bf16 %v2304_v45, %v2303_v17  ;;  %v2324_v20 = vld [vmem:[#allocation12 + $0x118] sm:$0xff] }
 0x38a   : > { %v2261_v49 = vrot.slane %v2248_v46, 7  ;;  %v2290_v46 = vld [vmem:[#allocation12 + $0x8] sm:$0xff]  ;;  %v3002_v17 = vld [vmem:[#allocation15 + $0x98] sm:$0xff] }
 0x38b   : > { %v7767_v29 = vsel %vm764_vm0, %v2256_v24, %v2259_v28  ;;  %2280 = vst [vmem:[#allocation2 + $0x30] sm:$0x1] %v2259_v28  ;;  %v2305_v24 = vld [vmem:[#allocation12 + $0x80] sm:$0xff] }
 0x38c   : > { %v7770_v55 = vsel %vm764_vm0, %v2257_v61, %v2261_v49  ;;  %2281 = vst [vmem:[#allocation2 + $0x38] sm:$0x1] %v2261_v49  ;;  %v2402_v39 = vrot.slane %v7767_v29, 1  ;;  %v2784_v42 = vrot.slane %v7767_v29, 2  ;;  %v2342_v61 = vld [vmem:[#allocation2 + $0x40] sm:$0x1]  ;;  %v5896_v26 = vpack.c.bf16 %v2306_v59, %v2305_v24 }
 0x38d   : > { %v2405_v36 = vrot.slane %v7770_v55, 1  ;;  %v2787_v38 = vrot.slane %v7770_v55, 2  ;;  %v2414_v28 = vrot.slane %v2342_v61, 1  ;;  %v2307_v49 = vld [vmem:[#allocation12 + $0x90] sm:$0xff]  ;;  %v2328_v61 = vld [vmem:[#allocation12 + $0x138] sm:$0xff] }
 0x38e   : > { %v2337_v8 = vld [vmem:[#allocation2] sm:$0xfe] }
 0x38f   : > { %v2722_v31 = vld [vmem:[#allocation2] sm:$0xfc]  ;;  %v2338_v3 = vld [vmem:[#allocation2 + $0x8] sm:$0xfe]  ;;  %v2401_v34 = vrot.slane %v2337_v8, 1  ;;  %v5898_v8 = vpack.c.bf16 %v2290_v46, %v2289_v27 }
 0x390   : > { %v2723_v33 = vld [vmem:[#allocation2 + $0x8] sm:$0xfc]  ;;  %v2783_v35 = vrot.slane %v2722_v31, 2  ;;  %v2404_v47 = vrot.slane %v2338_v3, 1  ;;  %v5900_v31 = vpack.c.bf16 %v2308_v30, %v2307_v49  ;;  %v2283_v1 = vld [vmem:[#allocation2] sm:$0xff] }
 0x391   : > { %v2786_v37 = vrot.slane %v2723_v33, 2  ;;  %v2403_v57 = vsel %vm1102_vm1, %v2401_v34, %v2402_v39  ;;  %v2292_v3 = vld [vmem:[#allocation12 + $0x18] sm:$0xff]  ;;  %v2415_v33 = vsel %vm1102_vm1, %v2408_v9, %v2414_v28  ;;  %v2309_v34 = vld [vmem:[#allocation12 + $0xa0] sm:$0xff]  ;;  %v2327_v59 = vld [vmem:[#allocation12 + $0x130] sm:$0xff] }
 0x392   : > { %v2406_v44 = vsel %vm1102_vm1, %v2404_v47, %v2405_v36  ;;  %v2340_v51 = vld [vmem:[#allocation2 + $0x30] sm:$0x1]  ;;  %v2785_v60 = vsel %vm1889_vm2, %v2783_v35, %v2784_v42  ;;  %v2310_v35 = vld [vmem:[#allocation12 + $0xa8] sm:$0xff]  ;;  %v2284_v47 = vld [vmem:[#allocation2 + $0x8] sm:$0xff]  ;;  %v5940_v27 = vpack.c.bf16 %v2328_v61, %v2327_v59 }
 0x393   : > { %v2788_v48 = vsel %vm1889_vm2, %v2786_v37, %v2787_v38  ;;  %v2725_v25 = vld [vmem:[#allocation2 + $0x30] sm:$0x3]  ;;  %2486 = vmatprep.mubr.f32.mxu1 %v2406_v44  ;;  %v2341_v62 = vld [vmem:[#allocation2 + $0x38] sm:$0x1]  ;;  %v2410_v4 = vrot.slane %v2340_v51, 1  ;;  %v5904_v37 = vpack.c.bf16 %v2310_v35, %v2309_v34  ;;  %v2331_v30 = vld [vmem:[#allocation12 + $0x150] sm:$0xff] }
 0x394   : > { %2868 = vmatprep.mubr.f32.mxu0 %v2788_v48  ;;  %v2726_v2 = vld [vmem:[#allocation2 + $0x38] sm:$0x3]  ;;  %v2792_v5 = vrot.slane %v2725_v25, 2  ;;  %2487 = vmatmul.mubr.f32.vlgmr.msra.gmra.mrb[18].mxu1 %v2403_v57  ;;  %v2412_v63 = vrot.slane %v2341_v62, 1  ;;  %v2295_v48 = vld [vmem:[#allocation12 + $0x30] sm:$0xff]  ;;  %v2313_v51 = vld [vmem:[#allocation12 + $0xc0] sm:$0xff] }
 0x395   : > { %2869 = vmatmul.mubr.f32.vlgmr.msra.gmra.mrb[8].mxu0 %v2785_v60  ;;  %v2794_v6 = vrot.slane %v2726_v2, 2  ;;  %5867 = vmatpush3.bf16.msra.mxu1 %v7755_v40  ;;  %v2411_v13 = vsel %vm1102_vm1, %v2402_v39, %v2410_v4  ;;  %v2409_v40 = vsel %vm1102_vm1, %v2407_v7, %v2408_v9  ;;  %v2294_v39 = vld [vmem:[#allocation12 + $0x28] sm:$0xff]  ;;  %v2297_v60 = vld [vmem:[#allocation12 + $0x40] sm:$0xff]  ;;  %v2315_v2 = vld [vmem:[#allocation12 + $0xd0] sm:$0xff] }
 0x396   : > { %v2413_v10 = vsel %vm1102_vm1, %v2405_v36, %v2412_v63  ;;  %5869 = vmatprep.subr.bf16.mxu1 %v5868_v50  ;;  %v2793_v14 = vsel %vm1889_vm2, %v2784_v42, %v2792_v5  ;;  %v5902_v36 = vpack.c.bf16 %v2292_v3, %v2291_v32  ;;  %v2311_v42 = vld [vmem:[#allocation12 + $0xb0] sm:$0xff]  ;;  %v2314_v25 = vld [vmem:[#allocation12 + $0xc8] sm:$0xff]  ;;  %v2316_v4 = vld [vmem:[#allocation12 + $0xd8] sm:$0xff] }
 0x397   : > { %v2795_v11 = vsel %vm1889_vm2, %v2787_v38, %v2794_v6  ;;  %2491 = vmatprep.mubr.f32.mxu1 %v2413_v10  ;;  %v2293_v38 = vld [vmem:[#allocation12 + $0x20] sm:$0xff]  ;;  %v5908_v44 = vpack.c.bf16 %v2312_v43, %v2311_v42  ;;  %v5912_v57 = vpack.c.bf16 %v2314_v25, %v2313_v51  ;;  %v2298_v62 = vld [vmem:[#allocation12 + $0x48] sm:$0xff]  ;;  %v5916_v63 = vpack.c.bf16 %v2316_v4, %v2315_v2  ;;  %v2299_v6 = vld [vmem:[#allocation12 + $0x50] sm:$0xff] }
 0x398   : > { %2873 = vmatprep.mubr.f32.mxu0 %v2795_v11  ;;  %2492 = vmatmul.mubr.f32.gmra.mrb[20].mxu1 %v2411_v13  ;;  %v5906_v41 = vpack.c.bf16 %v2294_v39, %v2293_v38  ;;  %v5914_v5 = vpack.c.bf16 %v2298_v62, %v2297_v60  ;;  %v2300_v7 = vld [vmem:[#allocation12 + $0x58] sm:$0xff]  ;;  %v2317_v10 = vld [vmem:[#allocation12 + $0xe0] sm:$0xff]  ;;  %v2318_v11 = vld [vmem:[#allocation12 + $0xe8] sm:$0xff]  ;;  %v2790_v43 = vrot.slane %v7760_v0, 2 }
 0x399   : > { %2874 = vmatmul.mubr.f32.gmra.mrb[10].mxu0 %v2793_v14  ;;  %5871 = vmatpush3.bf16.msra.mxu1 %v5868_v50  ;;  %v2296_v50 = vld [vmem:[#allocation12 + $0x38] sm:$0xff]  ;;  %v5918_v9 = vpack.c.bf16 %v2300_v7, %v2299_v6  ;;  %v2301_v13 = vld [vmem:[#allocation12 + $0x60] sm:$0xff]  ;;  %v2302_v14 = vld [vmem:[#allocation12 + $0x68] sm:$0xff] }
 0x39a   : > { %4964 = vmatprep.mubr.f32.mxu1 %v2409_v40  ;;  %5873 = vmatprep.subr.bf16.mxu1 %v5872_v12  ;;  %v5910_v52 = vpack.c.bf16 %v2296_v50, %v2295_v48  ;;  %v5922_v40 = vpack.c.bf16 %v2302_v14, %v2301_v13  ;;  %v2329_v46 = vld [vmem:[#allocation12 + $0x140] sm:$0xff]  ;;  %v2330_v28 = vld [vmem:[#allocation12 + $0x148] sm:$0xff]  ;;  %v2335_v3 = vld [vmem:[#allocation12 + $0x170] sm:$0xff] }
 0x39b   : > { %v5944_v49 = vpack.c.bf16 %v2330_v28, %v2329_v46  ;;  %v2334_v32 = vld [vmem:[#allocation12 + $0x168] sm:$0xff]  ;;  %v2761_v35 = vld [vmem:[#allocation12 + $0x400] sm:$0xff]  ;;  %v2763_v38 = vld [vmem:[#allocation12 + $0x410] sm:$0xff] }
 0x39c   : > { %v2764_v39 = vld [vmem:[#allocation12 + $0x418] sm:$0xff]  ;;  %v2766_v48 = vld [vmem:[#allocation12 + $0x428] sm:$0xff]  ;;  %v2767_v25 = vld [vmem:[#allocation12 + $0x430] sm:$0xff] }
 0x39d   : > { %5875 = vmatpush3.bf16.msra.mxu1 %v5872_v12  ;;  %v5920_v12 = vpack.c.bf16 %v2318_v11, %v2317_v10  ;;  %v2769_v60 = vld [vmem:[#allocation12 + $0x440] sm:$0xff]  ;;  %v2770_v62 = vld [vmem:[#allocation12 + $0x448] sm:$0xff]  ;;  %v2771_v4 = vld [vmem:[#allocation12 + $0x450] sm:$0xff] }
 0x39e   : > { %5877 = vmatprep.subr.bf16.mxu1 %v5876_v16  ;;  %v6008_v2 = vpack.c.bf16 %v2770_v62, %v2769_v60  ;;  %v2774_v6 = vld [vmem:[#allocation12 + $0x468] sm:$0xff]  ;;  %v2775_v10 = vld [vmem:[#allocation12 + $0x470] sm:$0xff]  ;;  %v2776_v11 = vld [vmem:[#allocation12 + $0x478] sm:$0xff] }
 0x39f   : > { %v3008_v46 = vld [vmem:[#allocation15 + $0xc8] sm:$0xff] }
 0x3a0   : > { %v3325_v60 = vld [vmem:[#allocation18 + $0x80] sm:$0xff]  ;;  %v3326_v62 = vld [vmem:[#allocation18 + $0x88] sm:$0xff] }
 0x3a1   : > { %5879 = vmatpush3.bf16.msra.mxu1 %v5876_v16  ;;  %v5924_v16 = vpack.c.bf16 %v2320_v15, %v2319_v54  ;;  %v2999_v54 = vld [vmem:[#allocation15 + $0x80] sm:$0xff]  ;;  %v3000_v15 = vld [vmem:[#allocation15 + $0x88] sm:$0xff] }
 0x3a2   : > { %5881 = vmatprep.subr.bf16.mxu1 %v5880_v53 }
 0x3a5   : > { %5883 = vmatpush3.bf16.msra.mxu1 %v5880_v53  ;;  %v2321_v53 = vld [vmem:[#allocation12 + $0x100] sm:$0xff] }
 0x3a6   : > { %5885 = vmatprep.subr.bf16.mxu1 %v5884_v19 }
 0x3a9   : > { %5887 = vmatpush3.bf16.msra.mxu1 %v5884_v19  ;;  %v5928_v19 = vpack.c.bf16 %v2322_v58, %v2321_v53  ;;  %v3003_v53 = vld [vmem:[#allocation15 + $0xa0] sm:$0xff]  ;;  %v3004_v58 = vld [vmem:[#allocation15 + $0xa8] sm:$0xff] }
 0x3aa   : > { %5889 = vmatprep.subr.bf16.mxu1 %v5888_v21 }
 0x3ad   : > { %5891 = vmatpush3.bf16.msra.mxu1 %v5888_v21  ;;  %v5932_v21 = vpack.c.bf16 %v2324_v20, %v2323_v56  ;;  %v3005_v20 = vld [vmem:[#allocation15 + $0xb0] sm:$0xff] }
 0x3ae   : > { %5893 = vmatprep.subr.bf16.mxu1 %v5892_v23 }
 0x3b1   : > { %5895 = vmatpush3.bf16.msra.mxu1 %v5892_v23  ;;  %v2326_v23 = vld [vmem:[#allocation12 + $0x128] sm:$0xff] }
 0x3b2   : > { %5897 = vmatprep.subr.bf16.mxu1 %v5896_v26  ;;  %v5936_v24 = vpack.c.bf16 %v2326_v23, %v2325_v22  ;;  %v2285_v26 = vld [vmem:[#allocation2 + $0x10] sm:$0xff] }
 0x3b4   : > { %4965 = vmatmul.mubr.f32.vlgmr.msra.gmra.mrb[22].mxu1 %v2415_v33  ;;  %v2336_v33 = vld [vmem:[#allocation12 + $0x178] sm:$0xff] }
 0x3b5   : > { %5899 = vmatpush3.bf16.msra.mxu1 %v5898_v8  ;;  %2636 = vmatprep.mubr.f32.mxu1 %v2284_v47  ;;  %v2332_v8 = vld [vmem:[#allocation12 + $0x158] sm:$0xff]  ;;  %v5956_v34 = vpack.c.bf16 %v2336_v33, %v2335_v3  ;;  %v2762_v47 = vld [vmem:[#allocation12 + $0x408] sm:$0xff] }
 0x3b6   : > { %5901 = vmatprep.subr.bf16.mxu1 %v5900_v31  ;;  %v2333_v31 = vld [vmem:[#allocation12 + $0x160] sm:$0xff]  ;;  %v3012_v33 = vld [vmem:[#allocation15 + $0xe8] sm:$0xff] }
 0x3b7   : > { %v3011_v3 = vld [vmem:[#allocation15 + $0xe0] sm:$0xff] }
 0x3b9   : > { %5903 = vmatpush3.bf16.msra.mxu1 %v5902_v36  ;;  %v2724_v36 = vld [vmem:[#allocation2 + $0x10] sm:$0xfc] }
 0x3ba   : > { %5905 = vmatprep.subr.bf16.mxu1 %v5904_v37  ;;  %v5992_v37 = vpack.c.bf16 %v2762_v47, %v2761_v35  ;;  %v2789_v42 = vrot.slane %v2724_v36, 2  ;;  %v6048_v35 = vpack.c.bf16 %v3012_v33, %v3011_v3  ;;  %v3014_v47 = vld [vmem:[#allocation15 + $0xf8] sm:$0xff]  ;;  %v2993_v3 = vld [vmem:[#allocation15 + $0x68] sm:$0xff] }
 0x3bc   : > { %v2791_v50 = vsel %vm1889_vm2, %v2789_v42, %v2790_v43 }
 0x3bd   : > { %5907 = vmatpush3.bf16.msra.mxu1 %v5906_v41  ;;  %v5996_v41 = vpack.c.bf16 %v2764_v39, %v2763_v38  ;;  %v2981_v38 = vld [vmem:[#allocation15 + $0x8] sm:$0xff] }
 0x3be   : > { %5909 = vmatprep.subr.bf16.mxu1 %v5908_v44  ;;  %v2765_v44 = vld [vmem:[#allocation12 + $0x420] sm:$0xff] }
 0x3bf   : > { %v6000_v51 = vpack.c.bf16 %v2766_v48, %v2765_v44 }
 0x3c1   : > { %5911 = vmatpush3.bf16.msra.mxu1 %v5910_v52  ;;  %v2768_v52 = vld [vmem:[#allocation12 + $0x438] sm:$0xff] }
 0x3c2   : > { %5913 = vmatprep.subr.bf16.mxu1 %v5912_v57  ;;  %v6004_v57 = vpack.c.bf16 %v2768_v52, %v2767_v25 }
 0x3c5   : > { %5915 = vmatpush3.bf16.msra.mxu1 %v5914_v5  ;;  %v2772_v5 = vld [vmem:[#allocation12 + $0x458] sm:$0xff] }
 0x3c6   : > { %5917 = vmatprep.subr.bf16.mxu1 %v5916_v63  ;;  %v2773_v63 = vld [vmem:[#allocation12 + $0x460] sm:$0xff] }
 0x3c7   : > { %v6016_v7 = vpack.c.bf16 %v2774_v6, %v2773_v63  ;;  %v3329_v63 = vld [vmem:[#allocation18 + $0xa0] sm:$0xff]  ;;  %v3330_v6 = vld [vmem:[#allocation18 + $0xa8] sm:$0xff] }
 0x3c9   : > { %5919 = vmatpush3.bf16.msra.mxu1 %v5918_v9  ;;  %v6020_v9 = vpack.c.bf16 %v2776_v11, %v2775_v10  ;;  %v4308_v11 = vld [vmem:[#allocation14] ss:$0 sm:$0xff] }
 0x3ca   : > { %5921 = vmatprep.subr.bf16.mxu1 %v5920_v12  ;;  %v2727_v12 = vld [vmem:[#allocation2 + $0x40] sm:$0x3] }
 0x3cb   : > { %v2796_v13 = vrot.slane %v2727_v12, 2 }
 0x3cd   : > { %5923 = vmatpush3.bf16.msra.mxu1 %v5922_v40  ;;  %v2797_v14 = vsel %vm1889_vm2, %v2790_v43, %v2796_v13  ;;  %v3001_v40 = vld [vmem:[#allocation15 + $0x90] sm:$0xff] }
 0x3ce   : > { %5925 = vmatprep.subr.bf16.mxu1 %v5924_v16  ;;  %v6024_v16 = vpack.c.bf16 %v3000_v15, %v2999_v54  ;;  %v6028_v45 = vpack.c.bf16 %v3002_v17, %v3001_v40 }
 0x3d0   : > { %6025 = vmatprep.subr.bf16.mxu0 %v6024_v16 }
 0x3d1   : > { %5927 = vmatpush3.bf16.msra.mxu1 %v5926_v18  ;;  %6027 = vmatpush3.bf16.msra.mxu0 %v6024_v16  ;;  %v6032_v18 = vpack.c.bf16 %v3004_v58, %v3003_v53 }
 0x3d2   : > { %5929 = vmatprep.subr.bf16.mxu1 %v5928_v19  ;;  %6029 = vmatprep.subr.bf16.mxu0 %v6028_v45 }
 0x3d4   : > { %2637 = vmatmul.mubr.f32.vlgmr.msra.gmra.mrb[24].mxu1 %v2283_v1 }
 0x3d5   : > { %2641 = vmatprep.mubr.f32.mxu1 %v7770_v55  ;;  %5931 = vmatpush3.bf16.msra.mxu1 %v5928_v19  ;;  %v5948_v55 = vpack.c.bf16 %v2332_v8, %v2331_v30 }
 0x3d6   : > { %5933 = vmatprep.subr.bf16.mxu1 %v5932_v21  ;;  %6031 = vmatpush3.bf16.msra.mxu0 %v6028_v45 }
 0x3d7   : > { %6033 = vmatprep.subr.bf16.mxu0 %v6032_v18 }
 0x3d8   : > { %2642 = vmatmul.mubr.f32.gmra.mrb[26].mxu1 %v7767_v29  ;;  %v5952_v29 = vpack.c.bf16 %v2334_v32, %v2333_v31  ;;  %v3009_v31 = vld [vmem:[#allocation15 + $0xd0] sm:$0xff]  ;;  %v3010_v32 = vld [vmem:[#allocation15 + $0xd8] sm:$0xff] }
 0x3d9   : > { %5935 = vmatpush3.bf16.msra.mxu1 %v5932_v21  ;;  %4999 = vmatprep.mubr.f32.mxu1 %v2285_v26  ;;  %v3006_v21 = vld [vmem:[#allocation15 + $0xb8] sm:$0xff] }
 0x3da   : > { %5937 = vmatprep.subr.bf16.mxu1 %v5936_v24  ;;  %6035 = vmatpush3.bf16.msra.mxu0 %v6032_v18  ;;  %v6036_v23 = vpack.c.bf16 %v3006_v21, %v3005_v20 }
 0x3dc   : > { %6037 = vmatprep.subr.bf16.mxu0 %v6036_v23 }
 0x3dd   : > { %5939 = vmatpush3.bf16.msra.mxu1 %v5936_v24 }
 0x3de   : > { %5941 = vmatprep.subr.bf16.mxu1 %v5940_v27  ;;  %6039 = vmatpush3.bf16.msra.mxu0 %v6036_v23 }
 0x3e1   : > { %5943 = vmatpush3.bf16.msra.mxu1 %v5940_v27  ;;  %v3007_v27 = vld [vmem:[#allocation15 + $0xc0] sm:$0xff] }
 0x3e2   : > { %5945 = vmatprep.subr.bf16.mxu1 %v5944_v49  ;;  %v6040_v30 = vpack.c.bf16 %v3008_v46, %v3007_v27  ;;  %v2986_v27 = vld [vmem:[#allocation15 + $0x30] sm:$0xff]  ;;  %v2987_v46 = vld [vmem:[#allocation15 + $0x38] sm:$0xff] }
 0x3e4   : > { %6041 = vmatprep.subr.bf16.mxu0 %v6040_v30 }
 0x3e5   : > { %5947 = vmatpush3.bf16.msra.mxu1 %v5944_v49  ;;  %6043 = vmatpush3.bf16.msra.mxu0 %v6040_v30  ;;  %v2989_v30 = vld [vmem:[#allocation15 + $0x48] sm:$0xff] }
 0x3e6   : > { %5949 = vmatprep.subr.bf16.mxu1 %v5948_v55 }
 0x3e9   : > { %5951 = vmatpush3.bf16.msra.mxu1 %v5948_v55 }
 0x3ea   : > { %5953 = vmatprep.subr.bf16.mxu1 %v5952_v29 }
 0x3ed   : > { %5955 = vmatpush3.bf16.msra.mxu1 %v5952_v29  ;;  %v6044_v29 = vpack.c.bf16 %v3010_v32, %v3009_v31  ;;  %v2991_v31 = vld [vmem:[#allocation15 + $0x58] sm:$0xff] }
 0x3ee   : > { %5957 = vmatprep.subr.bf16.mxu1 %v5956_v34 }
 0x3ef   : > { %6045 = vmatprep.subr.bf16.mxu0 %v6044_v29 }
 0x3f0   : > { %6047 = vmatpush3.bf16.msra.mxu0 %v6044_v29  ;;  %v2992_v29 = vld [vmem:[#allocation15 + $0x60] sm:$0xff] }
 0x3f1   : > { %5959 = vmatpush3.bf16.msra.mxu1 %v5956_v34  ;;  %v3013_v34 = vld [vmem:[#allocation15 + $0xf0] sm:$0xff]  ;;  %6049 = vmatprep.subr.bf16.mxu0 %v6048_v35  ;;  %v6080_v33 = vpack.c.bf16 %v2993_v3, %v2992_v29  ;;  %v3340_v29 = vld [vmem:[#allocation18 + $0xf8] sm:$0xff] }
 0x3f2   : > { %5993 = vmatprep.subr.bf16.mxu1 %v5992_v37  ;;  %v6052_v36 = vpack.c.bf16 %v3014_v47, %v3013_v34  ;;  %v2994_v34 = vld [vmem:[#allocation15 + $0x70] sm:$0xff] }
 0x3f4   : > { %5000 = vmatmul.mubr.f32.vlgmr.msra.gmra.mrb[22].mxu1 %v7760_v0  ;;  %v6012_v0 = vpack.c.bf16 %v2772_v5, %v2771_v4  ;;  %6051 = vmatpush3.bf16.msra.mxu0 %v6048_v35  ;;  %v6120_v4 = vpack.c.bf16 %v3326_v62, %v3325_v60  ;;  %v3328_v5 = vld [vmem:[#allocation18 + $0x98] sm:$0xff] }
 0x3f5   : > { %5995 = vmatpush3.bf16.msra.mxu1 %v5992_v37  ;;  %5034 = vmatprep.mubr.f32.mxu1 %v2791_v50  ;;  %v2980_v37 = vld [vmem:[#allocation15] sm:$0xff]  ;;  %v2995_v35 = vld [vmem:[#allocation15 + $0x78] sm:$0xff] }
 0x3f6   : > { %5997 = vmatprep.subr.bf16.mxu1 %v5996_v41  ;;  %6053 = vmatprep.subr.bf16.mxu0 %v6052_v36  ;;  %v6056_v39 = vpack.c.bf16 %v2981_v38, %v2980_v37  ;;  %v6084_v47 = vpack.c.bf16 %v2995_v35, %v2994_v34  ;;  %v3179_v37 = vld [vmem:[#allocation15 + $0x108] sm:$0xff]  ;;  %v3185_v60 = vld [vmem:[#allocation15 + $0x138] sm:$0xff] }
 0x3f7   : > { %v3655_v34 = vld [vmem:[#allocation21 + $0xd0] sm:$0xff]  ;;  %v3656_v35 = vld [vmem:[#allocation21 + $0xd8] sm:$0xff] }
 0x3f8   : > { %6055 = vmatpush3.bf16.msra.mxu0 %v6052_v36  ;;  %v3178_v36 = vld [vmem:[#allocation15 + $0x100] sm:$0xff] }
 0x3f9   : > { %5999 = vmatpush3.bf16.msra.mxu1 %v5996_v41  ;;  %6057 = vmatprep.subr.bf16.mxu0 %v6056_v39 }
 0x3fa   : > { %6001 = vmatprep.subr.bf16.mxu1 %v6000_v51 }
 0x3fd   : > { %6003 = vmatpush3.bf16.msra.mxu1 %v6000_v51 }
 0x3fe   : > { %6005 = vmatprep.subr.bf16.mxu1 %v6004_v57 }
 0x401   : > { %6007 = vmatpush3.bf16.msra.mxu1 %v6004_v57 }
 0x402   : > { %6009 = vmatprep.subr.bf16.mxu1 %v6008_v2 }
 0x405   : > { %6011 = vmatpush3.bf16.msra.mxu1 %v6008_v2  ;;  %v3327_v2 = vld [vmem:[#allocation18 + $0x90] sm:$0xff] }
 0x406   : > { %6013 = vmatprep.subr.bf16.mxu1 %v6012_v0 }
 0x409   : > { %6015 = vmatpush3.bf16.msra.mxu1 %v6012_v0  ;;  %v6124_v0 = vpack.c.bf16 %v3328_v5, %v3327_v2  ;;  %v3186_v2 = vld [vmem:[#allocation15 + $0x140] sm:$0xff] }
 0x40a   : > { %6017 = vmatprep.subr.bf16.mxu1 %v6016_v7 }
 0x40d   : > { %6019 = vmatpush3.bf16.msra.mxu1 %v6016_v7  ;;  %v6128_v7 = vpack.c.bf16 %v3330_v6, %v3329_v63  ;;  %v3189_v63 = vld [vmem:[#allocation15 + $0x158] sm:$0xff] }
 0x40e   : > { %6021 = vmatprep.subr.bf16.mxu1 %v6020_v9 }
 0x411   : > { %6023 = vmatpush3.bf16.msra.mxu1 %v6020_v9 }
 0x412   : > { %6121 = vmatprep.subr.bf16.mxu1 %v6120_v4 }
 0x414   : > { %5035 = vmatmul.mubr.f32.vlgmr.msra.gmra.mrb[22].mxu1 %v2797_v14 }
 0x415   : > { %6123 = vmatpush3.bf16.msra.mxu1 %v6120_v4  ;;  %v3187_v4 = vld [vmem:[#allocation15 + $0x148] sm:$0xff] }
 0x416   : > { %6125 = vmatprep.subr.bf16.mxu1 %v6124_v0  ;;  %v6104_v5 = vpack.c.bf16 %v3187_v4, %v3186_v2 }
 0x419   : > { %6127 = vmatpush3.bf16.msra.mxu1 %v6124_v0  ;;  %v3188_v0 = vld [vmem:[#allocation15 + $0x150] sm:$0xff] }
 0x41a   : > { %6129 = vmatprep.subr.bf16.mxu1 %v6128_v7  ;;  %v6108_v6 = vpack.c.bf16 %v3189_v63, %v3188_v0 }
 0x41d   : > { %6131 = vmatpush3.bf16.msra.mxu1 %v6128_v7  ;;  %v3190_v7 = vld [vmem:[#allocation15 + $0x160] sm:$0xff] }
 0x467   : > { %v4529_v19 = vpop.f32.mrb[18].mxu1 }
 0x468   : > { %v4641_v56 = vpop.f32.mrb[8].mxu0  ;;  %v4530_v1 = vpop.f32.mrb[19].mxu1 }
 0x469   : > { %v4642_v22 = vpop.f32.mrb[9].mxu0  ;;  %v4531_v24 = vadd.f32 %v4530_v1, %v4529_v19  ;;  %v2982_v19 = vld [vmem:[#allocation15 + $0x10] sm:$0xff] }
 0x46a   : > { %v4643_v59 = vadd.f32 %v4642_v22, %v4641_v56  ;;  %v2983_v56 = vld [vmem:[#allocation15 + $0x18] sm:$0xff] }
 0x46b   : > { %v4532_v61 = vpop.f32.mrb[20].mxu1  ;;  %v6060_v22 = vpack.c.bf16 %v2983_v56, %v2982_v19  ;;  %v3648_v19 = vld [vmem:[#allocation21 + $0x98] sm:$0xff] }
 0x46c   : > { %v4644_v26 = vpop.f32.mrb[10].mxu0  ;;  %v4533_v28 = vpop.f32.mrb[21].mxu1 }
 0x46d   : > { %v4645_v49 = vpop.f32.mrb[11].mxu0  ;;  %v4534_v8 = vadd.f32 %v4533_v28, %v4532_v61  ;;  %v6068_v28 = vpack.c.bf16 %v2987_v46, %v2986_v27  ;;  %v3652_v46 = vld [vmem:[#allocation21 + $0xb8] sm:$0xff] }
 0x46e   : > { %v4646_v55 = vadd.f32 %v4645_v49, %v4644_v26  ;;  %v2988_v49 = vld [vmem:[#allocation15 + $0x40] sm:$0xff] }
 0x4a7   : > { %v4585_v42 = vpop.f32.mrb[24].mxu1 }
 0x4a8   : > { %v4586_v43 = vpop.f32.mrb[25].mxu1 }
 0x4a9   : > { %v4587_v41 = vadd.f32 %v4586_v43, %v4585_v42  ;;  %v3180_v42 = vld [vmem:[#allocation15 + $0x110] sm:$0xff]  ;;  %v3181_v43 = vld [vmem:[#allocation15 + $0x118] sm:$0xff] }
 0x4ab   : > { %v6329_v44 = vadd.f32 %v4587_v41, %v4531_v24  ;;  %v4588_v48 = vpop.f32.mrb[26].mxu1  ;;  %v2984_v24 = vld [vmem:[#allocation15 + $0x20] sm:$0xff] }
 0x4ac   : > { %v4589_v50 = vpop.f32.mrb[27].mxu1 }
 0x4ad   : > { %v4590_v51 = vadd.f32 %v4589_v50, %v4588_v48  ;;  %v6330_v25 = vadd.f32 %v6329_v44, %v4643_v59  ;;  %v2985_v59 = vld [vmem:[#allocation15 + $0x28] sm:$0xff]  ;;  %v6092_v48 = vpack.c.bf16 %v3181_v43, %v3180_v42  ;;  %v3182_v50 = vld [vmem:[#allocation15 + $0x120] sm:$0xff] }
 0x4ae   : > { %v6064_v26 = vpack.c.bf16 %v2985_v59, %v2984_v24  ;;  %v3335_v59 = vld [vmem:[#allocation18 + $0xd0] sm:$0xff] }
 0x4af   : > { %v6326_v52 = vadd.f32 %v4590_v51, %v4534_v8  ;;  %v6072_v8 = vpack.c.bf16 %v2989_v30, %v2988_v49  ;;  %v3183_v51 = vld [vmem:[#allocation15 + $0x128] sm:$0xff] }
 0x4b0   : > { %v3337_v49 = vld [vmem:[#allocation18 + $0xe0] sm:$0xff]  ;;  %v3338_v30 = vld [vmem:[#allocation18 + $0xe8] sm:$0xff] }
 0x4b1   : > { %v6327_v57 = vadd.f32 %v6326_v52, %v4646_v55  ;;  %v2990_v55 = vld [vmem:[#allocation15 + $0x50] sm:$0xff]  ;;  %v6096_v52 = vpack.c.bf16 %v3183_v51, %v3182_v50  ;;  %v3626_v50 = vld [vmem:[#allocation21] sm:$0xff] }
 0x4b2   : > { %v6076_v32 = vpack.c.bf16 %v2991_v31, %v2990_v55  ;;  %v6144_v55 = vpack.c.bf16 %v3338_v30, %v3337_v49  ;;  %v3654_v31 = vld [vmem:[#allocation21 + $0xc8] sm:$0xff] }
 0x4b3   : > { %v3658_v42 = vld [vmem:[#allocation21 + $0xe8] sm:$0xff] }
 0x4b4   : > { %v3627_v51 = vld [vmem:[#allocation21 + $0x8] sm:$0xff] }
 0x4e7   : > { %v5036_v10 = vpop.f32.mrb[22].mxu1 }
 0x4e8   : > { %v6328_v9 = vadd.f32 %v6327_v57, %v5036_v10  ;;  %v2945_v12 = vpop.f32.mrb[23].mxu1  ;;  %v3184_v57 = vld [vmem:[#allocation15 + $0x130] sm:$0xff]  ;;  %v3191_v10 = vld [vmem:[#allocation15 + $0x168] sm:$0xff] }
 0x4e9   : > { %v6331_v13 = vadd.f32 %v6330_v25, %v2945_v12  ;;  %v6100_v62 = vpack.c.bf16 %v3185_v60, %v3184_v57  ;;  %v3193_v12 = vld [vmem:[#allocation15 + $0x178] sm:$0xff] }
 0x4ea   : > { %v2964_v14 = vadd.f32 %v6328_v9, %v4308_v11  ;;  %v3192_v9 = vld [vmem:[#allocation15 + $0x170] sm:$0xff] }
 0x4eb   : > { %v2963_v54 = vadd.f32 %v6331_v13, %v4308_v11  ;;  %v6112_v11 = vpack.c.bf16 %v3191_v10, %v3190_v7  ;;  %v6116_v13 = vpack.c.bf16 %v3193_v12, %v3192_v9  ;;  %v3308_v7 = vld [vmem:[#allocation18 + $0x10] sm:$0xff]  ;;  %v3309_v9 = vld [vmem:[#allocation18 + $0x18] sm:$0xff] }
 0x4ec   : > { %v2966_v15 = vmax.f32 %v2964_v14, 0.0  ;;  %v3645_v14 = vld [vmem:[#allocation21 + $0x80] sm:$0xff] }
 0x4ed   : > { %v2965_v40 = vmax.f32 %v2963_v54, 0.0  ;;  %v3646_v54 = vld [vmem:[#allocation21 + $0x88] sm:$0xff] }
 0x4ee   : > { %v2970_v16 = vrot.slane %v2966_v15, 7 }
 0x4ef   : > { %v2969_v17 = vrot.slane %v2965_v40, 7  ;;  %v6216_v40 = vpack.c.bf16 %v3646_v54, %v3645_v14 }
 0x4f0   : > { %2977 = vst [vmem:[#allocation2 + $0x30] sm:$0x1] %v2970_v16 }
 0x4f1   : > { %v7795_v45 = vsel %vm764_vm0, %v2969_v17, %v2970_v16  ;;  %2975 = vst [vmem:[#allocation2] sm:$0xfe] %v2969_v17 }
 0x4f2   : > { %v3019_v21 = vrot.slane %v7795_v45, 1  ;;  %v3197_v44 = vrot.slane %v7795_v45, 2 }
 0x4f7   : > { %v2997_v53 = vld [vmem:[#allocation2 + $0x30] sm:$0x1] }
 0x4f8   : > { %v2996_v58 = vld [vmem:[#allocation2] sm:$0xfe]  ;;  %v3021_v18 = vrot.slane %v2997_v53, 1  ;;  %v3176_v15 = vld [vmem:[#allocation2 + $0x30] sm:$0x3]  ;;  %v3332_v53 = vld [vmem:[#allocation18 + $0xb8] sm:$0xff] }
 0x4f9   : > { %v3018_v20 = vrot.slane %v2996_v58, 1  ;;  %v2978_v61 = vld [vmem:[#allocation2] sm:$0xff]  ;;  %v3199_v16 = vrot.slane %v3176_v15, 2 }
 0x4fa   : > { %v3022_v23 = vsel %vm1102_vm1, %v3019_v21, %v3021_v18  ;;  %v3175_v38 = vld [vmem:[#allocation2] sm:$0xfc] }
 0x4fb   : > { %v3020_v1 = vsel %vm1102_vm1, %v3018_v20, %v3019_v21  ;;  %v3196_v41 = vrot.slane %v3175_v38, 2  ;;  %v3200_v17 = vsel %vm1889_vm2, %v3197_v44, %v3199_v16  ;;  %v3647_v58 = vld [vmem:[#allocation21 + $0x90] sm:$0xff]  ;;  %v3333_v20 = vld [vmem:[#allocation18 + $0xc0] sm:$0xff]  ;;  %v3334_v21 = vld [vmem:[#allocation18 + $0xc8] sm:$0xff] }
 0x4fc   : > { %5069 = vmatprep.mubr.f32.mxu0 %v3020_v1  ;;  %v6220_v56 = vpack.c.bf16 %v3648_v19, %v3647_v58  ;;  %v3649_v1 = vld [vmem:[#allocation21 + $0xa0] sm:$0xff] }
 0x4fd   : > { %5070 = vmatmul.mubr.f32.vlgmr.msra.gmra.mrb[12].mxu0 %v3022_v23  ;;  %v3198_v25 = vsel %vm1889_vm2, %v3196_v41, %v3197_v44  ;;  %v3650_v23 = vld [vmem:[#allocation21 + $0xa8] sm:$0xff]  ;;  %v3657_v38 = vld [vmem:[#allocation21 + $0xe0] sm:$0xff]  ;;  %v3659_v41 = vld [vmem:[#allocation21 + $0xf0] sm:$0xff] }
 0x4fe   : > { %6059 = vmatpush3.bf16.msra.mxu0 %v6056_v39  ;;  %5104 = vmatprep.mubr.f32.mxu0 %v2978_v61  ;;  %v6088_v39 = vpack.c.bf16 %v3179_v37, %v3178_v36  ;;  %v6224_v24 = vpack.c.bf16 %v3650_v23, %v3649_v1  ;;  %v3336_v61 = vld [vmem:[#allocation18 + $0xd8] sm:$0xff]  ;;  %v3306_v36 = vld [vmem:[#allocation18] sm:$0xff]  ;;  %v3307_v37 = vld [vmem:[#allocation18 + $0x8] sm:$0xff]  ;;  %v6240_v43 = vpack.c.bf16 %v3658_v42, %v3657_v38 }
 0x4ff   : > { %6061 = vmatprep.subr.bf16.mxu0 %v6060_v22  ;;  %v6140_v27 = vpack.c.bf16 %v3336_v61, %v3335_v59  ;;  %v3660_v44 = vld [vmem:[#allocation21 + $0xf8] sm:$0xff]  ;;  %v3312_v23 = vld [vmem:[#allocation18 + $0x30] sm:$0xff]  ;;  %v3634_v42 = vld [vmem:[#allocation21 + $0x40] sm:$0xff] }
 0x500   : > { %v3310_v19 = vld [vmem:[#allocation18 + $0x20] sm:$0xff]  ;;  %v3628_v61 = vld [vmem:[#allocation21 + $0x10] sm:$0xff] }
 0x501   : > { %v3318_v38 = vld [vmem:[#allocation18 + $0x60] sm:$0xff] }
 0x502   : > { %6063 = vmatpush3.bf16.msra.mxu0 %v6060_v22  ;;  %v6136_v22 = vpack.c.bf16 %v3334_v21, %v3333_v20 }
 0x503   : > { %6065 = vmatprep.subr.bf16.mxu0 %v6064_v26 }
 0x506   : > { %6067 = vmatpush3.bf16.msra.mxu0 %v6064_v26  ;;  %v3651_v26 = vld [vmem:[#allocation21 + $0xb0] sm:$0xff] }
 0x507   : > { %6069 = vmatprep.subr.bf16.mxu0 %v6068_v28 }
 0x50a   : > { %6071 = vmatpush3.bf16.msra.mxu0 %v6068_v28  ;;  %v6228_v28 = vpack.c.bf16 %v3652_v46, %v3651_v26  ;;  %v3629_v26 = vld [vmem:[#allocation21 + $0x18] sm:$0xff] }
 0x50b   : > { %6073 = vmatprep.subr.bf16.mxu0 %v6072_v8  ;;  %v6252_v30 = vpack.c.bf16 %v3629_v26, %v3628_v61  ;;  %v3828_v61 = vld [vmem:[#allocation21 + $0x120] sm:$0xff]  ;;  %v3829_v26 = vld [vmem:[#allocation21 + $0x128] sm:$0xff] }
 0x50e   : > { %6075 = vmatpush3.bf16.msra.mxu0 %v6072_v8  ;;  %v3653_v8 = vld [vmem:[#allocation21 + $0xc0] sm:$0xff] }
 0x50f   : > { %6077 = vmatprep.subr.bf16.mxu0 %v6076_v32  ;;  %v6232_v3 = vpack.c.bf16 %v3654_v31, %v3653_v8  ;;  %v3315_v8 = vld [vmem:[#allocation18 + $0x48] sm:$0xff] }
 0x510   : > { %v3631_v31 = vld [vmem:[#allocation21 + $0x28] sm:$0xff] }
 0x512   : > { %6079 = vmatpush3.bf16.msra.mxu0 %v6076_v32  ;;  %v3339_v32 = vld [vmem:[#allocation18 + $0xf0] sm:$0xff] }
 0x513   : > { %6081 = vmatprep.subr.bf16.mxu0 %v6080_v33 }
 0x516   : > { %6083 = vmatpush3.bf16.msra.mxu0 %v6080_v33  ;;  %v6148_v33 = vpack.c.bf16 %v3340_v29, %v3339_v32 }
 0x517   : > { %6085 = vmatprep.subr.bf16.mxu0 %v6084_v47 }
 0x51a   : > { %6087 = vmatpush3.bf16.msra.mxu0 %v6084_v47  ;;  %v6236_v47 = vpack.c.bf16 %v3656_v35, %v3655_v34  ;;  %v3317_v34 = vld [vmem:[#allocation18 + $0x58] sm:$0xff] }
 0x51b   : > { %6089 = vmatprep.subr.bf16.mxu0 %v6088_v39  ;;  %v3632_v35 = vld [vmem:[#allocation21 + $0x30] sm:$0xff] }
 0x51d   : > { %5105 = vmatmul.mubr.f32.vlgmr.msra.gmra.mrb[12].mxu0 %v7795_v45  ;;  %v3331_v45 = vld [vmem:[#allocation18 + $0xb0] sm:$0xff] }
 0x51e   : > { %6091 = vmatpush3.bf16.msra.mxu0 %v6088_v39  ;;  %5139 = vmatprep.mubr.f32.mxu0 %v3198_v25  ;;  %v6132_v18 = vpack.c.bf16 %v3332_v53, %v3331_v45  ;;  %v6152_v39 = vpack.c.bf16 %v3307_v37, %v3306_v36  ;;  %v7804_v25 = vpack.c.bf16 %v3627_v51, %v3626_v50  ;;  %v3321_v50 = vld [vmem:[#allocation18 + $0x78] sm:$0xff] }
 0x51f   : > { %6093 = vmatprep.subr.bf16.mxu0 %v6092_v48  ;;  %v6156_v53 = vpack.c.bf16 %v3309_v9, %v3308_v7  ;;  %v3636_v51 = vld [vmem:[#allocation21 + $0x50] sm:$0xff]  ;;  %v3641_v9 = vld [vmem:[#allocation21 + $0x78] sm:$0xff] }
 0x520   : > { %6133 = vmatprep.subr.bf16.mxu1 %v6132_v18  ;;  %v3507_v7 = vld [vmem:[#allocation18 + $0x118] sm:$0xff] }
 0x521   : > { %6135 = vmatpush3.bf16.msra.mxu1 %v6132_v18 }
 0x522   : > { %6095 = vmatpush3.bf16.msra.mxu0 %v6092_v48  ;;  %6137 = vmatprep.subr.bf16.mxu1 %v6136_v22  ;;  %v6244_v48 = vpack.c.bf16 %v3660_v44, %v3659_v41 }
 0x523   : > { %6097 = vmatprep.subr.bf16.mxu0 %v6096_v52 }
 0x525   : > { %6139 = vmatpush3.bf16.msra.mxu1 %v6136_v22 }
 0x526   : > { %6099 = vmatpush3.bf16.msra.mxu0 %v6096_v52  ;;  %6141 = vmatprep.subr.bf16.mxu1 %v6140_v27  ;;  %v4309_v52 = vld [vmem:[#allocation17] ss:$0 sm:$0xff] }
 0x527   : > { %6101 = vmatprep.subr.bf16.mxu0 %v6100_v62 }
 0x529   : > { %6143 = vmatpush3.bf16.msra.mxu1 %v6140_v27 }
 0x52a   : > { %6103 = vmatpush3.bf16.msra.mxu0 %v6100_v62  ;;  %6145 = vmatprep.subr.bf16.mxu1 %v6144_v55 }
 0x52b   : > { %6105 = vmatprep.subr.bf16.mxu0 %v6104_v5 }
 0x52d   : > { %6147 = vmatpush3.bf16.msra.mxu1 %v6144_v55  ;;  %v3630_v55 = vld [vmem:[#allocation21 + $0x20] sm:$0xff] }
 0x52e   : > { %6107 = vmatpush3.bf16.msra.mxu0 %v6104_v5  ;;  %6149 = vmatprep.subr.bf16.mxu1 %v6148_v33 }
 0x52f   : > { %6109 = vmatprep.subr.bf16.mxu0 %v6108_v6 }
 0x531   : > { %6151 = vmatpush3.bf16.msra.mxu1 %v6148_v33  ;;  %v3316_v33 = vld [vmem:[#allocation18 + $0x50] sm:$0xff] }
 0x532   : > { %6111 = vmatpush3.bf16.msra.mxu0 %v6108_v6  ;;  %6153 = vmatprep.subr.bf16.mxu1 %v6152_v39  ;;  %v6172_v36 = vpack.c.bf16 %v3317_v34, %v3316_v33  ;;  %v3833_v33 = vld [vmem:[#allocation21 + $0x148] sm:$0xff] }
 0x533   : > { %6113 = vmatprep.subr.bf16.mxu0 %v6112_v11 }
 0x536   : > { %6115 = vmatpush3.bf16.msra.mxu0 %v6112_v11 }
 0x537   : > { %6117 = vmatprep.subr.bf16.mxu0 %v6116_v13 }
 0x53a   : > { %6119 = vmatpush3.bf16.msra.mxu0 %v6116_v13 }
 0x53b   : > { %6217 = vmatprep.subr.bf16.mxu0 %v6216_v40 }
 0x53d   : > { %5140 = vmatmul.mubr.f32.vlgmr.msra.gmra.mrb[12].mxu0 %v3200_v17 }
 0x53e   : > { %6219 = vmatpush3.bf16.msra.mxu0 %v6216_v40 }
 0x53f   : > { %6221 = vmatprep.subr.bf16.mxu0 %v6220_v56 }
 0x542   : > { %6223 = vmatpush3.bf16.msra.mxu0 %v6220_v56  ;;  %v3311_v56 = vld [vmem:[#allocation18 + $0x28] sm:$0xff] }
 0x543   : > { %6225 = vmatprep.subr.bf16.mxu0 %v6224_v24  ;;  %v6160_v20 = vpack.c.bf16 %v3311_v56, %v3310_v19  ;;  %v3510_v19 = vld [vmem:[#allocation18 + $0x130] sm:$0xff]  ;;  %v3511_v56 = vld [vmem:[#allocation18 + $0x138] sm:$0xff] }
 0x546   : > { %6227 = vmatpush3.bf16.msra.mxu0 %v6224_v24  ;;  %v3313_v24 = vld [vmem:[#allocation18 + $0x38] sm:$0xff] }
 0x547   : > { %6229 = vmatprep.subr.bf16.mxu0 %v6228_v28  ;;  %v6164_v46 = vpack.c.bf16 %v3313_v24, %v3312_v23  ;;  %v3512_v24 = vld [vmem:[#allocation18 + $0x140] sm:$0xff] }
 0x54a   : > { %6231 = vmatpush3.bf16.msra.mxu0 %v6228_v28  ;;  %v3314_v28 = vld [vmem:[#allocation18 + $0x40] sm:$0xff] }
 0x54b   : > { %6233 = vmatprep.subr.bf16.mxu0 %v6232_v3  ;;  %v6168_v29 = vpack.c.bf16 %v3315_v8, %v3314_v28  ;;  %v6288_v28 = vpack.c.bf16 %v3829_v26, %v3828_v61  ;;  %v3830_v8 = vld [vmem:[#allocation21 + $0x130] sm:$0xff] }
 0x54e   : > { %6235 = vmatpush3.bf16.msra.mxu0 %v6232_v3  ;;  %v6256_v3 = vpack.c.bf16 %v3631_v31, %v3630_v55  ;;  %v3831_v55 = vld [vmem:[#allocation21 + $0x138] sm:$0xff] }
 0x54f   : > { %6237 = vmatprep.subr.bf16.mxu0 %v6236_v47 }
 0x552   : > { %6239 = vmatpush3.bf16.msra.mxu0 %v6236_v47  ;;  %v3633_v47 = vld [vmem:[#allocation21 + $0x38] sm:$0xff] }
 0x553   : > { %6241 = vmatprep.subr.bf16.mxu0 %v6240_v43  ;;  %v6260_v37 = vpack.c.bf16 %v3633_v47, %v3632_v35  ;;  %v3518_v47 = vld [vmem:[#allocation18 + $0x170] sm:$0xff] }
 0x556   : > { %6243 = vmatpush3.bf16.msra.mxu0 %v6240_v43  ;;  %v3635_v43 = vld [vmem:[#allocation21 + $0x48] sm:$0xff] }
 0x557   : > { %6245 = vmatprep.subr.bf16.mxu0 %v6244_v48  ;;  %v6264_v44 = vpack.c.bf16 %v3635_v43, %v3634_v42  ;;  %v3836_v43 = vld [vmem:[#allocation21 + $0x160] sm:$0xff] }
 0x55a   : > { %6247 = vmatpush3.bf16.msra.mxu0 %v6244_v48  ;;  %v3320_v48 = vld [vmem:[#allocation18 + $0x70] sm:$0xff] }
 0x55b   : > { %6249 = vmatprep.subr.bf16.mxu0 %v7804_v25 }
 0x610   : > { %v5141_v57 = vpop.f32.mrb[12].mxu0 }
 0x611   : > { %v3288_v60 = vadd.f32 %v5141_v57, %v4309_v52  ;;  %v3269_v62 = vpop.f32.mrb[13].mxu0 }
 0x612   : > { %v3287_v2 = vadd.f32 %v4309_v52, %v3269_v62  ;;  %v6180_v52 = vpack.c.bf16 %v3321_v50, %v3320_v48  ;;  %v3505_v62 = vld [vmem:[#allocation18 + $0x108] sm:$0xff]  ;;  %v3838_v48 = vld [vmem:[#allocation21 + $0x170] sm:$0xff]  ;;  %v3839_v50 = vld [vmem:[#allocation21 + $0x178] sm:$0xff] }
 0x613   : > { %v3290_v4 = vmax.f32 %v3288_v60, 0.0  ;;  %v3504_v60 = vld [vmem:[#allocation18 + $0x100] sm:$0xff] }
 0x614   : > { %v3289_v5 = vmax.f32 %v3287_v2, 0.0  ;;  %v3638_v2 = vld [vmem:[#allocation21 + $0x60] sm:$0xff] }
 0x615   : > { %3292 = vst [vmem:[%s7808_s16 + $0x8] sm:$0xff] %v3290_v4  ;;  %v3296_v0 = vrot.slane %v3290_v4, 7  ;;  %v3639_v4 = vld [vmem:[#allocation21 + $0x68] sm:$0xff] }
 0x616   : > { %3291 = vst [vmem:[%s7808_s16] sm:$0xff] %v3289_v5  ;;  %v3295_v63 = vrot.slane %v3289_v5, 7  ;;  %v6184_v5 = vpack.c.bf16 %v3505_v62, %v3504_v60 }
 0x617   : > { %3303 = vst [vmem:[#allocation2 + $0x30] sm:$0x1] %v3296_v0 }
 0x618   : > { %v7813_v6 = vsel %vm764_vm0, %v3295_v63, %v3296_v0  ;;  %3301 = vst [vmem:[#allocation2] sm:$0xfe] %v3295_v63 }
 0x619   : > { %v3345_v40 = vrot.slane %v7813_v6, 1  ;;  %v7819_v16 = vrot.slane %v7813_v6, 2 }
 0x61e   : > { %v3323_v10 = vld [vmem:[#allocation2 + $0x30] sm:$0x1] }
 0x61f   : > { %v3502_v11 = vld [vmem:[#allocation2 + $0x30] sm:$0x3]  ;;  %v3322_v12 = vld [vmem:[#allocation2] sm:$0xfe]  ;;  %v3347_v14 = vrot.slane %v3323_v10, 1 }
 0x620   : > { %v7815_v13 = vld [vmem:[#allocation2] sm:$0xfc]  ;;  %3623 = vst [vmem:[#allocation2 + $0x30] sm:$0x1] %v3296_v0  ;;  %v3344_v15 = vrot.slane %v3322_v12, 1  ;;  %v3525_v17 = vrot.slane %v3502_v11, 2  ;;  %v6272_v0 = vpack.c.bf16 %v3639_v4, %v3638_v2 }
 0x621   : > { %v3304_v54 = vld [vmem:[#allocation2] sm:$0xff]  ;;  %v3348_v18 = vsel %vm1102_vm1, %v3345_v40, %v3347_v14  ;;  %v3522_v10 = vrot.slane %v7815_v13, 2 }
 0x622   : > { %3621 = vst [vmem:[#allocation2] sm:$0xfe] %v3295_v63  ;;  %v3346_v45 = vsel %vm1102_vm1, %v3344_v15, %v3345_v40  ;;  %v7824_v58 = vsel %vm1889_vm2, %v7819_v16, %v3525_v17  ;;  %v3506_v63 = vld [vmem:[#allocation18 + $0x110] sm:$0xff]  ;;  %v3509_v15 = vld [vmem:[#allocation18 + $0x128] sm:$0xff] }
 0x623   : > { %5174 = vmatprep.mubr.f32.mxu1 %v3346_v45  ;;  %v3640_v11 = vld [vmem:[#allocation21 + $0x70] sm:$0xff]  ;;  %v6188_v12 = vpack.c.bf16 %v3507_v7, %v3506_v63  ;;  %v3824_v17 = vld [vmem:[#allocation21 + $0x100] sm:$0xff]  ;;  %v3825_v45 = vld [vmem:[#allocation21 + $0x108] sm:$0xff] }
 0x624   : > { %5175 = vmatmul.mubr.f32.vlgmr.msra.gmra.mrb[28].mxu1 %v3348_v18  ;;  %v6276_v14 = vpack.c.bf16 %v3641_v9, %v3640_v11  ;;  %v6280_v18 = vpack.c.bf16 %v3825_v45, %v3824_v17 }
 0x625   : > { %6155 = vmatpush3.bf16.msra.mxu1 %v6152_v39  ;;  %5209 = vmatprep.mubr.f32.mxu1 %v3304_v54  ;;  %v3319_v39 = vld [vmem:[#allocation18 + $0x68] sm:$0xff]  ;;  %v3508_v54 = vld [vmem:[#allocation18 + $0x120] sm:$0xff] }
 0x626   : > { %6157 = vmatprep.subr.bf16.mxu1 %v6156_v53  ;;  %v6176_v41 = vpack.c.bf16 %v3319_v39, %v3318_v38  ;;  %v6192_v13 = vpack.c.bf16 %v3509_v15, %v3508_v54  ;;  %v3835_v38 = vld [vmem:[#allocation21 + $0x158] sm:$0xff] }
 0x627   : > { %v3643_v21 = vld [vmem:[#allocation2 + $0x30] sm:$0x1] }
 0x628   : > { %v3667_v22 = vrot.slane %v3643_v21, 1  ;;  %v3827_v21 = vld [vmem:[#allocation21 + $0x118] sm:$0xff] }
 0x629   : > { %v3642_v1 = vld [vmem:[#allocation2] sm:$0xfe]  ;;  %6159 = vmatpush3.bf16.msra.mxu1 %v6156_v53 }
 0x62a   : > { %v3664_v59 = vrot.slane %v3642_v1, 1  ;;  %6161 = vmatprep.subr.bf16.mxu1 %v6160_v20  ;;  %v3668_v49 = vsel %vm1102_vm1, %v3345_v40, %v3667_v22  ;;  %v3624_v32 = vld [vmem:[#allocation2] sm:$0xff]  ;;  %v6196_v22 = vpack.c.bf16 %v3511_v56, %v3510_v19 }
 0x62b   : > { %v3821_v53 = vld [vmem:[#allocation2] sm:$0xfc] }
 0x62c   : > { %v3666_v27 = vsel %vm1102_vm1, %v3664_v59, %v3345_v40  ;;  %v3524_v40 = vsel %vm1889_vm2, %v3522_v10, %v7819_v16  ;;  %v3842_v1 = vrot.slane %v3821_v53, 2  ;;  %v3513_v59 = vld [vmem:[#allocation18 + $0x148] sm:$0xff] }
 0x62d   : > { %5279 = vmatprep.mubr.f32.mxu0 %v3666_v27  ;;  %6163 = vmatpush3.bf16.msra.mxu1 %v6160_v20  ;;  %v3826_v20 = vld [vmem:[#allocation21 + $0x110] sm:$0xff] }
 0x62e   : > { %5280 = vmatmul.mubr.f32.vlgmr.msra.gmra.mrb[14].mxu0 %v3668_v49  ;;  %6165 = vmatprep.subr.bf16.mxu1 %v6164_v46  ;;  %v6284_v23 = vpack.c.bf16 %v3827_v21, %v3826_v20  ;;  %v3844_v27 = vsel %vm1889_vm2, %v3842_v1, %v7819_v16  ;;  %v3514_v49 = vld [vmem:[#allocation18 + $0x150] sm:$0xff] }
 0x62f   : > { %6251 = vmatpush3.bf16.msra.mxu0 %v7804_v25  ;;  %5314 = vmatprep.mubr.f32.mxu0 %v3624_v32  ;;  %v3637_v25 = vld [vmem:[#allocation21 + $0x58] sm:$0xff] }
 0x630   : > { %6253 = vmatprep.subr.bf16.mxu0 %v6252_v30  ;;  %v6268_v57 = vpack.c.bf16 %v3637_v25, %v3636_v51  ;;  %v3516_v32 = vld [vmem:[#allocation18 + $0x160] sm:$0xff]  ;;  %v6308_v51 = vpack.c.bf16 %v3839_v50, %v3838_v48 }
 0x631   : > { %6167 = vmatpush3.bf16.msra.mxu1 %v6164_v46  ;;  %v6200_v46 = vpack.c.bf16 %v3513_v59, %v3512_v24  ;;  %v3822_v25 = vld [vmem:[#allocation2 + $0x30] sm:$0x3] }
 0x632   : > { %6169 = vmatprep.subr.bf16.mxu1 %v6168_v29 }
 0x633   : > { %6255 = vmatpush3.bf16.msra.mxu0 %v6252_v30  ;;  %v3515_v30 = vld [vmem:[#allocation18 + $0x158] sm:$0xff] }
 0x634   : > { %6257 = vmatprep.subr.bf16.mxu0 %v6256_v3  ;;  %v6204_v31 = vpack.c.bf16 %v3515_v30, %v3514_v49 }
 0x635   : > { %6171 = vmatpush3.bf16.msra.mxu1 %v6168_v29  ;;  %v3517_v29 = vld [vmem:[#allocation18 + $0x168] sm:$0xff] }
 0x636   : > { %6173 = vmatprep.subr.bf16.mxu1 %v6172_v36  ;;  %v6208_v34 = vpack.c.bf16 %v3517_v29, %v3516_v32 }
 0x637   : > { %6259 = vmatpush3.bf16.msra.mxu0 %v6256_v3  ;;  %v3832_v3 = vld [vmem:[#allocation21 + $0x140] sm:$0xff] }
 0x638   : > { %6261 = vmatprep.subr.bf16.mxu0 %v6260_v37  ;;  %v6296_v35 = vpack.c.bf16 %v3833_v33, %v3832_v3 }
 0x639   : > { %6175 = vmatpush3.bf16.msra.mxu1 %v6172_v36  ;;  %v3519_v36 = vld [vmem:[#allocation18 + $0x178] sm:$0xff] }
 0x63a   : > { %6177 = vmatprep.subr.bf16.mxu1 %v6176_v41  ;;  %v6212_v39 = vpack.c.bf16 %v3519_v36, %v3518_v47 }
 0x63b   : > { %6263 = vmatpush3.bf16.msra.mxu0 %v6260_v37  ;;  %v3834_v37 = vld [vmem:[#allocation21 + $0x150] sm:$0xff] }
 0x63c   : > { %6265 = vmatprep.subr.bf16.mxu0 %v6264_v44  ;;  %v6300_v42 = vpack.c.bf16 %v3835_v38, %v3834_v37 }
 0x63d   : > { %6179 = vmatpush3.bf16.msra.mxu1 %v6176_v41  ;;  %v3837_v41 = vld [vmem:[#allocation21 + $0x168] sm:$0xff] }
 0x63e   : > { %6181 = vmatprep.subr.bf16.mxu1 %v6180_v52 }
 0x63f   : > { %6267 = vmatpush3.bf16.msra.mxu0 %v6264_v44  ;;  %v6304_v44 = vpack.c.bf16 %v3837_v41, %v3836_v43 }
 0x640   : > { %6269 = vmatprep.subr.bf16.mxu0 %v6268_v57 }
 0x641   : > { %6183 = vmatpush3.bf16.msra.mxu1 %v6180_v52  ;;  %v3845_v52 = vrot.slane %v3822_v25, 2 }
 0x642   : > { %6185 = vmatprep.subr.bf16.mxu1 %v6184_v5 }
 0x643   : > { %6271 = vmatpush3.bf16.msra.mxu0 %v6268_v57  ;;  %v3846_v57 = vsel %vm1889_vm2, %v7819_v16, %v3845_v52 }
 0x644   : > { %6273 = vmatprep.subr.bf16.mxu0 %v6272_v0  ;;  %5210 = vmatmul.mubr.f32.vlgmr.msra.gmra.mrb[28].mxu1 %v7813_v6 }
 0x645   : > { %6187 = vmatpush3.bf16.msra.mxu1 %v6184_v5  ;;  %5244 = vmatprep.mubr.f32.mxu1 %v3524_v40 }
 0x646   : > { %6189 = vmatprep.subr.bf16.mxu1 %v6188_v12 }
 0x647   : > { %6275 = vmatpush3.bf16.msra.mxu0 %v6272_v0 }
 0x648   : > { %6277 = vmatprep.subr.bf16.mxu0 %v6276_v14 }
 0x649   : > { %6191 = vmatpush3.bf16.msra.mxu1 %v6188_v12 }
 0x64a   : > { %6193 = vmatprep.subr.bf16.mxu1 %v6192_v13 }
 0x64b   : > { %6279 = vmatpush3.bf16.msra.mxu0 %v6276_v14 }
 0x64c   : > { %6281 = vmatprep.subr.bf16.mxu0 %v6280_v18 }
 0x64d   : > { %6195 = vmatpush3.bf16.msra.mxu1 %v6192_v13 }
 0x64e   : > { %5315 = vmatmul.mubr.f32.vlgmr.msra.gmra.mrb[14].mxu0 %v7813_v6  ;;  %6197 = vmatprep.subr.bf16.mxu1 %v6196_v22  ;;  %v6292_v6 = vpack.c.bf16 %v3831_v55, %v3830_v8 }
 0x64f   : > { %6283 = vmatpush3.bf16.msra.mxu0 %v6280_v18  ;;  %5349 = vmatprep.mubr.f32.mxu0 %v3844_v27 }
 0x650   : > { %6285 = vmatprep.subr.bf16.mxu0 %v6284_v23 }
 0x651   : > { %6199 = vmatpush3.bf16.msra.mxu1 %v6196_v22 }
 0x652   : > { %6201 = vmatprep.subr.bf16.mxu1 %v6200_v46 }
 0x653   : > { %6287 = vmatpush3.bf16.msra.mxu0 %v6284_v23 }
 0x654   : > { %6289 = vmatprep.subr.bf16.mxu0 %v6288_v28 }
 0x655   : > { %6203 = vmatpush3.bf16.msra.mxu1 %v6200_v46 }
 0x656   : > { %6205 = vmatprep.subr.bf16.mxu1 %v6204_v31 }
 0x657   : > { %6291 = vmatpush3.bf16.msra.mxu0 %v6288_v28 }
 0x658   : > { %6293 = vmatprep.subr.bf16.mxu0 %v6292_v6 }
 0x659   : > { %6207 = vmatpush3.bf16.msra.mxu1 %v6204_v31 }
 0x65a   : > { %6209 = vmatprep.subr.bf16.mxu1 %v6208_v34 }
 0x65b   : > { %6295 = vmatpush3.bf16.msra.mxu0 %v6292_v6 }
 0x65c   : > { %6297 = vmatprep.subr.bf16.mxu0 %v6296_v35 }
 0x65d   : > { %6211 = vmatpush3.bf16.msra.mxu1 %v6208_v34 }
 0x65e   : > { %6213 = vmatprep.subr.bf16.mxu1 %v6212_v39 }
 0x65f   : > { %6299 = vmatpush3.bf16.msra.mxu0 %v6296_v35 }
 0x660   : > { %6301 = vmatprep.subr.bf16.mxu0 %v6300_v42 }
 0x661   : > { %6215 = vmatpush3.bf16.msra.mxu1 %v6212_v39 }
 0x663   : > { %6303 = vmatpush3.bf16.msra.mxu0 %v6300_v42 }
 0x664   : > { %6305 = vmatprep.subr.bf16.mxu0 %v6304_v44  ;;  %5245 = vmatmul.mubr.f32.vlgmr.msra.gmra.mrb[28].mxu1 %v7824_v58 }
 0x667   : > { %6307 = vmatpush3.bf16.msra.mxu0 %v6304_v44 }
 0x668   : > { %6309 = vmatprep.subr.bf16.mxu0 %v6308_v51 }
 0x66b   : > { %6311 = vmatpush3.bf16.msra.mxu0 %v6308_v51 }
 0x66e   : > { %5350 = vmatmul.mubr.f32.vlgmr.msra.gmra.mrb[14].mxu0 %v3846_v57 }
 0x66f   : > { %6925 = shalt.err (!%p6922_p0)
}
 0x670   : > { %s6926_s15 = scalar_lea.hbm %s7850_s27, 256  ;;  %s6930_s16 = scalar_lea.hbm %s8078_s17, 512 }
 0x671   : > { %p6927_p2 = scmp.ne.s32.totalorder %s7850_s27, %s6926_s15  ;;  %p6931_p7 = scmp.lt.u32.totalorder %s7850_s27, %s8078_s17 }
 0x672   : > { %p6932_p10 = scmp.lt.u32.totalorder %s6930_s16, %s6926_s15  ;;  %p6934_p9 = scmp.lt.u32.totalorder %s6926_s15, %s7850_s27 }
 0x673   : > { %p6928_p8 = pnand %p6927_p2, %p8079_p4 }
 0x674   : > { %p6933_p3 = por %p6932_p10, %p6931_p7 }
 0x675   : > { %p6929_p6 = pneg %p6928_p8 }
 0x676   : > { %p6935_p11 = por %p6934_p9, %p6933_p3 }
 0x678   : > { %p6936_p13 = pnand %p6935_p11, %p6929_p6 }
 0x67a   : > { %6939 = shalt.err (!%p6936_p13)
}
 0x67b   : > { %s7083_s1 = smov 128   ;;  %s7084_s28 = smov 8   ;;  %v4310_v16 = vld [vmem:[#allocation20] ss:$0 sm:$0xff]  ;;  %v6539_v0 = vld [vmem:[%s7599_s9] sm:$0xff] }
 0x67c   : > { %6410 = dma.vmem_to_hbm [thread:$0]  (%p8079_p4), %s7844_s14, 256, %s7850_s27, %s3942_s23, %s7083_s1, %s7083_s1, %s7084_s28   ;;  %v4311_v11 = vld [vmem:[#allocation23] ss:$0 sm:$0xff] }
 0x67d   : > { %s735_s18 = scalar_lea.vmem [#allocation25], %s7587_s12  ;;  %v6538_v4 = vld [vmem:[%s7599_s9 + $0x8] sm:$0xff]  ;;  %s8080_s27 = sld [smem:[#allocation53_spill]] }
 0x67e   : > { %s3981_s7 = sshll.u32 %s735_s18, 4  ;;  %s7892_s15 = scalar_lea.sflag [#allocation26], %s623_s2  ;;  %s7882_s7 = int_to_ptr.vmem [resolvable:$true] %s3981_s7 }
 0x67f   : > { %s6940_s9 = scalar_lea.vmem %s7882_s7, 256  ;;  %s7085_s13 = smov [#allocation25]  }
 0x680   : > { %p6941_p5 = scmp.ne.s32.totalorder %s7882_s7, %s6940_s9  ;;  %s6944_s5 = sshll.u32 %s7085_s13, 4  ;;  %s6945_s5 = int_to_ptr.vmem [resolvable:$false] %s6944_s5 }
 0x681   : > { %s6946_s16 = scalar_lea.vmem %s6945_s5, 512  ;;  %p6947_p0 = scmp.lt.s32.totalorder %s7882_s7, %s6945_s5 }
 0x682   : > { %p6942_p1 = pnand %p6941_p5, %p8079_p4  ;;  %p6948_p2 = scmp.lt.s32.totalorder %s6946_s16, %s6940_s9 }
 0x683   : > { %s7888_s23 = scalar_lea.hbm %s8080_s27, %s7842_s26 }
 0x684   : > { %p6943_p12 = pneg %p6942_p1  ;;  %p6949_p8 = por %p6948_p2, %p6947_p0 }
 0x686   : > { %p6950_p6 = pnand %p6949_p8, %p6943_p12 }
 0x737   : > { %v5246_v58 = vpop.f32.mrb[28].mxu1 }
 0x738   : > { %v3614_v60 = vadd.f32 %v5246_v58, %v4310_v16  ;;  %v3595_v62 = vpop.f32.mrb[29].mxu1 }
 0x739   : > { %v3613_v2 = vadd.f32 %v4310_v16, %v3595_v62 }
 0x73a   : > { %v3616_v5 = vadd.f32 %v6538_v4, %v3614_v60 }
 0x73b   : > { %v3615_v63 = vadd.f32 %v6539_v0, %v3613_v2 }
 0x73c   : > { %v3618_v7 = vmax.f32 %v3616_v5, 0.0 }
 0x73d   : > { %v3617_v10 = vmax.f32 %v3615_v63, 0.0 }
 0x73e   : > { %3620 = vst [vmem:[%s735_s18 + $0x8] sm:$0xff] %v3618_v7 }
 0x73f   : > { %3619 = vst [vmem:[%s735_s18] sm:$0xff] %v3617_v10 }
 0x741   : > { %v5351_v9 = vpop.f32.mrb[14].mxu0 }
 0x742   : > { %6953 = shalt.err (!%p6950_p6)
}
 0x743   : > { %s6954_s24 = scalar_lea.hbm %s7888_s23, 256  ;;  %s6958_s3 = scalar_lea.hbm %s8080_s27, 512 }
 0x744   : > { %p6955_p7 = scmp.ne.s32.totalorder %s7888_s23, %s6954_s24  ;;  %p6959_p9 = scmp.lt.u32.totalorder %s7888_s23, %s8080_s27 }
 0x745   : > { %p6960_p11 = scmp.lt.u32.totalorder %s6958_s3, %s6954_s24  ;;  %p6962_p5 = scmp.lt.u32.totalorder %s6954_s24, %s7888_s23 }
 0x746   : > { %p6956_p10 = pnand %p6955_p7, %p8079_p4 }
 0x747   : > { %p6961_p13 = por %p6960_p11, %p6959_p9 }
 0x748   : > { %p6957_p3 = pneg %p6956_p10 }
 0x749   : > { %p6963_p1 = por %p6962_p5, %p6961_p13 }
 0x74b   : > { %p6964_p12 = pnand %p6963_p1, %p6957_p3 }
 0x74d   : > { %6967 = shalt.err (!%p6964_p12)
}
 0x74e   : > { %6411 = dma.vmem_to_hbm [thread:$0]  (%p8079_p4), %s7882_s7, 256, %s7888_s23, %s7892_s15, %s7083_s1, %s7083_s1, %s7084_s28   ;;  %v3934_v12 = vadd.f32 %v5351_v9, %v4311_v11  ;;  %v3915_v14 = vpop.f32.mrb[15].mxu0 }
 0x74f   : > { %v3933_v54 = vadd.f32 %v4311_v11, %v3915_v14  ;;  %v6540_v15 = vld [vmem:[%s7606_s21 + $0x8] sm:$0xff]  ;;  %s742_s14 = scalar_lea.vmem [#allocation27], %s7587_s12  ;;  %v6541_v17 = vld [vmem:[%s7606_s21] sm:$0xff]  ;;  %s8081_s7 = sld [smem:[#allocation54_spill]] }
 0x750   : > { %v3936_v40 = vadd.f32 %v6540_v15, %v3934_v12  ;;  %s3997_s9 = sshll.u32 %s742_s14, 4  ;;  %s7086_s12 = smov [#allocation27]   ;;  %s7922_s9 = int_to_ptr.vmem [resolvable:$true] %s3997_s9 }
 0x751   : > { %v3935_v45 = vadd.f32 %v6541_v17, %v3933_v54  ;;  %s6968_s16 = scalar_lea.vmem %s7922_s9, 256  ;;  %s6972_s21 = sshll.u32 %s7086_s12, 4  ;;  %s6973_s21 = int_to_ptr.vmem [resolvable:$false] %s6972_s21 }
 0x752   : > { %v3938_v13 = vmax.f32 %v3936_v40, 0.0  ;;  %p6969_p0 = scmp.ne.s32.totalorder %s7922_s9, %s6968_s16  ;;  %s6974_s24 = scalar_lea.vmem %s6973_s21, 512 }
 0x753   : > { %v3937_v53 = vmax.f32 %v3935_v45, 0.0  ;;  %p6975_p6 = scmp.lt.s32.totalorder %s7922_s9, %s6973_s21  ;;  %p6976_p7 = scmp.lt.s32.totalorder %s6974_s24, %s6968_s16 }
 0x754   : > { %3940 = vst [vmem:[%s742_s14 + $0x8] sm:$0xff] %v3938_v13  ;;  %p6970_p2 = pnand %p6969_p0, %p8079_p4 }
 0x755   : > { %s7928_s23 = scalar_lea.hbm %s8081_s7, %s7842_s26  ;;  %3939 = vst [vmem:[%s742_s14] sm:$0xff] %v3937_v53  ;;  %p6977_p10 = por %p6976_p7, %p6975_p6 }
 0x756   : > { %p6971_p8 = pneg %p6970_p2 }
 0x758   : > { %p6978_p3 = pnand %p6977_p10, %p6971_p8 }
 0x75a   : > { %6981 = shalt.err (!%p6978_p3)
}
 0x75b   : > { %s6982_s26 = scalar_lea.hbm %s7928_s23, 256  ;;  %s6986_s3 = scalar_lea.hbm %s8081_s7, 512 }
 0x75c   : > { %p6983_p9 = scmp.ne.s32.totalorder %s7928_s23, %s6982_s26  ;;  %p6987_p5 = scmp.lt.u32.totalorder %s7928_s23, %s8081_s7 }
 0x75d   : > { %p6988_p1 = scmp.lt.u32.totalorder %s6986_s3, %s6982_s26  ;;  %p6990_p0 = scmp.lt.u32.totalorder %s6982_s26, %s7928_s23 }
 0x75e   : > { %p6984_p11 = pnand %p6983_p9, %p8079_p4 }
 0x75f   : > { %p6989_p12 = por %p6988_p1, %p6987_p5 }
 0x760   : > { %p6985_p13 = pneg %p6984_p11 }
 0x761   : > { %p6991_p2 = por %p6990_p0, %p6989_p12 }
 0x763   : > { %p6992_p8 = pnand %p6991_p2, %p6985_p13 }
 0x765   : > { %6995 = shalt.err (!%p6992_p8)
}
 0x766   : > { %6412 = dma.vmem_to_hbm [thread:$0]  (%p8079_p4), %s7922_s9, 256, %s7928_s23, %s7892_s15, %s7083_s1, %s7083_s1, %s7084_s28  }
 0x767 PF: > { %s8082_s14 = sld [smem:[#allocation37_spill]]  ;;  %s8083_s13 = sld [smem:[#allocation42_spill]] }
 0x768   : > { %s8084_s5 = sld [smem:[#allocation38_spill]] }
 0x76d   : > { %s4012_s16 = sand.u32 1, %s8082_s14   ;;  %p8085_p6 = scmp.ne.s32.totalorder %s8083_s13, 0 }
 0x76e   : > { %p8086_p7 = scmp.ge.s32.totalorder %s8084_s5, 2  ;;  %s4013_s12 = scalar_lea.sflag [#allocation5], %s4012_s16 }
 0x770   : > { %p6458_p10 = pnand %p8086_p7, %p8085_p6 }
 0x772   : > { %7041 = dma.done.wait (!%p6458_p10), %s4013_s12, 256  }
 0x773   : > { %7043 = vsyncadd (!%p6458_p10), %s4013_s12, 4294967040  ;;  %s8087_s22 = sadd.s32 4294967294, %s8084_s5  }
 0x774   : > { %s4021_s21 = sand.u32 1, %s8087_s22  }
 0x775   : > { %s4022_s24 = scalar_lea.sflag [#allocation26], %s4021_s21 }
 0x776   : > { %7045 = dma.done.wait (!%p6458_p10), %s4022_s24, 512  }
 0x777   : > { %7047 = vsyncadd (!%p6458_p10), %s4022_s24, 4294966784  ;;  %s8088_s21 = sld [smem:[#allocation40_spill]]  ;;  %s8089_s1 = sld [smem:[#allocation41_spill]] }
 0x778   : > { %s8090_s18 = smov %s7054_s19  ;;  %s8091_s19 = smov %s7058_s20 }
 0x77d   : > { %p40_p4 = scmp.ge.s32.totalorder %s8088_s21, 4   ;;  %s8092_s20 = smov %s8089_s1 }
 0x77f   :  { %42 = sbr.rel (!%p40_p4) target bundleno = 27 (0x1b), region = 223 }
 0x786   :  { %4036 = vsyncpa [#allocation4], 1 }
 0x787   :  { %4038 = vsyncpa [#allocation4 + $0x1], 1 }
 0x788   :  { %4039 = vsyncpa [#allocation7], 1 }
 0x789   :  { %4041 = vsyncpa [#allocation7 + $0x1], 1 }
 0x78a   :  { %4042 = vsyncpa [#allocation10], 1 }
 0x78b   :  { %4043 = vsyncpa [#allocation13], 1 }
 0x78c   :  { %4044 = vsyncpa [#allocation16], 1 }
 0x78d   :  { %4045 = vsyncpa [#allocation19], 1 }
 0x78e   :  { %4046 = vsyncpa [#allocation22], 1 }
 0x78f   :  { %4047 = vsyncpa [#allocation5], 1 }
 0x790   :  { %4049 = vsyncpa [#allocation5 + $0x1], 1 }
 0x791   :  { %4050 = vsyncpa [#allocation26], 1 }
 0x792   :  { %4052 = vsyncpa [#allocation26 + $0x1], 1 }

</bundles_post_ra>
